<compile_context>
chip_gen: v7x
topology: tpu7x:2x2x1
jax: 0.10.0
libtpu: 0.0.40
codegen_flags: <defaults>
</compile_context>

<pallas_src>
import math
import functools

import jax
import jax.numpy as jnp
from jax.experimental import pallas as pl
from jax.experimental.pallas import tpu as pltpu

# ---------------------------------------------------------------------------
# Model hyper-parameters (small, consistent with the module's constructor)
# ---------------------------------------------------------------------------
NODE_FEAT_DIM = 64
EDGE_FEAT_DIM = 17          # geometric features are 9-wide -> pos-enc fills 8 (even)
HIDDEN_DIM = 64
NUM_ITERATIONS = 2
LN_EPS = 1e-5


# ---------------------------------------------------------------------------
# Single fused Pallas kernel: whole forward pass, everything resident in VMEM.
# (Shapes here are tiny — a few hundred KB total — far below the VMEM limit.)
# ---------------------------------------------------------------------------
def _fused_forward_kernel(params_treedef, num_param_leaves,
                          edge_idx_ref, dst_row_ref, node_feat_ref, edge_feat_ref,
                          *rest):
    param_refs = rest[:num_param_leaves]
    out_nodes_ref, out_scores_ref = rest[num_param_leaves:]

    # Reconstruct the parameter pytree of refs and load every weight once.
    P = jax.tree_util.tree_unflatten(params_treedef, list(param_refs))
    P = jax.tree_util.tree_map(lambda r: r[...], P)

    f32 = jnp.float32

    def mm(a, b):
        # TODO(synk): at larger N/E cast a/b to bf16 (f32 accumulate) for the native
        # bf16 MXU path on v6e/v7x; kept f32 here for fidelity at toy sizes.
        return jnp.dot(a, b, preferred_element_type=f32)

    def layer_norm(h, gamma, beta):
        # single-pass mean / variance: one pair of lane reductions per row
        mu = jnp.mean(h, axis=-1, keepdims=True)
        var = jnp.mean(h * h, axis=-1, keepdims=True) - mu * mu
        return (h - mu) * jax.lax.rsqrt(var + LN_EPS) * gamma + beta

    def encoder(x, p):
        h = mm(x, p["w1"]) + p["b1"]
        h = jnp.maximum(layer_norm(h, p["g"], p["beta"]), 0.0)
        return mm(h, p["w2"]) + p["b2"]

    idx = edge_idx_ref[...]            # (E, 2) int32  [src | dst]
    node_feats = node_feat_ref[...]    # (N, NODE_FEAT_DIM)
    E = idx.shape[0]
    N = node_feats.shape[0]

    # One-hot gather / scatter operators built in-kernel (no HBM materialization).
    iota_en = jax.lax.broadcasted_iota(jnp.int32, (E, N), 1)
    gather_src = (iota_en == idx[:, 0:1]).astype(f32)            # (E, N)
    gather_dst = (iota_en == idx[:, 1:2]).astype(f32)            # (E, N)
    iota_ne = jax.lax.broadcasted_iota(jnp.int32, (N, E), 0)
    scatter_dst = (iota_ne == dst_row_ref[...]).astype(f32)      # (N, E)

    # Encoders
    node_hidden = encoder(node_feats, P["node_encoder"])          # (N, H)
    edge_hidden = encoder(edge_feat_ref[...], P["edge_encoder"])  # (E, H)

    # Message-passing iterations (weights differ per iteration -> Python unroll)
    for L in P["message_layers"]:
        src_f = mm(gather_src, node_hidden)    # gather via MXU, (E, H)
        dst_f = mm(gather_dst, node_hidden)    # (E, H)

        mp = L["message_mlp"]
        # [src | dst | edge] concat @ W1  ==  three lane-aligned (H,H) matmuls
        h = (mm(src_f, mp["w1_src"]) + mm(dst_f, mp["w1_dst"])
             + mm(edge_hidden, mp["w1_edge"]) + mp["b1"])
        h = jnp.maximum(layer_norm(h, mp["g"], mp["beta"]), 0.0)
        messages = mm(h, mp["w2"]) + mp["b2"]                      # (E, H)

        gate = L["edge_gate"]
        importance = jax.nn.sigmoid(mm(edge_hidden, gate["w"]) + gate["b"])  # (E, 1), VMEM only
        messages = messages * importance

        # index_add_ scatter as a one-hot matmul on the MXU
        aggregated = mm(scatter_dst, messages)                     # (N, H)

        # PyTorch-semantics GRUCell with per-gate weights (no 3H lane slicing)
        gr = L["gru"]
        r = jax.nn.sigmoid(mm(aggregated, gr["wir"]) + gr["bir"]
                           + mm(node_hidden, gr["whr"]) + gr["bhr"])
        z = jax.nn.sigmoid(mm(aggregated, gr["wiz"]) + gr["biz"]
                           + mm(node_hidden, gr["whz"]) + gr["bhz"])
        n = jnp.tanh(mm(aggregated, gr["win"]) + gr["bin"]
                     + r * (mm(node_hidden, gr["whn"]) + gr["bhn"]))
        node_hidden = (1.0 - z) * n + z * node_hidden

    # predict_edge_scores: 2H concat split into src/dst halves
    ep = P["edge_predictor"]
    src_f = mm(gather_src, node_hidden)
    dst_f = mm(gather_dst, node_hidden)
    h = jnp.maximum(mm(src_f, ep["w1_src"]) + mm(dst_f, ep["w1_dst"]) + ep["b1"], 0.0)
    out_scores_ref[...] = jax.nn.sigmoid(mm(h, ep["w2"]) + ep["b2"])

    # node_classifier
    nc = P["node_classifier"]
    out_nodes_ref[...] = mm(node_hidden, nc["w"]) + nc["b"]


# ---------------------------------------------------------------------------
# Geometric edge features (plain JAX glue; tiny elementwise math + gathers)
# ---------------------------------------------------------------------------
def box_iou(boxes1, boxes2):
    area1 = (boxes1[:, 2] - boxes1[:, 0]) * (boxes1[:, 3] - boxes1[:, 1])
    area2 = (boxes2[:, 2] - boxes2[:, 0]) * (boxes2[:, 3] - boxes2[:, 1])
    lt = jnp.maximum(boxes1[:, :2], boxes2[:, :2])
    rb = jnp.minimum(boxes1[:, 2:], boxes2[:, 2:])
    wh = jnp.maximum(rb - lt, 0.0)            # fixed: no removed a_min kwarg
    inter = wh[:, 0] * wh[:, 1]
    union = area1 + area2 - inter
    return inter / (union + 1e-8)


def positional_encoding(n_positions, dim):
    assert dim % 2 == 0, "positional encoding dim must be even to fill edge_feat_dim"
    position = jnp.arange(n_positions, dtype=jnp.float32)[:, None]
    div_term = jnp.exp(jnp.arange(0, dim, 2, dtype=jnp.float32) *
                       (-math.log(10000.0) / dim))
    pe = jnp.zeros((n_positions, dim), jnp.float32)
    pe = pe.at[:, 0::2].set(jnp.sin(position * div_term))
    pe = pe.at[:, 1::2].set(jnp.cos(position * div_term))
    return pe


def create_edge_features(node_boxes, edge_indices, pos_enc):
    src_idx, dst_idx = edge_indices[0], edge_indices[1]
    cx = (node_boxes[:, 0] + node_boxes[:, 2]) / 2
    cy = (node_boxes[:, 1] + node_boxes[:, 3]) / 2
    w = node_boxes[:, 2] - node_boxes[:, 0]
    h = node_boxes[:, 3] - node_boxes[:, 1]
    boxes_cent = jnp.stack([cx, cy, w, h], axis=1)

    src_boxes = boxes_cent[src_idx]
    dst_boxes = boxes_cent[dst_idx]
    rel_pos = dst_boxes[:, :2] - src_boxes[:, :2]
    distance = jnp.linalg.norm(rel_pos, axis=1, keepdims=True)
    log_dist = jnp.log(distance + 1.0)
    angle = jnp.arctan2(rel_pos[:, 1], rel_pos[:, 0])[:, None]
    src_area = src_boxes[:, 2] * src_boxes[:, 3]
    dst_area = dst_boxes[:, 2] * dst_boxes[:, 3]
    area_ratio = jnp.log(dst_area / (src_area + 1e-8) + 1e-8)[:, None]
    iou = box_iou(node_boxes[src_idx], node_boxes[dst_idx])[:, None]
    width_ratio = jnp.log(dst_boxes[:, 2] / (src_boxes[:, 2] + 1e-8) + 1e-8)[:, None]
    height_ratio = jnp.log(dst_boxes[:, 3] / (src_boxes[:, 3] + 1e-8) + 1e-8)[:, None]

    geo = jnp.concatenate([rel_pos, log_dist, jnp.sin(angle), jnp.cos(angle),
                           area_ratio, iou, width_ratio, height_ratio], axis=1)
    assert geo.shape[1] + pos_enc.shape[1] == EDGE_FEAT_DIM
    assert pos_enc.shape[0] == geo.shape[0]
    return jnp.concatenate([geo, pos_enc], axis=1)


# ---------------------------------------------------------------------------
# Parameter construction (deterministic, synthetic) — split/per-gate layout
# ---------------------------------------------------------------------------
def init_params(key):
    H = HIDDEN_DIM
    kit = iter(jax.random.split(key, 64))

    def lin(in_d, out_d, scale=0.05):
        kw, kb = jax.random.split(next(kit))
        w = jax.random.normal(kw, (in_d, out_d), jnp.float32) * scale
        b = jax.random.normal(kb, (1, out_d), jnp.float32) * scale
        return w, b

    def mlp_ln(in_d, hid, out_d):
        w1, b1 = lin(in_d, hid)
        w2, b2 = lin(hid, out_d)
        return dict(w1=w1, b1=b1,
                    g=jnp.ones((1, hid), jnp.float32),
                    beta=jnp.zeros((1, hid), jnp.float32),
                    w2=w2, b2=b2)

    def message_mlp():
        # Linear(3H -> H) with W1 pre-split into three (H, H) slices
        w1s, b1 = lin(H, H)
        w1d, _ = lin(H, H)
        w1e, _ = lin(H, H)
        w2, b2 = lin(H, H)
        return dict(w1_src=w1s, w1_dst=w1d, w1_edge=w1e, b1=b1,
                    g=jnp.ones((1, H), jnp.float32),
                    beta=jnp.zeros((1, H), jnp.float32),
                    w2=w2, b2=b2)

    def gru():
        d = {}
        for gname in ("r", "z", "n"):
            wi, bi = lin(H, H)
            wh, bh = lin(H, H)
            d["wi" + gname], d["bi" + gname] = wi, bi
            d["wh" + gname], d["bh" + gname] = wh, bh
        return d

    node_encoder = mlp_ln(NODE_FEAT_DIM, H, H)
    edge_encoder = mlp_ln(EDGE_FEAT_DIM, H, H)
    message_layers = [dict(message_mlp=message_mlp(),
                           edge_gate=dict(zip(("w", "b"), lin(H, 1))),
                           gru=gru())
                      for _ in range(NUM_ITERATIONS)]
    ep_w1s, ep_b1 = lin(H, H)
    ep_w1d, _ = lin(H, H)
    ep_w2, ep_b2 = lin(H, 1)
    edge_predictor = dict(w1_src=ep_w1s, w1_dst=ep_w1d, b1=ep_b1, w2=ep_w2, b2=ep_b2)
    node_classifier = dict(zip(("w", "b"), lin(H, NODE_FEAT_DIM)))

    return dict(node_encoder=node_encoder, edge_encoder=edge_encoder,
                message_layers=message_layers, edge_predictor=edge_predictor,
                node_classifier=node_classifier)


# ---------------------------------------------------------------------------
# Forward pass (mirrors RelationshipModule.forward) — one pallas_call
# ---------------------------------------------------------------------------
def relationship_forward(params, node_features, node_boxes, edge_indices, pos_enc,
                         edge_features=None):
    if edge_features is None:
        edge_features = create_edge_features(node_boxes, edge_indices, pos_enc)

    N = node_features.shape[0]
    E = edge_indices.shape[1]
    leaves, treedef = jax.tree_util.tree_flatten(params)

    edge_idx_t = edge_indices.T.astype(jnp.int32)      # (E, 2)  [src | dst]
    dst_row = edge_indices[1:2, :].astype(jnp.int32)   # (1, E)

    kernel = functools.partial(_fused_forward_kernel, treedef, len(leaves))
    n_in = 4 + len(leaves)
    out_shapes = (jax.ShapeDtypeStruct((N, NODE_FEAT_DIM), jnp.float32),
                  jax.ShapeDtypeStruct((E, 1), jnp.float32))

    # Single grid point: all operands fit comfortably in VMEM at these sizes.
    # TODO(synk): if N/E scale, tile rows with BlockSpecs (128-aligned feature dims)
    # and add a "parallel" grid axis so v7x's second TensorCore is used.
    return pl.pallas_call(
        kernel,
        out_shape=out_shapes,
        in_specs=[pl.BlockSpec(memory_space=pltpu.MemorySpace.VMEM)] * n_in,
        out_specs=(pl.BlockSpec(memory_space=pltpu.MemorySpace.VMEM),
                   pl.BlockSpec(memory_space=pltpu.MemorySpace.VMEM)),
    )(edge_idx_t, dst_row, node_features, edge_features, *leaves)


# ---------------------------------------------------------------------------
# Pure-JAX reference (PyTorch semantics) for a cheap numerical sanity check
# ---------------------------------------------------------------------------
def reference_forward(params, node_features, node_boxes, edge_indices, pos_enc):
    def ln(h, g, b):
        mu = jnp.mean(h, -1, keepdims=True)
        var = jnp.mean((h - mu) ** 2, -1, keepdims=True)
        return (h - mu) / jnp.sqrt(var + LN_EPS) * g + b

    def enc(x, p):
        h = x @ p["w1"] + p["b1"]
        h = jnp.maximum(ln(h, p["g"], p["beta"]), 0.0)
        return h @ p["w2"] + p["b2"]

    edge_features = create_edge_features(node_boxes, edge_indices, pos_enc)
    node_hidden = enc(node_features, params["node_encoder"])
    edge_hidden = enc(edge_features, params["edge_encoder"])
    src, dst = edge_indices[0], edge_indices[1]

    for L in params["message_layers"]:
        mp = L["message_mlp"]
        ei = jnp.concatenate([node_hidden[src], node_hidden[dst], edge_hidden], axis=1)
        w1 = jnp.concatenate([mp["w1_src"], mp["w1_dst"], mp["w1_edge"]], axis=0)
        h = jnp.maximum(ln(ei @ w1 + mp["b1"], mp["g"], mp["beta"]), 0.0)
        messages = h @ mp["w2"] + mp["b2"]
        imp = jax.nn.sigmoid(edge_hidden @ L["edge_gate"]["w"] + L["edge_gate"]["b"])
        messages = messages * imp
        agg = jnp.zeros_like(node_hidden).at[dst].add(messages)
        gr = L["gru"]
        r = jax.nn.sigmoid(agg @ gr["wir"] + gr["bir"] + node_hidden @ gr["whr"] + gr["bhr"])
        z = jax.nn.sigmoid(agg @ gr["wiz"] + gr["biz"] + node_hidden @ gr["whz"] + gr["bhz"])
        n = jnp.tanh(agg @ gr["win"] + gr["bin"] + r * (node_hidden @ gr["whn"] + gr["bhn"]))
        node_hidden = (1.0 - z) * n + z * node_hidden

    ep = params["edge_predictor"]
    pair = jnp.concatenate([node_hidden[src], node_hidden[dst]], axis=1)
    w1 = jnp.concatenate([ep["w1_src"], ep["w1_dst"]], axis=0)
    h = jnp.maximum(pair @ w1 + ep["b1"], 0.0)
    scores = jax.nn.sigmoid(h @ ep["w2"] + ep["b2"])
    nodes = node_hidden @ params["node_classifier"]["w"] + params["node_classifier"]["b"]
    return nodes, scores


# ---------------------------------------------------------------------------
# Driver
# ---------------------------------------------------------------------------
if __name__ == "__main__":
    N, E = 16, 24
    key = jax.random.PRNGKey(0)
    k_feat, k_box1, k_box2, k_edge, k_param = jax.random.split(key, 5)

    node_features = jax.random.normal(k_feat, (N, NODE_FEAT_DIM), jnp.float32)
    xy1 = jax.random.uniform(k_box1, (N, 2), jnp.float32, 0.0, 10.0)
    wh = jax.random.uniform(k_box2, (N, 2), jnp.float32, 1.0, 5.0)
    node_boxes = jnp.concatenate([xy1, xy1 + wh], axis=1)          # (x1, y1, x2, y2)
    edge_indices = jax.random.randint(k_edge, (2, E), 0, N, jnp.int32)

    params = init_params(k_param)
    pos_enc = positional_encoding(E, EDGE_FEAT_DIM - 9)   # hoisted constant (9 geo cols)

    fwd = jax.jit(functools.partial(relationship_forward, params))
    updated_nodes, edge_scores = fwd(node_features, node_boxes, edge_indices, pos_enc)
    jax.block_until_ready((updated_nodes, edge_scores))

    assert updated_nodes.shape == (N, NODE_FEAT_DIM)
    assert edge_scores.shape == (E, 1)

    # sanity check against pure-JAX reference with identical parameters
    ref_nodes, ref_scores = jax.jit(functools.partial(reference_forward, params))(
        node_features, node_boxes, edge_indices, pos_enc)
    jax.block_until_ready((ref_nodes, ref_scores))
    assert float(jnp.max(jnp.abs(updated_nodes - ref_nodes))) < 2e-3
    assert float(jnp.max(jnp.abs(edge_scores - ref_scores))) < 2e-3

    print("KERNEL_OK")
</pallas_src>

<mosaic_0001>
module attributes {stable_mosaic.version = 11 : i64} {
  func.func @_fused_forward_kernel(%arg0: memref<24x2xi32, #tpu.memory_space<vmem>>, %arg1: memref<1x24xi32, #tpu.memory_space<vmem>>, %arg2: memref<16x64xf32, #tpu.memory_space<vmem>>, %arg3: memref<24x17xf32, #tpu.memory_space<vmem>>, %arg4: memref<1x64xf32, #tpu.memory_space<vmem>>, %arg5: memref<1x64xf32, #tpu.memory_space<vmem>>, %arg6: memref<1x64xf32, #tpu.memory_space<vmem>>, %arg7: memref<1x64xf32, #tpu.memory_space<vmem>>, %arg8: memref<17x64xf32, #tpu.memory_space<vmem>>, %arg9: memref<64x64xf32, #tpu.memory_space<vmem>>, %arg10: memref<1x64xf32, #tpu.memory_space<vmem>>, %arg11: memref<1x1xf32, #tpu.memory_space<vmem>>, %arg12: memref<64x64xf32, #tpu.memory_space<vmem>>, %arg13: memref<64x64xf32, #tpu.memory_space<vmem>>, %arg14: memref<64x1xf32, #tpu.memory_space<vmem>>, %arg15: memref<1x1xf32, #tpu.memory_space<vmem>>, %arg16: memref<64x1xf32, #tpu.memory_space<vmem>>, %arg17: memref<1x64xf32, #tpu.memory_space<vmem>>, %arg18: memref<1x64xf32, #tpu.memory_space<vmem>>, %arg19: memref<1x64xf32, #tpu.memory_space<vmem>>, %arg20: memref<1x64xf32, #tpu.memory_space<vmem>>, %arg21: memref<1x64xf32, #tpu.memory_space<vmem>>, %arg22: memref<1x64xf32, #tpu.memory_space<vmem>>, %arg23: memref<64x64xf32, #tpu.memory_space<vmem>>, %arg24: memref<64x64xf32, #tpu.memory_space<vmem>>, %arg25: memref<64x64xf32, #tpu.memory_space<vmem>>, %arg26: memref<64x64xf32, #tpu.memory_space<vmem>>, %arg27: memref<64x64xf32, #tpu.memory_space<vmem>>, %arg28: memref<64x64xf32, #tpu.memory_space<vmem>>, %arg29: memref<1x64xf32, #tpu.memory_space<vmem>>, %arg30: memref<1x64xf32, #tpu.memory_space<vmem>>, %arg31: memref<1x64xf32, #tpu.memory_space<vmem>>, %arg32: memref<1x64xf32, #tpu.memory_space<vmem>>, %arg33: memref<64x64xf32, #tpu.memory_space<vmem>>, %arg34: memref<64x64xf32, #tpu.memory_space<vmem>>, %arg35: memref<64x64xf32, #tpu.memory_space<vmem>>, %arg36: memref<64x64xf32, #tpu.memory_space<vmem>>, %arg37: memref<1x1xf32, #tpu.memory_space<vmem>>, %arg38: memref<64x1xf32, #tpu.memory_space<vmem>>, %arg39: memref<1x64xf32, #tpu.memory_space<vmem>>, %arg40: memref<1x64xf32, #tpu.memory_space<vmem>>, %arg41: memref<1x64xf32, #tpu.memory_space<vmem>>, %arg42: memref<1x64xf32, #tpu.memory_space<vmem>>, %arg43: memref<1x64xf32, #tpu.memory_space<vmem>>, %arg44: memref<1x64xf32, #tpu.memory_space<vmem>>, %arg45: memref<64x64xf32, #tpu.memory_space<vmem>>, %arg46: memref<64x64xf32, #tpu.memory_space<vmem>>, %arg47: memref<64x64xf32, #tpu.memory_space<vmem>>, %arg48: memref<64x64xf32, #tpu.memory_space<vmem>>, %arg49: memref<64x64xf32, #tpu.memory_space<vmem>>, %arg50: memref<64x64xf32, #tpu.memory_space<vmem>>, %arg51: memref<1x64xf32, #tpu.memory_space<vmem>>, %arg52: memref<1x64xf32, #tpu.memory_space<vmem>>, %arg53: memref<1x64xf32, #tpu.memory_space<vmem>>, %arg54: memref<1x64xf32, #tpu.memory_space<vmem>>, %arg55: memref<64x64xf32, #tpu.memory_space<vmem>>, %arg56: memref<64x64xf32, #tpu.memory_space<vmem>>, %arg57: memref<64x64xf32, #tpu.memory_space<vmem>>, %arg58: memref<64x64xf32, #tpu.memory_space<vmem>>, %arg59: memref<1x64xf32, #tpu.memory_space<vmem>>, %arg60: memref<64x64xf32, #tpu.memory_space<vmem>>, %arg61: memref<1x64xf32, #tpu.memory_space<vmem>>, %arg62: memref<1x64xf32, #tpu.memory_space<vmem>>, %arg63: memref<1x64xf32, #tpu.memory_space<vmem>>, %arg64: memref<1x64xf32, #tpu.memory_space<vmem>>, %arg65: memref<64x64xf32, #tpu.memory_space<vmem>>, %arg66: memref<64x64xf32, #tpu.memory_space<vmem>>, %arg67: memref<16x64xf32, #tpu.memory_space<vmem>>, %arg68: memref<24x1xf32, #tpu.memory_space<vmem>>) attributes {dimension_semantics = [], scalar_prefetch = 0 : i64, scratch_operands = 0 : i64, tpu.core_type = #tpu.core_type<tc>} {
    %c0 = arith.constant 0 : index
    %c0_0 = arith.constant 0 : index
    %0 = vector.load %arg4[%c0, %c0_0] : memref<1x64xf32, #tpu.memory_space<vmem>>, vector<1x64xf32>
    %c0_1 = arith.constant 0 : index
    %c0_2 = arith.constant 0 : index
    %1 = vector.load %arg5[%c0_1, %c0_2] : memref<1x64xf32, #tpu.memory_space<vmem>>, vector<1x64xf32>
    %c0_3 = arith.constant 0 : index
    %c0_4 = arith.constant 0 : index
    %2 = vector.load %arg6[%c0_3, %c0_4] : memref<1x64xf32, #tpu.memory_space<vmem>>, vector<1x64xf32>
    %c0_5 = arith.constant 0 : index
    %c0_6 = arith.constant 0 : index
    %3 = vector.load %arg7[%c0_5, %c0_6] : memref<1x64xf32, #tpu.memory_space<vmem>>, vector<1x64xf32>
    %c0_7 = arith.constant 0 : index
    %c0_8 = arith.constant 0 : index
    %4 = vector.load %arg8[%c0_7, %c0_8] : memref<17x64xf32, #tpu.memory_space<vmem>>, vector<17x64xf32>
    %c0_9 = arith.constant 0 : index
    %c0_10 = arith.constant 0 : index
    %5 = vector.load %arg9[%c0_9, %c0_10] : memref<64x64xf32, #tpu.memory_space<vmem>>, vector<64x64xf32>
    %c0_11 = arith.constant 0 : index
    %c0_12 = arith.constant 0 : index
    %6 = vector.load %arg10[%c0_11, %c0_12] : memref<1x64xf32, #tpu.memory_space<vmem>>, vector<1x64xf32>
    %c0_13 = arith.constant 0 : index
    %c0_14 = arith.constant 0 : index
    %7 = vector.load %arg11[%c0_13, %c0_14] : memref<1x1xf32, #tpu.memory_space<vmem>>, vector<1x1xf32>
    %c0_15 = arith.constant 0 : index
    %c0_16 = arith.constant 0 : index
    %8 = vector.load %arg12[%c0_15, %c0_16] : memref<64x64xf32, #tpu.memory_space<vmem>>, vector<64x64xf32>
    %c0_17 = arith.constant 0 : index
    %c0_18 = arith.constant 0 : index
    %9 = vector.load %arg13[%c0_17, %c0_18] : memref<64x64xf32, #tpu.memory_space<vmem>>, vector<64x64xf32>
    %c0_19 = arith.constant 0 : index
    %c0_20 = arith.constant 0 : index
    %10 = vector.load %arg14[%c0_19, %c0_20] : memref<64x1xf32, #tpu.memory_space<vmem>>, vector<64x1xf32>
    %c0_21 = arith.constant 0 : index
    %c0_22 = arith.constant 0 : index
    %11 = vector.load %arg15[%c0_21, %c0_22] : memref<1x1xf32, #tpu.memory_space<vmem>>, vector<1x1xf32>
    %c0_23 = arith.constant 0 : index
    %c0_24 = arith.constant 0 : index
    %12 = vector.load %arg16[%c0_23, %c0_24] : memref<64x1xf32, #tpu.memory_space<vmem>>, vector<64x1xf32>
    %c0_25 = arith.constant 0 : index
    %c0_26 = arith.constant 0 : index
    %13 = vector.load %arg17[%c0_25, %c0_26] : memref<1x64xf32, #tpu.memory_space<vmem>>, vector<1x64xf32>
    %c0_27 = arith.constant 0 : index
    %c0_28 = arith.constant 0 : index
    %14 = vector.load %arg18[%c0_27, %c0_28] : memref<1x64xf32, #tpu.memory_space<vmem>>, vector<1x64xf32>
    %c0_29 = arith.constant 0 : index
    %c0_30 = arith.constant 0 : index
    %15 = vector.load %arg19[%c0_29, %c0_30] : memref<1x64xf32, #tpu.memory_space<vmem>>, vector<1x64xf32>
    %c0_31 = arith.constant 0 : index
    %c0_32 = arith.constant 0 : index
    %16 = vector.load %arg20[%c0_31, %c0_32] : memref<1x64xf32, #tpu.memory_space<vmem>>, vector<1x64xf32>
    %c0_33 = arith.constant 0 : index
    %c0_34 = arith.constant 0 : index
    %17 = vector.load %arg21[%c0_33, %c0_34] : memref<1x64xf32, #tpu.memory_space<vmem>>, vector<1x64xf32>
    %c0_35 = arith.constant 0 : index
    %c0_36 = arith.constant 0 : index
    %18 = vector.load %arg22[%c0_35, %c0_36] : memref<1x64xf32, #tpu.memory_space<vmem>>, vector<1x64xf32>
    %c0_37 = arith.constant 0 : index
    %c0_38 = arith.constant 0 : index
    %19 = vector.load %arg23[%c0_37, %c0_38] : memref<64x64xf32, #tpu.memory_space<vmem>>, vector<64x64xf32>
    %c0_39 = arith.constant 0 : index
    %c0_40 = arith.constant 0 : index
    %20 = vector.load %arg24[%c0_39, %c0_40] : memref<64x64xf32, #tpu.memory_space<vmem>>, vector<64x64xf32>
    %c0_41 = arith.constant 0 : index
    %c0_42 = arith.constant 0 : index
    %21 = vector.load %arg25[%c0_41, %c0_42] : memref<64x64xf32, #tpu.memory_space<vmem>>, vector<64x64xf32>
    %c0_43 = arith.constant 0 : index
    %c0_44 = arith.constant 0 : index
    %22 = vector.load %arg26[%c0_43, %c0_44] : memref<64x64xf32, #tpu.memory_space<vmem>>, vector<64x64xf32>
    %c0_45 = arith.constant 0 : index
    %c0_46 = arith.constant 0 : index
    %23 = vector.load %arg27[%c0_45, %c0_46] : memref<64x64xf32, #tpu.memory_space<vmem>>, vector<64x64xf32>
    %c0_47 = arith.constant 0 : index
    %c0_48 = arith.constant 0 : index
    %24 = vector.load %arg28[%c0_47, %c0_48] : memref<64x64xf32, #tpu.memory_space<vmem>>, vector<64x64xf32>
    %c0_49 = arith.constant 0 : index
    %c0_50 = arith.constant 0 : index
    %25 = vector.load %arg29[%c0_49, %c0_50] : memref<1x64xf32, #tpu.memory_space<vmem>>, vector<1x64xf32>
    %c0_51 = arith.constant 0 : index
    %c0_52 = arith.constant 0 : index
    %26 = vector.load %arg30[%c0_51, %c0_52] : memref<1x64xf32, #tpu.memory_space<vmem>>, vector<1x64xf32>
    %c0_53 = arith.constant 0 : index
    %c0_54 = arith.constant 0 : index
    %27 = vector.load %arg31[%c0_53, %c0_54] : memref<1x64xf32, #tpu.memory_space<vmem>>, vector<1x64xf32>
    %c0_55 = arith.constant 0 : index
    %c0_56 = arith.constant 0 : index
    %28 = vector.load %arg32[%c0_55, %c0_56] : memref<1x64xf32, #tpu.memory_space<vmem>>, vector<1x64xf32>
    %c0_57 = arith.constant 0 : index
    %c0_58 = arith.constant 0 : index
    %29 = vector.load %arg33[%c0_57, %c0_58] : memref<64x64xf32, #tpu.memory_space<vmem>>, vector<64x64xf32>
    %c0_59 = arith.constant 0 : index
    %c0_60 = arith.constant 0 : index
    %30 = vector.load %arg34[%c0_59, %c0_60] : memref<64x64xf32, #tpu.memory_space<vmem>>, vector<64x64xf32>
    %c0_61 = arith.constant 0 : index
    %c0_62 = arith.constant 0 : index
    %31 = vector.load %arg35[%c0_61, %c0_62] : memref<64x64xf32, #tpu.memory_space<vmem>>, vector<64x64xf32>
    %c0_63 = arith.constant 0 : index
    %c0_64 = arith.constant 0 : index
    %32 = vector.load %arg36[%c0_63, %c0_64] : memref<64x64xf32, #tpu.memory_space<vmem>>, vector<64x64xf32>
    %c0_65 = arith.constant 0 : index
    %c0_66 = arith.constant 0 : index
    %33 = vector.load %arg37[%c0_65, %c0_66] : memref<1x1xf32, #tpu.memory_space<vmem>>, vector<1x1xf32>
    %c0_67 = arith.constant 0 : index
    %c0_68 = arith.constant 0 : index
    %34 = vector.load %arg38[%c0_67, %c0_68] : memref<64x1xf32, #tpu.memory_space<vmem>>, vector<64x1xf32>
    %c0_69 = arith.constant 0 : index
    %c0_70 = arith.constant 0 : index
    %35 = vector.load %arg39[%c0_69, %c0_70] : memref<1x64xf32, #tpu.memory_space<vmem>>, vector<1x64xf32>
    %c0_71 = arith.constant 0 : index
    %c0_72 = arith.constant 0 : index
    %36 = vector.load %arg40[%c0_71, %c0_72] : memref<1x64xf32, #tpu.memory_space<vmem>>, vector<1x64xf32>
    %c0_73 = arith.constant 0 : index
    %c0_74 = arith.constant 0 : index
    %37 = vector.load %arg41[%c0_73, %c0_74] : memref<1x64xf32, #tpu.memory_space<vmem>>, vector<1x64xf32>
    %c0_75 = arith.constant 0 : index
    %c0_76 = arith.constant 0 : index
    %38 = vector.load %arg42[%c0_75, %c0_76] : memref<1x64xf32, #tpu.memory_space<vmem>>, vector<1x64xf32>
    %c0_77 = arith.constant 0 : index
    %c0_78 = arith.constant 0 : index
    %39 = vector.load %arg43[%c0_77, %c0_78] : memref<1x64xf32, #tpu.memory_space<vmem>>, vector<1x64xf32>
    %c0_79 = arith.constant 0 : index
    %c0_80 = arith.constant 0 : index
    %40 = vector.load %arg44[%c0_79, %c0_80] : memref<1x64xf32, #tpu.memory_space<vmem>>, vector<1x64xf32>
    %c0_81 = arith.constant 0 : index
    %c0_82 = arith.constant 0 : index
    %41 = vector.load %arg45[%c0_81, %c0_82] : memref<64x64xf32, #tpu.memory_space<vmem>>, vector<64x64xf32>
    %c0_83 = arith.constant 0 : index
    %c0_84 = arith.constant 0 : index
    %42 = vector.load %arg46[%c0_83, %c0_84] : memref<64x64xf32, #tpu.memory_space<vmem>>, vector<64x64xf32>
    %c0_85 = arith.constant 0 : index
    %c0_86 = arith.constant 0 : index
    %43 = vector.load %arg47[%c0_85, %c0_86] : memref<64x64xf32, #tpu.memory_space<vmem>>, vector<64x64xf32>
    %c0_87 = arith.constant 0 : index
    %c0_88 = arith.constant 0 : index
    %44 = vector.load %arg48[%c0_87, %c0_88] : memref<64x64xf32, #tpu.memory_space<vmem>>, vector<64x64xf32>
    %c0_89 = arith.constant 0 : index
    %c0_90 = arith.constant 0 : index
    %45 = vector.load %arg49[%c0_89, %c0_90] : memref<64x64xf32, #tpu.memory_space<vmem>>, vector<64x64xf32>
    %c0_91 = arith.constant 0 : index
    %c0_92 = arith.constant 0 : index
    %46 = vector.load %arg50[%c0_91, %c0_92] : memref<64x64xf32, #tpu.memory_space<vmem>>, vector<64x64xf32>
    %c0_93 = arith.constant 0 : index
    %c0_94 = arith.constant 0 : index
    %47 = vector.load %arg51[%c0_93, %c0_94] : memref<1x64xf32, #tpu.memory_space<vmem>>, vector<1x64xf32>
    %c0_95 = arith.constant 0 : index
    %c0_96 = arith.constant 0 : index
    %48 = vector.load %arg52[%c0_95, %c0_96] : memref<1x64xf32, #tpu.memory_space<vmem>>, vector<1x64xf32>
    %c0_97 = arith.constant 0 : index
    %c0_98 = arith.constant 0 : index
    %49 = vector.load %arg53[%c0_97, %c0_98] : memref<1x64xf32, #tpu.memory_space<vmem>>, vector<1x64xf32>
    %c0_99 = arith.constant 0 : index
    %c0_100 = arith.constant 0 : index
    %50 = vector.load %arg54[%c0_99, %c0_100] : memref<1x64xf32, #tpu.memory_space<vmem>>, vector<1x64xf32>
    %c0_101 = arith.constant 0 : index
    %c0_102 = arith.constant 0 : index
    %51 = vector.load %arg55[%c0_101, %c0_102] : memref<64x64xf32, #tpu.memory_space<vmem>>, vector<64x64xf32>
    %c0_103 = arith.constant 0 : index
    %c0_104 = arith.constant 0 : index
    %52 = vector.load %arg56[%c0_103, %c0_104] : memref<64x64xf32, #tpu.memory_space<vmem>>, vector<64x64xf32>
    %c0_105 = arith.constant 0 : index
    %c0_106 = arith.constant 0 : index
    %53 = vector.load %arg57[%c0_105, %c0_106] : memref<64x64xf32, #tpu.memory_space<vmem>>, vector<64x64xf32>
    %c0_107 = arith.constant 0 : index
    %c0_108 = arith.constant 0 : index
    %54 = vector.load %arg58[%c0_107, %c0_108] : memref<64x64xf32, #tpu.memory_space<vmem>>, vector<64x64xf32>
    %c0_109 = arith.constant 0 : index
    %c0_110 = arith.constant 0 : index
    %55 = vector.load %arg59[%c0_109, %c0_110] : memref<1x64xf32, #tpu.memory_space<vmem>>, vector<1x64xf32>
    %c0_111 = arith.constant 0 : index
    %c0_112 = arith.constant 0 : index
    %56 = vector.load %arg60[%c0_111, %c0_112] : memref<64x64xf32, #tpu.memory_space<vmem>>, vector<64x64xf32>
    %c0_113 = arith.constant 0 : index
    %c0_114 = arith.constant 0 : index
    %57 = vector.load %arg61[%c0_113, %c0_114] : memref<1x64xf32, #tpu.memory_space<vmem>>, vector<1x64xf32>
    %c0_115 = arith.constant 0 : index
    %c0_116 = arith.constant 0 : index
    %58 = vector.load %arg62[%c0_115, %c0_116] : memref<1x64xf32, #tpu.memory_space<vmem>>, vector<1x64xf32>
    %c0_117 = arith.constant 0 : index
    %c0_118 = arith.constant 0 : index
    %59 = vector.load %arg63[%c0_117, %c0_118] : memref<1x64xf32, #tpu.memory_space<vmem>>, vector<1x64xf32>
    %c0_119 = arith.constant 0 : index
    %c0_120 = arith.constant 0 : index
    %60 = vector.load %arg64[%c0_119, %c0_120] : memref<1x64xf32, #tpu.memory_space<vmem>>, vector<1x64xf32>
    %c0_121 = arith.constant 0 : index
    %c0_122 = arith.constant 0 : index
    %61 = vector.load %arg65[%c0_121, %c0_122] : memref<64x64xf32, #tpu.memory_space<vmem>>, vector<64x64xf32>
    %c0_123 = arith.constant 0 : index
    %c0_124 = arith.constant 0 : index
    %62 = vector.load %arg66[%c0_123, %c0_124] : memref<64x64xf32, #tpu.memory_space<vmem>>, vector<64x64xf32>
    %c0_125 = arith.constant 0 : index
    %c0_126 = arith.constant 0 : index
    %63 = vector.load %arg0[%c0_125, %c0_126] : memref<24x2xi32, #tpu.memory_space<vmem>>, vector<24x2xi32>
    %c0_127 = arith.constant 0 : index
    %c0_128 = arith.constant 0 : index
    %64 = vector.load %arg2[%c0_127, %c0_128] : memref<16x64xf32, #tpu.memory_space<vmem>>, vector<16x64xf32>
    %65 = tpu.iota {dimensions = array<i32: 1>} : vector<24x16xi32>
    %66 = vector.extract_strided_slice %63 {offsets = [0, 0], sizes = [24, 1], strides = [1, 1]} : vector<24x2xi32> to vector<24x1xi32>
    %67 = vector.broadcast %66 : vector<24x1xi32> to vector<24x16xi32>
    %68 = arith.cmpi eq, %65, %67 : vector<24x16xi32>
    %69 = arith.extui %68 : vector<24x16xi1> to vector<24x16xi32>
    %70 = arith.sitofp %69 : vector<24x16xi32> to vector<24x16xf32>
    %71 = vector.extract_strided_slice %63 {offsets = [0, 1], sizes = [24, 1], strides = [1, 1]} : vector<24x2xi32> to vector<24x1xi32>
    %72 = vector.broadcast %71 : vector<24x1xi32> to vector<24x16xi32>
    %73 = arith.cmpi eq, %65, %72 : vector<24x16xi32>
    %74 = arith.extui %73 : vector<24x16xi1> to vector<24x16xi32>
    %75 = arith.sitofp %74 : vector<24x16xi32> to vector<24x16xf32>
    %76 = tpu.iota {dimensions = array<i32: 0>} : vector<16x24xi32>
    %c0_129 = arith.constant 0 : index
    %c0_130 = arith.constant 0 : index
    %77 = vector.load %arg1[%c0_129, %c0_130] : memref<1x24xi32, #tpu.memory_space<vmem>>, vector<1x24xi32>
    %78 = vector.broadcast %77 : vector<1x24xi32> to vector<16x24xi32>
    %79 = arith.cmpi eq, %76, %78 : vector<16x24xi32>
    %80 = arith.extui %79 : vector<16x24xi1> to vector<16x24xi32>
    %81 = arith.sitofp %80 : vector<16x24xi32> to vector<16x24xf32>
    %cst = arith.constant dense<0.000000e+00> : vector<16x64xf32>
    %82 = tpu.matmul %64, %61, %cst {dimension_numbers = #tpu.dot_dimension_numbers<[1], [0], [0], [1], [0, 0, 1, 1], [], []>} : vector<16x64xf32>, vector<64x64xf32>, vector<16x64xf32> -> vector<16x64xf32>
    %83 = vector.broadcast %57 : vector<1x64xf32> to vector<16x64xf32>
    %84 = arith.addf %82, %83 : vector<16x64xf32>
    %cst_131 = arith.constant dense<0.000000e+00> : vector<16xf32>
    %85 = vector.multi_reduction <add>, %84, %cst_131 [1] : vector<16x64xf32> to vector<16xf32>
    %86 = vector.shape_cast %85 : vector<16xf32> to vector<16x1xf32>
    %cst_132 = arith.constant 6.400000e+01 : f32
    %87 = vector.broadcast %cst_132 : f32 to vector<16x1xf32>
    %88 = arith.divf %86, %87 : vector<16x1xf32>
    %89 = arith.mulf %84, %84 : vector<16x64xf32>
    %cst_133 = arith.constant dense<0.000000e+00> : vector<16xf32>
    %90 = vector.multi_reduction <add>, %89, %cst_133 [1] : vector<16x64xf32> to vector<16xf32>
    %91 = vector.shape_cast %90 : vector<16xf32> to vector<16x1xf32>
    %cst_134 = arith.constant 6.400000e+01 : f32
    %92 = vector.broadcast %cst_134 : f32 to vector<16x1xf32>
    %93 = arith.divf %91, %92 : vector<16x1xf32>
    %94 = arith.mulf %88, %88 : vector<16x1xf32>
    %95 = arith.subf %93, %94 : vector<16x1xf32>
    %96 = vector.broadcast %88 : vector<16x1xf32> to vector<16x64xf32>
    %97 = arith.subf %84, %96 : vector<16x64xf32>
    %cst_135 = arith.constant 9.99999974E-6 : f32
    %98 = vector.broadcast %cst_135 : f32 to vector<16x1xf32>
    %99 = arith.addf %95, %98 : vector<16x1xf32>
    %100 = math.rsqrt %99 : vector<16x1xf32>
    %101 = vector.broadcast %100 : vector<16x1xf32> to vector<16x64xf32>
    %102 = arith.mulf %97, %101 : vector<16x64xf32>
    %103 = vector.broadcast %60 : vector<1x64xf32> to vector<16x64xf32>
    %104 = arith.mulf %102, %103 : vector<16x64xf32>
    %105 = vector.broadcast %59 : vector<1x64xf32> to vector<16x64xf32>
    %106 = arith.addf %104, %105 : vector<16x64xf32>
    %cst_136 = arith.constant 0.000000e+00 : f32
    %107 = vector.broadcast %cst_136 : f32 to vector<16x64xf32>
    %108 = arith.maximumf %106, %107 : vector<16x64xf32>
    %cst_137 = arith.constant dense<0.000000e+00> : vector<16x64xf32>
    %109 = tpu.matmul %108, %62, %cst_137 {dimension_numbers = #tpu.dot_dimension_numbers<[1], [0], [0], [1], [0, 0, 1, 1], [], []>} : vector<16x64xf32>, vector<64x64xf32>, vector<16x64xf32> -> vector<16x64xf32>
    %110 = vector.broadcast %58 : vector<1x64xf32> to vector<16x64xf32>
    %111 = arith.addf %109, %110 : vector<16x64xf32>
    %c0_138 = arith.constant 0 : index
    %c0_139 = arith.constant 0 : index
    %112 = vector.load %arg3[%c0_138, %c0_139] : memref<24x17xf32, #tpu.memory_space<vmem>>, vector<24x17xf32>
    %cst_140 = arith.constant dense<0.000000e+00> : vector<24x64xf32>
    %113 = tpu.matmul %112, %4, %cst_140 {dimension_numbers = #tpu.dot_dimension_numbers<[1], [0], [0], [1], [0, 0, 1, 1], [], []>} : vector<24x17xf32>, vector<17x64xf32>, vector<24x64xf32> -> vector<24x64xf32>
    %114 = vector.broadcast %0 : vector<1x64xf32> to vector<24x64xf32>
    %115 = arith.addf %113, %114 : vector<24x64xf32>
    %cst_141 = arith.constant dense<0.000000e+00> : vector<24xf32>
    %116 = vector.multi_reduction <add>, %115, %cst_141 [1] : vector<24x64xf32> to vector<24xf32>
    %117 = vector.shape_cast %116 : vector<24xf32> to vector<24x1xf32>
    %cst_142 = arith.constant 6.400000e+01 : f32
    %118 = vector.broadcast %cst_142 : f32 to vector<24x1xf32>
    %119 = arith.divf %117, %118 : vector<24x1xf32>
    %120 = arith.mulf %115, %115 : vector<24x64xf32>
    %cst_143 = arith.constant dense<0.000000e+00> : vector<24xf32>
    %121 = vector.multi_reduction <add>, %120, %cst_143 [1] : vector<24x64xf32> to vector<24xf32>
    %122 = vector.shape_cast %121 : vector<24xf32> to vector<24x1xf32>
    %cst_144 = arith.constant 6.400000e+01 : f32
    %123 = vector.broadcast %cst_144 : f32 to vector<24x1xf32>
    %124 = arith.divf %122, %123 : vector<24x1xf32>
    %125 = arith.mulf %119, %119 : vector<24x1xf32>
    %126 = arith.subf %124, %125 : vector<24x1xf32>
    %127 = vector.broadcast %119 : vector<24x1xf32> to vector<24x64xf32>
    %128 = arith.subf %115, %127 : vector<24x64xf32>
    %cst_145 = arith.constant 9.99999974E-6 : f32
    %129 = vector.broadcast %cst_145 : f32 to vector<24x1xf32>
    %130 = arith.addf %126, %129 : vector<24x1xf32>
    %131 = math.rsqrt %130 : vector<24x1xf32>
    %132 = vector.broadcast %131 : vector<24x1xf32> to vector<24x64xf32>
    %133 = arith.mulf %128, %132 : vector<24x64xf32>
    %134 = vector.broadcast %3 : vector<1x64xf32> to vector<24x64xf32>
    %135 = arith.mulf %133, %134 : vector<24x64xf32>
    %136 = vector.broadcast %2 : vector<1x64xf32> to vector<24x64xf32>
    %137 = arith.addf %135, %136 : vector<24x64xf32>
    %cst_146 = arith.constant 0.000000e+00 : f32
    %138 = vector.broadcast %cst_146 : f32 to vector<24x64xf32>
    %139 = arith.maximumf %137, %138 : vector<24x64xf32>
    %cst_147 = arith.constant dense<0.000000e+00> : vector<24x64xf32>
    %140 = tpu.matmul %139, %5, %cst_147 {dimension_numbers = #tpu.dot_dimension_numbers<[1], [0], [0], [1], [0, 0, 1, 1], [], []>} : vector<24x64xf32>, vector<64x64xf32>, vector<24x64xf32> -> vector<24x64xf32>
    %141 = vector.broadcast %1 : vector<1x64xf32> to vector<24x64xf32>
    %142 = arith.addf %140, %141 : vector<24x64xf32>
    %cst_148 = arith.constant dense<0.000000e+00> : vector<24x64xf32>
    %143 = tpu.matmul %70, %111, %cst_148 {dimension_numbers = #tpu.dot_dimension_numbers<[1], [0], [0], [1], [0, 0, 1, 1], [], []>} : vector<24x16xf32>, vector<16x64xf32>, vector<24x64xf32> -> vector<24x64xf32>
    %cst_149 = arith.constant dense<0.000000e+00> : vector<24x64xf32>
    %144 = tpu.matmul %75, %111, %cst_149 {dimension_numbers = #tpu.dot_dimension_numbers<[1], [0], [0], [1], [0, 0, 1, 1], [], []>} : vector<24x16xf32>, vector<16x64xf32>, vector<24x64xf32> -> vector<24x64xf32>
    %cst_150 = arith.constant dense<0.000000e+00> : vector<24x64xf32>
    %145 = tpu.matmul %143, %31, %cst_150 {dimension_numbers = #tpu.dot_dimension_numbers<[1], [0], [0], [1], [0, 0, 1, 1], [], []>} : vector<24x64xf32>, vector<64x64xf32>, vector<24x64xf32> -> vector<24x64xf32>
    %cst_151 = arith.constant dense<0.000000e+00> : vector<24x64xf32>
    %146 = tpu.matmul %144, %29, %cst_151 {dimension_numbers = #tpu.dot_dimension_numbers<[1], [0], [0], [1], [0, 0, 1, 1], [], []>} : vector<24x64xf32>, vector<64x64xf32>, vector<24x64xf32> -> vector<24x64xf32>
    %147 = arith.addf %145, %146 : vector<24x64xf32>
    %cst_152 = arith.constant dense<0.000000e+00> : vector<24x64xf32>
    %148 = tpu.matmul %142, %30, %cst_152 {dimension_numbers = #tpu.dot_dimension_numbers<[1], [0], [0], [1], [0, 0, 1, 1], [], []>} : vector<24x64xf32>, vector<64x64xf32>, vector<24x64xf32> -> vector<24x64xf32>
    %149 = arith.addf %147, %148 : vector<24x64xf32>
    %150 = vector.broadcast %25 : vector<1x64xf32> to vector<24x64xf32>
    %151 = arith.addf %149, %150 : vector<24x64xf32>
    %cst_153 = arith.constant dense<0.000000e+00> : vector<24xf32>
    %152 = vector.multi_reduction <add>, %151, %cst_153 [1] : vector<24x64xf32> to vector<24xf32>
    %153 = vector.shape_cast %152 : vector<24xf32> to vector<24x1xf32>
    %cst_154 = arith.constant 6.400000e+01 : f32
    %154 = vector.broadcast %cst_154 : f32 to vector<24x1xf32>
    %155 = arith.divf %153, %154 : vector<24x1xf32>
    %156 = arith.mulf %151, %151 : vector<24x64xf32>
    %cst_155 = arith.constant dense<0.000000e+00> : vector<24xf32>
    %157 = vector.multi_reduction <add>, %156, %cst_155 [1] : vector<24x64xf32> to vector<24xf32>
    %158 = vector.shape_cast %157 : vector<24xf32> to vector<24x1xf32>
    %cst_156 = arith.constant 6.400000e+01 : f32
    %159 = vector.broadcast %cst_156 : f32 to vector<24x1xf32>
    %160 = arith.divf %158, %159 : vector<24x1xf32>
    %161 = arith.mulf %155, %155 : vector<24x1xf32>
    %162 = arith.subf %160, %161 : vector<24x1xf32>
    %163 = vector.broadcast %155 : vector<24x1xf32> to vector<24x64xf32>
    %164 = arith.subf %151, %163 : vector<24x64xf32>
    %cst_157 = arith.constant 9.99999974E-6 : f32
    %165 = vector.broadcast %cst_157 : f32 to vector<24x1xf32>
    %166 = arith.addf %162, %165 : vector<24x1xf32>
    %167 = math.rsqrt %166 : vector<24x1xf32>
    %168 = vector.broadcast %167 : vector<24x1xf32> to vector<24x64xf32>
    %169 = arith.mulf %164, %168 : vector<24x64xf32>
    %170 = vector.broadcast %28 : vector<1x64xf32> to vector<24x64xf32>
    %171 = arith.mulf %169, %170 : vector<24x64xf32>
    %172 = vector.broadcast %27 : vector<1x64xf32> to vector<24x64xf32>
    %173 = arith.addf %171, %172 : vector<24x64xf32>
    %cst_158 = arith.constant 0.000000e+00 : f32
    %174 = vector.broadcast %cst_158 : f32 to vector<24x64xf32>
    %175 = arith.maximumf %173, %174 : vector<24x64xf32>
    %cst_159 = arith.constant dense<0.000000e+00> : vector<24x64xf32>
    %176 = tpu.matmul %175, %32, %cst_159 {dimension_numbers = #tpu.dot_dimension_numbers<[1], [0], [0], [1], [0, 0, 1, 1], [], []>} : vector<24x64xf32>, vector<64x64xf32>, vector<24x64xf32> -> vector<24x64xf32>
    %177 = vector.broadcast %26 : vector<1x64xf32> to vector<24x64xf32>
    %178 = arith.addf %176, %177 : vector<24x64xf32>
    %cst_160 = arith.constant dense<0.000000e+00> : vector<24x1xf32>
    %179 = tpu.matmul %142, %12, %cst_160 {dimension_numbers = #tpu.dot_dimension_numbers<[1], [0], [0], [1], [0, 0, 1, 1], [], []>} : vector<24x64xf32>, vector<64x1xf32>, vector<24x1xf32> -> vector<24x1xf32>
    %180 = vector.broadcast %11 : vector<1x1xf32> to vector<24x1xf32>
    %181 = arith.addf %179, %180 : vector<24x1xf32>
    %182 = arith.negf %181 : vector<24x1xf32>
    %183 = math.exp %182 : vector<24x1xf32>
    %cst_161 = arith.constant 1.000000e+00 : f32
    %184 = vector.broadcast %cst_161 : f32 to vector<24x1xf32>
    %185 = arith.addf %184, %183 : vector<24x1xf32>
    %186 = arith.divf %184, %185 : vector<24x1xf32>
    %187 = vector.broadcast %186 : vector<24x1xf32> to vector<24x64xf32>
    %188 = arith.mulf %178, %187 : vector<24x64xf32>
    %cst_162 = arith.constant dense<0.000000e+00> : vector<16x64xf32>
    %189 = tpu.matmul %81, %188, %cst_162 {dimension_numbers = #tpu.dot_dimension_numbers<[1], [0], [0], [1], [0, 0, 1, 1], [], []>} : vector<16x24xf32>, vector<24x64xf32>, vector<16x64xf32> -> vector<16x64xf32>
    %cst_163 = arith.constant dense<0.000000e+00> : vector<16x64xf32>
    %190 = tpu.matmul %189, %23, %cst_163 {dimension_numbers = #tpu.dot_dimension_numbers<[1], [0], [0], [1], [0, 0, 1, 1], [], []>} : vector<16x64xf32>, vector<64x64xf32>, vector<16x64xf32> -> vector<16x64xf32>
    %191 = vector.broadcast %17 : vector<1x64xf32> to vector<16x64xf32>
    %192 = arith.addf %190, %191 : vector<16x64xf32>
    %cst_164 = arith.constant dense<0.000000e+00> : vector<16x64xf32>
    %193 = tpu.matmul %111, %20, %cst_164 {dimension_numbers = #tpu.dot_dimension_numbers<[1], [0], [0], [1], [0, 0, 1, 1], [], []>} : vector<16x64xf32>, vector<64x64xf32>, vector<16x64xf32> -> vector<16x64xf32>
    %194 = arith.addf %192, %193 : vector<16x64xf32>
    %195 = vector.broadcast %14 : vector<1x64xf32> to vector<16x64xf32>
    %196 = arith.addf %194, %195 : vector<16x64xf32>
    %197 = arith.negf %196 : vector<16x64xf32>
    %198 = math.exp %197 : vector<16x64xf32>
    %cst_165 = arith.constant 1.000000e+00 : f32
    %199 = vector.broadcast %cst_165 : f32 to vector<16x64xf32>
    %200 = arith.addf %199, %198 : vector<16x64xf32>
    %201 = arith.divf %199, %200 : vector<16x64xf32>
    %cst_166 = arith.constant dense<0.000000e+00> : vector<16x64xf32>
    %202 = tpu.matmul %189, %24, %cst_166 {dimension_numbers = #tpu.dot_dimension_numbers<[1], [0], [0], [1], [0, 0, 1, 1], [], []>} : vector<16x64xf32>, vector<64x64xf32>, vector<16x64xf32> -> vector<16x64xf32>
    %203 = vector.broadcast %18 : vector<1x64xf32> to vector<16x64xf32>
    %204 = arith.addf %202, %203 : vector<16x64xf32>
    %cst_167 = arith.constant dense<0.000000e+00> : vector<16x64xf32>
    %205 = tpu.matmul %111, %21, %cst_167 {dimension_numbers = #tpu.dot_dimension_numbers<[1], [0], [0], [1], [0, 0, 1, 1], [], []>} : vector<16x64xf32>, vector<64x64xf32>, vector<16x64xf32> -> vector<16x64xf32>
    %206 = arith.addf %204, %205 : vector<16x64xf32>
    %207 = vector.broadcast %15 : vector<1x64xf32> to vector<16x64xf32>
    %208 = arith.addf %206, %207 : vector<16x64xf32>
    %209 = arith.negf %208 : vector<16x64xf32>
    %210 = math.exp %209 : vector<16x64xf32>
    %cst_168 = arith.constant 1.000000e+00 : f32
    %211 = vector.broadcast %cst_168 : f32 to vector<16x64xf32>
    %212 = arith.addf %211, %210 : vector<16x64xf32>
    %213 = arith.divf %211, %212 : vector<16x64xf32>
    %cst_169 = arith.constant dense<0.000000e+00> : vector<16x64xf32>
    %214 = tpu.matmul %189, %22, %cst_169 {dimension_numbers = #tpu.dot_dimension_numbers<[1], [0], [0], [1], [0, 0, 1, 1], [], []>} : vector<16x64xf32>, vector<64x64xf32>, vector<16x64xf32> -> vector<16x64xf32>
    %215 = vector.broadcast %16 : vector<1x64xf32> to vector<16x64xf32>
    %216 = arith.addf %214, %215 : vector<16x64xf32>
    %cst_170 = arith.constant dense<0.000000e+00> : vector<16x64xf32>
    %217 = tpu.matmul %111, %19, %cst_170 {dimension_numbers = #tpu.dot_dimension_numbers<[1], [0], [0], [1], [0, 0, 1, 1], [], []>} : vector<16x64xf32>, vector<64x64xf32>, vector<16x64xf32> -> vector<16x64xf32>
    %218 = vector.broadcast %13 : vector<1x64xf32> to vector<16x64xf32>
    %219 = arith.addf %217, %218 : vector<16x64xf32>
    %220 = arith.mulf %201, %219 : vector<16x64xf32>
    %221 = arith.addf %216, %220 : vector<16x64xf32>
    %222 = math.tanh %221 : vector<16x64xf32>
    %cst_171 = arith.constant 1.000000e+00 : f32
    %223 = vector.broadcast %cst_171 : f32 to vector<16x64xf32>
    %224 = arith.subf %223, %213 : vector<16x64xf32>
    %225 = arith.mulf %224, %222 : vector<16x64xf32>
    %226 = arith.mulf %213, %111 : vector<16x64xf32>
    %227 = arith.addf %225, %226 : vector<16x64xf32>
    %cst_172 = arith.constant dense<0.000000e+00> : vector<24x64xf32>
    %228 = tpu.matmul %70, %227, %cst_172 {dimension_numbers = #tpu.dot_dimension_numbers<[1], [0], [0], [1], [0, 0, 1, 1], [], []>} : vector<24x16xf32>, vector<16x64xf32>, vector<24x64xf32> -> vector<24x64xf32>
    %cst_173 = arith.constant dense<0.000000e+00> : vector<24x64xf32>
    %229 = tpu.matmul %75, %227, %cst_173 {dimension_numbers = #tpu.dot_dimension_numbers<[1], [0], [0], [1], [0, 0, 1, 1], [], []>} : vector<24x16xf32>, vector<16x64xf32>, vector<24x64xf32> -> vector<24x64xf32>
    %cst_174 = arith.constant dense<0.000000e+00> : vector<24x64xf32>
    %230 = tpu.matmul %228, %53, %cst_174 {dimension_numbers = #tpu.dot_dimension_numbers<[1], [0], [0], [1], [0, 0, 1, 1], [], []>} : vector<24x64xf32>, vector<64x64xf32>, vector<24x64xf32> -> vector<24x64xf32>
    %cst_175 = arith.constant dense<0.000000e+00> : vector<24x64xf32>
    %231 = tpu.matmul %229, %51, %cst_175 {dimension_numbers = #tpu.dot_dimension_numbers<[1], [0], [0], [1], [0, 0, 1, 1], [], []>} : vector<24x64xf32>, vector<64x64xf32>, vector<24x64xf32> -> vector<24x64xf32>
    %232 = arith.addf %230, %231 : vector<24x64xf32>
    %cst_176 = arith.constant dense<0.000000e+00> : vector<24x64xf32>
    %233 = tpu.matmul %142, %52, %cst_176 {dimension_numbers = #tpu.dot_dimension_numbers<[1], [0], [0], [1], [0, 0, 1, 1], [], []>} : vector<24x64xf32>, vector<64x64xf32>, vector<24x64xf32> -> vector<24x64xf32>
    %234 = arith.addf %232, %233 : vector<24x64xf32>
    %235 = vector.broadcast %47 : vector<1x64xf32> to vector<24x64xf32>
    %236 = arith.addf %234, %235 : vector<24x64xf32>
    %cst_177 = arith.constant dense<0.000000e+00> : vector<24xf32>
    %237 = vector.multi_reduction <add>, %236, %cst_177 [1] : vector<24x64xf32> to vector<24xf32>
    %238 = vector.shape_cast %237 : vector<24xf32> to vector<24x1xf32>
    %cst_178 = arith.constant 6.400000e+01 : f32
    %239 = vector.broadcast %cst_178 : f32 to vector<24x1xf32>
    %240 = arith.divf %238, %239 : vector<24x1xf32>
    %241 = arith.mulf %236, %236 : vector<24x64xf32>
    %cst_179 = arith.constant dense<0.000000e+00> : vector<24xf32>
    %242 = vector.multi_reduction <add>, %241, %cst_179 [1] : vector<24x64xf32> to vector<24xf32>
    %243 = vector.shape_cast %242 : vector<24xf32> to vector<24x1xf32>
    %cst_180 = arith.constant 6.400000e+01 : f32
    %244 = vector.broadcast %cst_180 : f32 to vector<24x1xf32>
    %245 = arith.divf %243, %244 : vector<24x1xf32>
    %246 = arith.mulf %240, %240 : vector<24x1xf32>
    %247 = arith.subf %245, %246 : vector<24x1xf32>
    %248 = vector.broadcast %240 : vector<24x1xf32> to vector<24x64xf32>
    %249 = arith.subf %236, %248 : vector<24x64xf32>
    %cst_181 = arith.constant 9.99999974E-6 : f32
    %250 = vector.broadcast %cst_181 : f32 to vector<24x1xf32>
    %251 = arith.addf %247, %250 : vector<24x1xf32>
    %252 = math.rsqrt %251 : vector<24x1xf32>
    %253 = vector.broadcast %252 : vector<24x1xf32> to vector<24x64xf32>
    %254 = arith.mulf %249, %253 : vector<24x64xf32>
    %255 = vector.broadcast %50 : vector<1x64xf32> to vector<24x64xf32>
    %256 = arith.mulf %254, %255 : vector<24x64xf32>
    %257 = vector.broadcast %49 : vector<1x64xf32> to vector<24x64xf32>
    %258 = arith.addf %256, %257 : vector<24x64xf32>
    %cst_182 = arith.constant 0.000000e+00 : f32
    %259 = vector.broadcast %cst_182 : f32 to vector<24x64xf32>
    %260 = arith.maximumf %258, %259 : vector<24x64xf32>
    %cst_183 = arith.constant dense<0.000000e+00> : vector<24x64xf32>
    %261 = tpu.matmul %260, %54, %cst_183 {dimension_numbers = #tpu.dot_dimension_numbers<[1], [0], [0], [1], [0, 0, 1, 1], [], []>} : vector<24x64xf32>, vector<64x64xf32>, vector<24x64xf32> -> vector<24x64xf32>
    %262 = vector.broadcast %48 : vector<1x64xf32> to vector<24x64xf32>
    %263 = arith.addf %261, %262 : vector<24x64xf32>
    %cst_184 = arith.constant dense<0.000000e+00> : vector<24x1xf32>
    %264 = tpu.matmul %142, %34, %cst_184 {dimension_numbers = #tpu.dot_dimension_numbers<[1], [0], [0], [1], [0, 0, 1, 1], [], []>} : vector<24x64xf32>, vector<64x1xf32>, vector<24x1xf32> -> vector<24x1xf32>
    %265 = vector.broadcast %33 : vector<1x1xf32> to vector<24x1xf32>
    %266 = arith.addf %264, %265 : vector<24x1xf32>
    %267 = arith.negf %266 : vector<24x1xf32>
    %268 = math.exp %267 : vector<24x1xf32>
    %cst_185 = arith.constant 1.000000e+00 : f32
    %269 = vector.broadcast %cst_185 : f32 to vector<24x1xf32>
    %270 = arith.addf %269, %268 : vector<24x1xf32>
    %271 = arith.divf %269, %270 : vector<24x1xf32>
    %272 = vector.broadcast %271 : vector<24x1xf32> to vector<24x64xf32>
    %273 = arith.mulf %263, %272 : vector<24x64xf32>
    %cst_186 = arith.constant dense<0.000000e+00> : vector<16x64xf32>
    %274 = tpu.matmul %81, %273, %cst_186 {dimension_numbers = #tpu.dot_dimension_numbers<[1], [0], [0], [1], [0, 0, 1, 1], [], []>} : vector<16x24xf32>, vector<24x64xf32>, vector<16x64xf32> -> vector<16x64xf32>
    %cst_187 = arith.constant dense<0.000000e+00> : vector<16x64xf32>
    %275 = tpu.matmul %274, %45, %cst_187 {dimension_numbers = #tpu.dot_dimension_numbers<[1], [0], [0], [1], [0, 0, 1, 1], [], []>} : vector<16x64xf32>, vector<64x64xf32>, vector<16x64xf32> -> vector<16x64xf32>
    %276 = vector.broadcast %39 : vector<1x64xf32> to vector<16x64xf32>
    %277 = arith.addf %275, %276 : vector<16x64xf32>
    %cst_188 = arith.constant dense<0.000000e+00> : vector<16x64xf32>
    %278 = tpu.matmul %227, %42, %cst_188 {dimension_numbers = #tpu.dot_dimension_numbers<[1], [0], [0], [1], [0, 0, 1, 1], [], []>} : vector<16x64xf32>, vector<64x64xf32>, vector<16x64xf32> -> vector<16x64xf32>
    %279 = arith.addf %277, %278 : vector<16x64xf32>
    %280 = vector.broadcast %36 : vector<1x64xf32> to vector<16x64xf32>
    %281 = arith.addf %279, %280 : vector<16x64xf32>
    %282 = arith.negf %281 : vector<16x64xf32>
    %283 = math.exp %282 : vector<16x64xf32>
    %cst_189 = arith.constant 1.000000e+00 : f32
    %284 = vector.broadcast %cst_189 : f32 to vector<16x64xf32>
    %285 = arith.addf %284, %283 : vector<16x64xf32>
    %286 = arith.divf %284, %285 : vector<16x64xf32>
    %cst_190 = arith.constant dense<0.000000e+00> : vector<16x64xf32>
    %287 = tpu.matmul %274, %46, %cst_190 {dimension_numbers = #tpu.dot_dimension_numbers<[1], [0], [0], [1], [0, 0, 1, 1], [], []>} : vector<16x64xf32>, vector<64x64xf32>, vector<16x64xf32> -> vector<16x64xf32>
    %288 = vector.broadcast %40 : vector<1x64xf32> to vector<16x64xf32>
    %289 = arith.addf %287, %288 : vector<16x64xf32>
    %cst_191 = arith.constant dense<0.000000e+00> : vector<16x64xf32>
    %290 = tpu.matmul %227, %43, %cst_191 {dimension_numbers = #tpu.dot_dimension_numbers<[1], [0], [0], [1], [0, 0, 1, 1], [], []>} : vector<16x64xf32>, vector<64x64xf32>, vector<16x64xf32> -> vector<16x64xf32>
    %291 = arith.addf %289, %290 : vector<16x64xf32>
    %292 = vector.broadcast %37 : vector<1x64xf32> to vector<16x64xf32>
    %293 = arith.addf %291, %292 : vector<16x64xf32>
    %294 = arith.negf %293 : vector<16x64xf32>
    %295 = math.exp %294 : vector<16x64xf32>
    %cst_192 = arith.constant 1.000000e+00 : f32
    %296 = vector.broadcast %cst_192 : f32 to vector<16x64xf32>
    %297 = arith.addf %296, %295 : vector<16x64xf32>
    %298 = arith.divf %296, %297 : vector<16x64xf32>
    %cst_193 = arith.constant dense<0.000000e+00> : vector<16x64xf32>
    %299 = tpu.matmul %274, %44, %cst_193 {dimension_numbers = #tpu.dot_dimension_numbers<[1], [0], [0], [1], [0, 0, 1, 1], [], []>} : vector<16x64xf32>, vector<64x64xf32>, vector<16x64xf32> -> vector<16x64xf32>
    %300 = vector.broadcast %38 : vector<1x64xf32> to vector<16x64xf32>
    %301 = arith.addf %299, %300 : vector<16x64xf32>
    %cst_194 = arith.constant dense<0.000000e+00> : vector<16x64xf32>
    %302 = tpu.matmul %227, %41, %cst_194 {dimension_numbers = #tpu.dot_dimension_numbers<[1], [0], [0], [1], [0, 0, 1, 1], [], []>} : vector<16x64xf32>, vector<64x64xf32>, vector<16x64xf32> -> vector<16x64xf32>
    %303 = vector.broadcast %35 : vector<1x64xf32> to vector<16x64xf32>
    %304 = arith.addf %302, %303 : vector<16x64xf32>
    %305 = arith.mulf %286, %304 : vector<16x64xf32>
    %306 = arith.addf %301, %305 : vector<16x64xf32>
    %307 = math.tanh %306 : vector<16x64xf32>
    %cst_195 = arith.constant 1.000000e+00 : f32
    %308 = vector.broadcast %cst_195 : f32 to vector<16x64xf32>
    %309 = arith.subf %308, %298 : vector<16x64xf32>
    %310 = arith.mulf %309, %307 : vector<16x64xf32>
    %311 = arith.mulf %298, %227 : vector<16x64xf32>
    %312 = arith.addf %310, %311 : vector<16x64xf32>
    %cst_196 = arith.constant dense<0.000000e+00> : vector<24x64xf32>
    %313 = tpu.matmul %70, %312, %cst_196 {dimension_numbers = #tpu.dot_dimension_numbers<[1], [0], [0], [1], [0, 0, 1, 1], [], []>} : vector<24x16xf32>, vector<16x64xf32>, vector<24x64xf32> -> vector<24x64xf32>
    %cst_197 = arith.constant dense<0.000000e+00> : vector<24x64xf32>
    %314 = tpu.matmul %75, %312, %cst_197 {dimension_numbers = #tpu.dot_dimension_numbers<[1], [0], [0], [1], [0, 0, 1, 1], [], []>} : vector<24x16xf32>, vector<16x64xf32>, vector<24x64xf32> -> vector<24x64xf32>
    %cst_198 = arith.constant dense<0.000000e+00> : vector<24x64xf32>
    %315 = tpu.matmul %313, %9, %cst_198 {dimension_numbers = #tpu.dot_dimension_numbers<[1], [0], [0], [1], [0, 0, 1, 1], [], []>} : vector<24x64xf32>, vector<64x64xf32>, vector<24x64xf32> -> vector<24x64xf32>
    %cst_199 = arith.constant dense<0.000000e+00> : vector<24x64xf32>
    %316 = tpu.matmul %314, %8, %cst_199 {dimension_numbers = #tpu.dot_dimension_numbers<[1], [0], [0], [1], [0, 0, 1, 1], [], []>} : vector<24x64xf32>, vector<64x64xf32>, vector<24x64xf32> -> vector<24x64xf32>
    %317 = arith.addf %315, %316 : vector<24x64xf32>
    %318 = vector.broadcast %6 : vector<1x64xf32> to vector<24x64xf32>
    %319 = arith.addf %317, %318 : vector<24x64xf32>
    %cst_200 = arith.constant 0.000000e+00 : f32
    %320 = vector.broadcast %cst_200 : f32 to vector<24x64xf32>
    %321 = arith.maximumf %319, %320 : vector<24x64xf32>
    %cst_201 = arith.constant dense<0.000000e+00> : vector<24x1xf32>
    %322 = tpu.matmul %321, %10, %cst_201 {dimension_numbers = #tpu.dot_dimension_numbers<[1], [0], [0], [1], [0, 0, 1, 1], [], []>} : vector<24x64xf32>, vector<64x1xf32>, vector<24x1xf32> -> vector<24x1xf32>
    %323 = vector.broadcast %7 : vector<1x1xf32> to vector<24x1xf32>
    %324 = arith.addf %322, %323 : vector<24x1xf32>
    %325 = arith.negf %324 : vector<24x1xf32>
    %326 = math.exp %325 : vector<24x1xf32>
    %cst_202 = arith.constant 1.000000e+00 : f32
    %327 = vector.broadcast %cst_202 : f32 to vector<24x1xf32>
    %328 = arith.addf %327, %326 : vector<24x1xf32>
    %329 = arith.divf %327, %328 : vector<24x1xf32>
    %c0_203 = arith.constant 0 : index
    %c0_204 = arith.constant 0 : index
    %330 = vector.load %arg68[%c0_203, %c0_204] : memref<24x1xf32, #tpu.memory_space<vmem>>, vector<24x1xf32>
    tpu.vector_store %arg68[%c0_203, %c0_204], %329 {strides = array<i32>} : memref<24x1xf32, #tpu.memory_space<vmem>>, vector<24x1xf32>,
    %cst_205 = arith.constant dense<0.000000e+00> : vector<16x64xf32>
    %331 = tpu.matmul %312, %56, %cst_205 {dimension_numbers = #tpu.dot_dimension_numbers<[1], [0], [0], [1], [0, 0, 1, 1], [], []>} : vector<16x64xf32>, vector<64x64xf32>, vector<16x64xf32> -> vector<16x64xf32>
    %332 = vector.broadcast %55 : vector<1x64xf32> to vector<16x64xf32>
    %333 = arith.addf %331, %332 : vector<16x64xf32>
    %c0_206 = arith.constant 0 : index
    %c0_207 = arith.constant 0 : index
    %334 = vector.load %arg67[%c0_206, %c0_207] : memref<16x64xf32, #tpu.memory_space<vmem>>, vector<16x64xf32>
    tpu.vector_store %arg67[%c0_206, %c0_207], %333 {strides = array<i32>} : memref<16x64xf32, #tpu.memory_space<vmem>>, vector<16x64xf32>,
    return
  }
}

</mosaic_0001>

<bundles_post_ra>
// kernel: relationship_forward.1
= control target key start
LH: loop header
LB: loop body
LE: loop exit
PB: predicated region body
PF: predicated region fallthrough
CT: control target
= control target key end

     0   :  { %s6856_s6 = smov 1   ;;  %s6857_s10 = smov 2   ;;  %s8113_s0 = inlined_call_operand.smem [shape: u32[69], index: -1, kind: input, shape index: {}] }
   0x1   :  { %s6954_s5 = sld [smem:[%s8113_s0]]   ;;  %s6858_s14 = smov 3  }
   0x2   :  { %s6959_s9 = sld [smem:[%s8113_s0 + %s6856_s6]]   ;;  %s6859_s18 = smov 4  }
   0x3   :  { %s6964_s13 = sld [smem:[%s8113_s0 + %s6857_s10]]   ;;  %s6860_s22 = smov 5  }
   0x4   :  { %s6969_s17 = sld [smem:[%s8113_s0 + %s6858_s14]]   ;;  %s6861_s26 = smov 6  }
   0x5   :  { %s6974_s21 = sld [smem:[%s8113_s0 + %s6859_s18]]   ;;  %s6862_s30 = smov 7  }
   0x6   :  { %s6979_s25 = sld [smem:[%s8113_s0 + %s6860_s22]]   ;;  %s6863_s4 = smov 8  }
   0x7   :  { %8147 = sst [smem:[#allocation38_spill]] %s6954_s5  ;;  %s6864_s10 = smov 9  }
   0x8   :  { %8148 = sst [smem:[#allocation39_spill]] %s6959_s9  ;;  %s6865_s15 = smov 10  }
   0x9   :  { %8149 = sst [smem:[#allocation40_spill]] %s6964_s13  ;;  %s6866_s20 = smov 11  }
   0xa   :  { %8150 = sst [smem:[#allocation41_spill]] %s6969_s17  ;;  %s6868_s1 = smov 13  }
   0xb   :  { %s6984_s29 = sld [smem:[%s8113_s0 + %s6861_s26]]   ;;  %s6867_s26 = smov 12  }
   0xc   :  { %s6989_s3 = sld [smem:[%s8113_s0 + %s6862_s30]]   ;;  %s6869_s7 = smov 14  }
   0xd   :  { %s6994_s8 = sld [smem:[%s8113_s0 + %s6863_s4]]   ;;  %s6871_s22 = smov 17  }
   0xe   :  { %s6999_s14 = sld [smem:[%s8113_s0 + %s6864_s10]]   ;;  %s6872_s28 = smov 18  }
   0xf   :  { %s7004_s19 = sld [smem:[%s8113_s0 + %s6865_s15]]   ;;  %s6870_s15 = smov 16  }
  0x10   :  { %s4552_s24 = sld [smem:[%s8113_s0 + %s6866_s20]]   ;;  %s6875_s23 = smov 21  }
  0x11   :  { %8151 = sst [smem:[#allocation42_spill]] %s6984_s29 }
  0x12   :  { %8152 = sst [smem:[#allocation43_spill]] %s6989_s3 }
  0x13   :  { %8153 = sst [smem:[#allocation44_spill]] %s6994_s8 }
  0x14   :  { %8154 = sst [smem:[#allocation45_spill]] %s6999_s14 }
  0x15   :  { %s7012_s30 = sld [smem:[%s8113_s0 + %s6867_s26]]  }
  0x16   :  { %s7017_s6 = sld [smem:[%s8113_s0 + %s6868_s1]]   ;;  %v143_v0 = vstv %s4552_s24  ;;  %s6876_s24 = smov 22  }
  0x17   :  { %s7022_s12 = sld [smem:[%s8113_s0 + %s6869_s7]]   ;;  %s6873_s7 = smov 19   ;;  %144 = vst [vmem:[#allocation2] sm:$0x1] %v143_v0 }
  0x18   :  { %s7027_s20 = sld [smem:[%s8113_s0 + %s6870_s15]]   ;;  %s6874_s15 = smov 20  }
  0x19   :  { %s7032_s27 = sld [smem:[%s8113_s0 + %s6871_s22]]  }
  0x1a   :  { %s7037_s4 = sld [smem:[%s8113_s0 + %s6872_s28]]  }
  0x1b   :  { %8155 = sst [smem:[#allocation46_spill]] %s7012_s30  ;;  %s6879_s30 = smov 25  }
  0x1c   :  { %8156 = sst [smem:[#allocation47_spill]] %s7017_s6  ;;  %s6881_s6 = smov 27  }
  0x1d   :  { %8157 = sst [smem:[#allocation48_spill]] %s7022_s12  ;;  %s6878_s12 = smov 24  }
  0x1e   :  { %8158 = sst [smem:[#allocation49_spill]] %s7027_s20 }
  0x1f   :  { %s7042_s16 = sld [smem:[%s8113_s0 + %s6873_s7]]   ;;  %s6877_s7 = smov 23  }
  0x20   :  { %s7047_s22 = sld [smem:[%s8113_s0 + %s6874_s15]]  }
  0x21   :  { %s7052_s28 = sld [smem:[%s8113_s0 + %s6875_s23]]   ;;  %s6923_s23 = smov 37  }
  0x22   :  { %s7057_s10 = sld [smem:[%s8113_s0 + %s6876_s24]]   ;;  %s6880_s24 = smov 26  }
  0x23   :  { %s7062_s9 = sld [smem:[%s8113_s0 + %s6877_s7]]  }
  0x24   :  { %s7067_s20 = sld [smem:[%s8113_s0 + %s6878_s12]]   ;;  %s6882_s12 = smov 28  }
  0x25   :  { %s7072_s29 = sld [smem:[%s8113_s0 + %s6879_s30]]   ;;  %s6883_s30 = smov 29  }
  0x26   :  { %s7077_s3 = sld [smem:[%s8113_s0 + %s6880_s24]]   ;;  %s6884_s24 = smov 30  }
  0x29   :  { %8159 = sst [smem:[#allocation50_spill]] %s7062_s9 }
  0x2a   :  { %8160 = sst [smem:[#allocation51_spill]] %s7067_s20 }
  0x2b   :  { %8161 = sst [smem:[#allocation52_spill]] %s7072_s29 }
  0x2c   :  { %8162 = sst [smem:[#allocation53_spill]] %s7077_s3 }
  0x2d   :  { %s7082_s9 = sld [smem:[%s8113_s0 + %s6881_s6]]   ;;  %s6885_s6 = smov 31  }
  0x2e   :  { %s7087_s20 = sld [smem:[%s8113_s0 + %s6882_s12]]   ;;  %s6886_s12 = smov 32  }
  0x2f   :  { %s7092_s29 = sld [smem:[%s8113_s0 + %s6883_s30]]   ;;  %s6887_s30 = smov 33  }
  0x30   :  { %s7097_s3 = sld [smem:[%s8113_s0 + %s6884_s24]]   ;;  %s6888_s24 = smov 34  }
  0x31   :  { %s7112_s14 = sld [smem:[%s8113_s0 + %s6887_s30]]   ;;  %s6891_s30 = smov 38  }
  0x32   :  { %s7117_s5 = sld [smem:[%s8113_s0 + %s6888_s24]]   ;;  %s6892_s24 = smov 39  }
  0x33   :  { %8163 = sst [smem:[#allocation54_spill]] %s7082_s9 }
  0x34   :  { %8164 = sst [smem:[#allocation55_spill]] %s7087_s20 }
  0x35   :  { %s7102_s9 = sld [smem:[%s8113_s0 + %s6885_s6]]   ;;  %s6889_s6 = smov 35  }
  0x36   :  { %s7107_s20 = sld [smem:[%s8113_s0 + %s6886_s12]]   ;;  %s6890_s12 = smov 36  }
  0x37   :  { %8167 = sst [smem:[#allocation58_spill]] %s7112_s14 }
  0x38   :  { %8168 = sst [smem:[#allocation59_spill]] %s7117_s5 }
  0x39   :  { %s7132_s14 = sld [smem:[%s8113_s0 + %s6891_s30]]   ;;  %s6895_s30 = smov 42  }
  0x3a   :  { %s7137_s5 = sld [smem:[%s8113_s0 + %s6892_s24]]   ;;  %s6896_s24 = smov 43  }
  0x3b   :  { %8165 = sst [smem:[#allocation56_spill]] %s7102_s9 }
  0x3c   :  { %8166 = sst [smem:[#allocation57_spill]] %s7107_s20 }
  0x3d   :  { %s7122_s9 = sld [smem:[%s8113_s0 + %s6889_s6]]   ;;  %s6893_s6 = smov 40  }
  0x3e   :  { %s7127_s20 = sld [smem:[%s8113_s0 + %s6890_s12]]   ;;  %s6894_s12 = smov 41  }
  0x3f   :  { %8171 = sst [smem:[#allocation62_spill]] %s7132_s14 }
  0x40   :  { %8172 = sst [smem:[#allocation63_spill]] %s7137_s5 }
  0x41   :  { %s7152_s14 = sld [smem:[%s8113_s0 + %s6895_s30]]   ;;  %s6899_s30 = smov 46  }
  0x42   :  { %s7157_s5 = sld [smem:[%s8113_s0 + %s6896_s24]]   ;;  %s6900_s24 = smov 47  }
  0x43   :  { %8169 = sst [smem:[#allocation60_spill]] %s7122_s9 }
  0x44   :  { %8170 = sst [smem:[#allocation61_spill]] %s7127_s20 }
  0x45   :  { %s7142_s9 = sld [smem:[%s8113_s0 + %s6893_s6]]   ;;  %s6897_s6 = smov 44  }
  0x46   :  { %s7147_s20 = sld [smem:[%s8113_s0 + %s6894_s12]]   ;;  %s6898_s12 = smov 45  }
  0x47   :  { %8175 = sst [smem:[#allocation66_spill]] %s7152_s14 }
  0x48   :  { %8176 = sst [smem:[#allocation67_spill]] %s7157_s5 }
  0x49   :  { %s7172_s14 = sld [smem:[%s8113_s0 + %s6899_s30]]   ;;  %s6903_s30 = smov 50  }
  0x4a   :  { %s7177_s5 = sld [smem:[%s8113_s0 + %s6900_s24]]   ;;  %s6904_s24 = smov 51  }
  0x4b   :  { %8173 = sst [smem:[#allocation64_spill]] %s7142_s9 }
  0x4c   :  { %8174 = sst [smem:[#allocation65_spill]] %s7147_s20 }
  0x4d   :  { %s7162_s9 = sld [smem:[%s8113_s0 + %s6897_s6]]   ;;  %s6901_s6 = smov 48  }
  0x4e   :  { %s7167_s20 = sld [smem:[%s8113_s0 + %s6898_s12]]   ;;  %s6902_s12 = smov 49  }
  0x4f   :  { %8179 = sst [smem:[#allocation70_spill]] %s7172_s14 }
  0x50   :  { %8180 = sst [smem:[#allocation71_spill]] %s7177_s5 }
  0x51   :  { %s7192_s14 = sld [smem:[%s8113_s0 + %s6903_s30]]   ;;  %s6907_s30 = smov 54  }
  0x52   :  { %s7197_s5 = sld [smem:[%s8113_s0 + %s6904_s24]]   ;;  %s6908_s24 = smov 55  }
  0x53   :  { %8177 = sst [smem:[#allocation68_spill]] %s7162_s9 }
  0x54   :  { %8178 = sst [smem:[#allocation69_spill]] %s7167_s20 }
  0x55   :  { %s7182_s9 = sld [smem:[%s8113_s0 + %s6901_s6]]   ;;  %s6905_s6 = smov 52  }
  0x56   :  { %s7187_s20 = sld [smem:[%s8113_s0 + %s6902_s12]]   ;;  %s6906_s12 = smov 53  }
  0x57   :  { %8183 = sst [smem:[#allocation74_spill]] %s7192_s14 }
  0x58   :  { %8184 = sst [smem:[#allocation75_spill]] %s7197_s5 }
  0x59   :  { %s7212_s14 = sld [smem:[%s8113_s0 + %s6907_s30]]   ;;  %s6911_s30 = smov 58  }
  0x5a   :  { %s7217_s5 = sld [smem:[%s8113_s0 + %s6908_s24]]   ;;  %s6912_s24 = smov 59  }
  0x5b   :  { %8181 = sst [smem:[#allocation72_spill]] %s7182_s9 }
  0x5c   :  { %8182 = sst [smem:[#allocation73_spill]] %s7187_s20 }
  0x5d   :  { %s7202_s9 = sld [smem:[%s8113_s0 + %s6905_s6]]   ;;  %s6909_s6 = smov 56  }
  0x5e   :  { %s7207_s20 = sld [smem:[%s8113_s0 + %s6906_s12]]   ;;  %s6910_s12 = smov 57  }
  0x5f   :  { %8187 = sst [smem:[#allocation78_spill]] %s7212_s14 }
  0x60   :  { %8188 = sst [smem:[#allocation79_spill]] %s7217_s5 }
  0x61   :  { %s7232_s14 = sld [smem:[%s8113_s0 + %s6911_s30]]   ;;  %s6915_s30 = smov 62  }
  0x62   :  { %s7237_s5 = sld [smem:[%s8113_s0 + %s6912_s24]]   ;;  %s6916_s24 = smov 63  }
  0x63   :  { %8185 = sst [smem:[#allocation76_spill]] %s7202_s9 }
  0x64   :  { %8186 = sst [smem:[#allocation77_spill]] %s7207_s20 }
  0x65   :  { %s7222_s9 = sld [smem:[%s8113_s0 + %s6909_s6]]   ;;  %s6913_s6 = smov 60  }
  0x66   :  { %s7227_s20 = sld [smem:[%s8113_s0 + %s6910_s12]]   ;;  %s6914_s12 = smov 61  }
  0x67   :  { %8191 = sst [smem:[#allocation82_spill]] %s7232_s14 }
  0x68   :  { %s7252_s14 = sld [smem:[%s8113_s0 + %s6915_s30]]   ;;  %s6919_s30 = smov 66  }
  0x69   :  { %s7257_s17 = sld [smem:[%s8113_s0 + %s6916_s24]]   ;;  %s6920_s24 = smov 67  }
  0x6a   :  { %s7272_s13 = sld [smem:[%s8113_s0 + %s6919_s30]]  }
  0x6b   :  { %8189 = sst [smem:[#allocation80_spill]] %s7222_s9 }
  0x6c   :  { %8190 = sst [smem:[#allocation81_spill]] %s7227_s20 }
  0x6d   :  { %s7242_s9 = sld [smem:[%s8113_s0 + %s6913_s6]]   ;;  %s6917_s6 = smov 64  }
  0x6e   :  { %s7247_s20 = sld [smem:[%s8113_s0 + %s6914_s12]]   ;;  %s6918_s12 = smov 65  }
  0x6f   :  { %8193 = sst [smem:[#allocation84_spill]] %s7257_s17 }
  0x70   :  { %s7267_s8 = sld [smem:[%s8113_s0 + %s6918_s12]]   ;;  %s6922_s12 = smov 15  }
  0x71   :  { %8196 = sst [smem:[#allocation87_spill]] %s7272_s13 }
  0x72   :  { %s7277_s17 = sld [smem:[%s8113_s0 + %s6920_s24]]  }
  0x73   :  { %8192 = sst [smem:[#allocation83_spill]] %s7242_s9 }
  0x74   :  { %s7262_s9 = sld [smem:[%s8113_s0 + %s6917_s6]]   ;;  %s6921_s6 = smov 68  }
  0x75   :  { %s4578_s13 = sld [smem:[%s8113_s0 + %s6923_s23]]  }
  0x76   :  { %8195 = sst [smem:[#allocation86_spill]] %s7267_s8 }
  0x77   :  { %s4556_s8 = sld [smem:[%s8113_s0 + %s6922_s12]]  }
  0x7a   :  { %8194 = sst [smem:[#allocation85_spill]] %s7262_s9 }
  0x7b   :  { %s7282_s9 = sld [smem:[%s8113_s0 + %s6921_s6]]   ;;  %v147_v2 = vstv %s4578_s13 }
  0x7c   :  { %148 = vst [vmem:[#allocation4] sm:$0x1] %v147_v2 }
  0x7d   :  { %v145_v1 = vstv %s4556_s8 }
  0x7e   :  { %146 = vst [vmem:[#allocation3] sm:$0x1] %v145_v1 }
  0x7f   :  { %149 = vsyncpa [#allocation6], 0 }
  0x80   :  { %150 = vsyncpa [#allocation9], 0 }
  0x81   :  { %151 = vsyncpa [#allocation12], 0 }
  0x82   :  { %152 = vsyncpa [#allocation15], 0 }
  0x83   :  { %153 = vsyncpa [#allocation18], 0 }
  0x84   :  { %154 = vsyncpa [#allocation21], 0 }
  0x85   :  { %155 = vsyncpa [#allocation24], 0 }
  0x86   :  { %156 = vsyncpa [#allocation27], 0 }
  0x87   :  { %157 = vsyncpa [#allocation7], 0  ;;  %s6924_s24 = smov [#allocation8]   ;;  %s6925_s2 = smov [#allocation11]  }
  0x88   :  { %s182_s1 = sshll.u32 %s6924_s24, 4  ;;  %s222_s0 = sshll.u32 %s6925_s2, 4  ;;  %s183_s1 = int_to_ptr.vmem [resolvable:$true] %s182_s1  ;;  %s223_s0 = int_to_ptr.vmem [resolvable:$true] %s222_s0 }
  0x89   :  { %s6508_s13 = scalar_lea.hbm %s6979_s25, 16 }
  0x8a   :  { %p6509_p0 = scmp.ne.s32.totalorder %s6979_s25, %s6508_s13  ;;  %p6512_p1 = scmp.lt.u32.totalorder %s6508_s13, %s6979_s25 }
  0x8c   :  { %p6514_p2 = pnand %p6512_p1, %p6509_p0 }
  0x8e   :  { %6517 = shalt.err (!%p6514_p2)
}
  0x8f   :  { %s6518_s8 = scalar_lea.vmem %s183_s1, 16  ;;  %s6522_s6 = scalar_lea.vmem %s183_s1, 32 }
  0x90   :  { %p6519_p3 = scmp.ne.s32.totalorder %s183_s1, %s6518_s8  ;;  %p6523_p4 = scmp.lt.s32.totalorder %s183_s1, %s183_s1 }
  0x91   :  { %p6524_p5 = scmp.lt.s32.totalorder %s6522_s6, %s6518_s8 }
  0x93   :  { %p6525_p6 = por %p6524_p5, %p6523_p4 }
  0x95   :  { %p6526_p7 = pnand %p6525_p6, %p6519_p3 }
  0x97   :  { %6529 = shalt.err (!%p6526_p7)
}
  0x98   :  { %185 = dma.hbm_to_vmem [thread:$0]  %s6979_s25, 16, %s183_s1, [#allocation9]  }
  0x99   :  { %s6530_s7 = scalar_lea.hbm %s7032_s27, 16 }
  0x9a   :  { %p6531_p8 = scmp.ne.s32.totalorder %s7032_s27, %s6530_s7  ;;  %p6534_p9 = scmp.lt.u32.totalorder %s6530_s7, %s7032_s27 }
  0x9c   :  { %p6536_p10 = pnand %p6534_p9, %p6531_p8 }
  0x9e   :  { %6539 = shalt.err (!%p6536_p10)
}
  0x9f   :  { %s6540_s11 = scalar_lea.vmem %s223_s0, 16  ;;  %s6544_s12 = scalar_lea.vmem %s223_s0, 32 }
  0xa0   :  { %p6541_p11 = scmp.ne.s32.totalorder %s223_s0, %s6540_s11  ;;  %p6545_p12 = scmp.lt.s32.totalorder %s223_s0, %s223_s0 }
  0xa1   :  { %p6546_p13 = scmp.lt.s32.totalorder %s6544_s12, %s6540_s11 }
  0xa3   :  { %p6547_p0 = por %p6546_p13, %p6545_p12 }
  0xa5   :  { %p6548_p1 = pnand %p6547_p0, %p6541_p11 }
  0xa7   :  { %6551 = shalt.err (!%p6548_p1)
}
  0xa8   :  { %225 = dma.hbm_to_vmem [thread:$0]  %s7032_s27, 16, %s223_s0, [#allocation12]  }
  0xa9   :  { %s6926_s15 = smov [#allocation14]   ;;  %s6927_s18 = smov [#allocation17]  }
  0xaa   :  { %s242_s25 = sshll.u32 %s6926_s15, 4  ;;  %s262_s23 = sshll.u32 %s6927_s18, 4  ;;  %s243_s25 = int_to_ptr.vmem [resolvable:$true] %s242_s25  ;;  %s263_s23 = int_to_ptr.vmem [resolvable:$true] %s262_s23 }
  0xab   :  { %s6552_s30 = scalar_lea.hbm %s7042_s16, 16 }
  0xac   :  { %p6553_p2 = scmp.ne.s32.totalorder %s7042_s16, %s6552_s30  ;;  %p6556_p3 = scmp.lt.u32.totalorder %s6552_s30, %s7042_s16 }
  0xae   :  { %p6558_p4 = pnand %p6556_p3, %p6553_p2 }
  0xb0   :  { %6561 = shalt.err (!%p6558_p4)
}
  0xb1   :  { %s6562_s26 = scalar_lea.vmem %s243_s25, 16  ;;  %s6566_s24 = scalar_lea.vmem %s243_s25, 32 }
  0xb2   :  { %p6563_p5 = scmp.ne.s32.totalorder %s243_s25, %s6562_s26  ;;  %p6567_p6 = scmp.lt.s32.totalorder %s243_s25, %s243_s25 }
  0xb3   :  { %p6568_p7 = scmp.lt.s32.totalorder %s6566_s24, %s6562_s26 }
  0xb5   :  { %p6569_p8 = por %p6568_p7, %p6567_p6 }
  0xb7   :  { %p6570_p9 = pnand %p6569_p8, %p6563_p5 }
  0xb9   :  { %6573 = shalt.err (!%p6570_p9)
}
  0xba   :  { %245 = dma.hbm_to_vmem [thread:$0]  %s7042_s16, 16, %s243_s25, [#allocation15]  }
  0xbb   :  { %s6574_s27 = scalar_lea.hbm %s7052_s28, 16 }
  0xbc   :  { %p6575_p10 = scmp.ne.s32.totalorder %s7052_s28, %s6574_s27  ;;  %p6578_p11 = scmp.lt.u32.totalorder %s6574_s27, %s7052_s28 }
  0xbe   :  { %p6580_p12 = pnand %p6578_p11, %p6575_p10 }
  0xc0   :  { %6583 = shalt.err (!%p6580_p12)
}
  0xc1   :  { %s6584_s1 = scalar_lea.vmem %s263_s23, 16  ;;  %s6588_s2 = scalar_lea.vmem %s263_s23, 32 }
  0xc2   :  { %p6585_p13 = scmp.ne.s32.totalorder %s263_s23, %s6584_s1  ;;  %p6589_p0 = scmp.lt.s32.totalorder %s263_s23, %s263_s23 }
  0xc3   :  { %p6590_p1 = scmp.lt.s32.totalorder %s6588_s2, %s6584_s1 }
  0xc5   :  { %p6591_p2 = por %p6590_p1, %p6589_p0 }
  0xc7   :  { %p6592_p3 = pnand %p6591_p2, %p6585_p13 }
  0xc9   :  { %6595 = shalt.err (!%p6592_p3)
}
  0xca   :  { %265 = dma.hbm_to_vmem [thread:$0]  %s7052_s28, 16, %s263_s23, [#allocation18]  }
  0xcb   :  { %s6928_s0 = smov [#allocation20]   ;;  %s6929_s13 = smov [#allocation23]  }
  0xcc   :  { %s294_s16 = sshll.u32 %s6928_s0, 4  ;;  %s370_s8 = sshll.u32 %s6929_s13, 4  ;;  %s295_s16 = int_to_ptr.vmem [resolvable:$true] %s294_s16  ;;  %s371_s8 = int_to_ptr.vmem [resolvable:$true] %s370_s8 }
  0xcd   :  { %s6596_s6 = scalar_lea.hbm %s7092_s29, 16 }
  0xce   :  { %p6597_p4 = scmp.ne.s32.totalorder %s7092_s29, %s6596_s6  ;;  %p6600_p5 = scmp.lt.u32.totalorder %s6596_s6, %s7092_s29 }
  0xd0   :  { %p6602_p6 = pnand %p6600_p5, %p6597_p4 }
  0xd2   :  { %6605 = shalt.err (!%p6602_p6)
}
  0xd3   :  { %s6606_s7 = scalar_lea.vmem %s295_s16, 16  ;;  %s6610_s11 = scalar_lea.vmem %s295_s16, 32 }
  0xd4   :  { %p6607_p7 = scmp.ne.s32.totalorder %s295_s16, %s6606_s7  ;;  %p6611_p8 = scmp.lt.s32.totalorder %s295_s16, %s295_s16 }
  0xd5   :  { %p6612_p9 = scmp.lt.s32.totalorder %s6610_s11, %s6606_s7 }
  0xd7   :  { %p6613_p10 = por %p6612_p9, %p6611_p8 }
  0xd9   :  { %p6614_p11 = pnand %p6613_p10, %p6607_p7 }
  0xdb   :  { %6617 = shalt.err (!%p6614_p11)
}
  0xdc   :  { %297 = dma.hbm_to_vmem [thread:$0]  %s7092_s29, 16, %s295_s16, [#allocation21]  }
  0xdd   :  { %s6618_s28 = scalar_lea.hbm %s7237_s5, 16 }
  0xde   :  { %p6619_p12 = scmp.ne.s32.totalorder %s7237_s5, %s6618_s28  ;;  %p6622_p13 = scmp.lt.u32.totalorder %s6618_s28, %s7237_s5 }
  0xe0   :  { %p6624_p0 = pnand %p6622_p13, %p6619_p12 }
  0xe2   :  { %6627 = shalt.err (!%p6624_p0)
}
  0xe3   :  { %s6628_s12 = scalar_lea.vmem %s371_s8, 16  ;;  %s6632_s15 = scalar_lea.vmem %s371_s8, 32 }
  0xe4   :  { %p6629_p1 = scmp.ne.s32.totalorder %s371_s8, %s6628_s12  ;;  %p6633_p2 = scmp.lt.s32.totalorder %s371_s8, %s371_s8 }
  0xe5   :  { %p6634_p3 = scmp.lt.s32.totalorder %s6632_s15, %s6628_s12 }
  0xe7   :  { %p6635_p4 = por %p6634_p3, %p6633_p2 }
  0xe9   :  { %p6636_p5 = pnand %p6635_p4, %p6629_p1 }
  0xeb   :  { %6639 = shalt.err (!%p6636_p5)
}
  0xec   :  { %373 = dma.hbm_to_vmem [thread:$0]  %s7237_s5, 16, %s371_s8, [#allocation24]  }
  0xed   :  { %s6930_s25 = smov [#allocation5]   ;;  %s6931_s18 = smov [#allocation10]  }
  0xee   :  { %s172_s29 = sshll.u32 %s6930_s25, 4  ;;  %s200_s23 = sshll.u32 %s6931_s18, 4  ;;  %s173_s29 = int_to_ptr.vmem [resolvable:$true] %s172_s29  ;;  %s201_s23 = int_to_ptr.vmem [resolvable:$true] %s200_s23 }
  0xef   :  { %s6640_s30 = scalar_lea.hbm %s6974_s21, 16 }
  0xf0   :  { %p6641_p6 = scmp.ne.s32.totalorder %s6974_s21, %s6640_s30  ;;  %p6644_p7 = scmp.lt.u32.totalorder %s6640_s30, %s6974_s21 }
  0xf2   :  { %p6646_p8 = pnand %p6644_p7, %p6641_p6 }
  0xf4   :  { %6649 = shalt.err (!%p6646_p8)
}
  0xf5   :  { %s6650_s26 = scalar_lea.vmem %s173_s29, 16  ;;  %s6654_s24 = scalar_lea.vmem %s173_s29, 32 }
  0xf6   :  { %p6651_p9 = scmp.ne.s32.totalorder %s173_s29, %s6650_s26  ;;  %p6655_p10 = scmp.lt.s32.totalorder %s173_s29, %s173_s29 }
  0xf7   :  { %p6656_p11 = scmp.lt.s32.totalorder %s6654_s24, %s6650_s26 }
  0xf9   :  { %p6657_p12 = por %p6656_p11, %p6655_p10 }
  0xfb   :  { %p6658_p13 = pnand %p6657_p12, %p6651_p9 }
  0xfd   :  { %6661 = shalt.err (!%p6658_p13)
}
  0xfe   :  { %175 = dma.hbm_to_vmem [thread:$0]  %s6974_s21, 16, %s173_s29, [#allocation6]  }
  0xff   :  { %s6662_s5 = scalar_lea.hbm %s7004_s19, 16 }
 0x100   :  { %p6663_p0 = scmp.ne.s32.totalorder %s7004_s19, %s6662_s5  ;;  %p6666_p1 = scmp.lt.u32.totalorder %s6662_s5, %s7004_s19 }
 0x102   :  { %p6668_p2 = pnand %p6666_p1, %p6663_p0 }
 0x104   :  { %6671 = shalt.err (!%p6668_p2)
}
 0x105   :  { %s6672_s27 = scalar_lea.vmem %s201_s23, 16  ;;  %s6676_s1 = scalar_lea.vmem %s201_s23, 32 }
 0x106   :  { %p6673_p3 = scmp.ne.s32.totalorder %s201_s23, %s6672_s27  ;;  %p6677_p4 = scmp.lt.s32.totalorder %s201_s23, %s201_s23 }
 0x107   :  { %p6678_p5 = scmp.lt.s32.totalorder %s6676_s1, %s6672_s27 }
 0x109   :  { %p6679_p6 = por %p6678_p5, %p6677_p4 }
 0x10b   :  { %p6680_p7 = pnand %p6679_p6, %p6673_p3 }
 0x10d   :  { %6683 = shalt.err (!%p6680_p7)
}
 0x10e   :  { %203 = dma.hbm_to_vmem [thread:$0]  %s7004_s19, 16, %s201_s23, [#allocation9]  }
 0x10f   :  { %s6932_s2 = smov [#allocation13]   ;;  %s6933_s0 = smov [#allocation16]  }
 0x110   :  { %s232_s21 = sshll.u32 %s6932_s2, 4  ;;  %s252_s16 = sshll.u32 %s6933_s0, 4  ;;  %s233_s21 = int_to_ptr.vmem [resolvable:$true] %s232_s21  ;;  %s253_s16 = int_to_ptr.vmem [resolvable:$true] %s252_s16 }
 0x111   :  { %s6684_s13 = scalar_lea.hbm %s7037_s4, 16 }
 0x112   :  { %p6685_p8 = scmp.ne.s32.totalorder %s7037_s4, %s6684_s13  ;;  %p6688_p9 = scmp.lt.u32.totalorder %s6684_s13, %s7037_s4 }
 0x114   :  { %p6690_p10 = pnand %p6688_p9, %p6685_p8 }
 0x116   :  { %6693 = shalt.err (!%p6690_p10)
}
 0x117   :  { %s6694_s8 = scalar_lea.vmem %s233_s21, 16  ;;  %s6698_s6 = scalar_lea.vmem %s233_s21, 32 }
 0x118   :  { %p6695_p11 = scmp.ne.s32.totalorder %s233_s21, %s6694_s8  ;;  %p6699_p12 = scmp.lt.s32.totalorder %s233_s21, %s233_s21 }
 0x119   :  { %p6700_p13 = scmp.lt.s32.totalorder %s6698_s6, %s6694_s8 }
 0x11b   :  { %p6701_p0 = por %p6700_p13, %p6699_p12 }
 0x11d   :  { %p6702_p1 = pnand %p6701_p0, %p6695_p11 }
 0x11f   :  { %6705 = shalt.err (!%p6702_p1)
}
 0x120   :  { %235 = dma.hbm_to_vmem [thread:$0]  %s7037_s4, 16, %s233_s21, [#allocation12]  }
 0x121   :  { %s6706_s19 = scalar_lea.hbm %s7047_s22, 16 }
 0x122   :  { %p6707_p2 = scmp.ne.s32.totalorder %s7047_s22, %s6706_s19  ;;  %p6710_p3 = scmp.lt.u32.totalorder %s6706_s19, %s7047_s22 }
 0x124   :  { %p6712_p4 = pnand %p6710_p3, %p6707_p2 }
 0x126   :  { %6715 = shalt.err (!%p6712_p4)
}
 0x127   :  { %s6716_s7 = scalar_lea.vmem %s253_s16, 16  ;;  %s6720_s11 = scalar_lea.vmem %s253_s16, 32 }
 0x128   :  { %p6717_p5 = scmp.ne.s32.totalorder %s253_s16, %s6716_s7  ;;  %p6721_p6 = scmp.lt.s32.totalorder %s253_s16, %s253_s16 }
 0x129   :  { %p6722_p7 = scmp.lt.s32.totalorder %s6720_s11, %s6716_s7 }
 0x12b   :  { %p6723_p8 = por %p6722_p7, %p6721_p6 }
 0x12d   :  { %p6724_p9 = pnand %p6723_p8, %p6717_p5 }
 0x12f   :  { %6727 = shalt.err (!%p6724_p9)
}
 0x130   :  { %255 = dma.hbm_to_vmem [thread:$0]  %s7047_s22, 16, %s253_s16, [#allocation15]  }
 0x131   :  { %s6934_s28 = smov [#allocation19]   ;;  %s6935_s12 = smov [#allocation22]  }
 0x132   :  { %s272_s4 = sshll.u32 %s6934_s28, 4  ;;  %s304_s15 = sshll.u32 %s6935_s12, 4  ;;  %s273_s4 = int_to_ptr.vmem [resolvable:$true] %s272_s4  ;;  %s305_s15 = int_to_ptr.vmem [resolvable:$true] %s304_s15 }
 0x133   :  { %s6728_s25 = scalar_lea.hbm %s7057_s10, 16 }
 0x134   :  { %p6729_p10 = scmp.ne.s32.totalorder %s7057_s10, %s6728_s25  ;;  %p6732_p11 = scmp.lt.u32.totalorder %s6728_s25, %s7057_s10 }
 0x136   :  { %p6734_p12 = pnand %p6732_p11, %p6729_p10 }
 0x138   :  { %6737 = shalt.err (!%p6734_p12)
}
 0x139   :  { %s6738_s29 = scalar_lea.vmem %s273_s4, 16  ;;  %s6742_s18 = scalar_lea.vmem %s273_s4, 32 }
 0x13a   :  { %p6739_p13 = scmp.ne.s32.totalorder %s273_s4, %s6738_s29  ;;  %p6743_p0 = scmp.lt.s32.totalorder %s273_s4, %s273_s4 }
 0x13b   :  { %p6744_p1 = scmp.lt.s32.totalorder %s6742_s18, %s6738_s29 }
 0x13d   :  { %p6745_p2 = por %p6744_p1, %p6743_p0 }
 0x13f   :  { %p6746_p3 = pnand %p6745_p2, %p6739_p13 }
 0x141   :  { %6749 = shalt.err (!%p6746_p3)
}
 0x142   :  { %275 = dma.hbm_to_vmem [thread:$0]  %s7057_s10, 16, %s273_s4, [#allocation18]  }
 0x143   :  { %s6750_s22 = scalar_lea.hbm %s7097_s3, 16 }
 0x144   :  { %p6751_p4 = scmp.ne.s32.totalorder %s7097_s3, %s6750_s22  ;;  %p6754_p5 = scmp.lt.u32.totalorder %s6750_s22, %s7097_s3 }
 0x146   :  { %p6756_p6 = pnand %p6754_p5, %p6751_p4 }
 0x148   :  { %6759 = shalt.err (!%p6756_p6)
}
 0x149   :  { %s6760_s23 = scalar_lea.vmem %s305_s15, 16  ;;  %s6764_s30 = scalar_lea.vmem %s305_s15, 32 }
 0x14a   :  { %p6761_p7 = scmp.ne.s32.totalorder %s305_s15, %s6760_s23  ;;  %p6765_p8 = scmp.lt.s32.totalorder %s305_s15, %s305_s15 }
 0x14b   :  { %p6766_p9 = scmp.lt.s32.totalorder %s6764_s30, %s6760_s23 }
 0x14d   :  { %p6767_p10 = por %p6766_p9, %p6765_p8 }
 0x14f   :  { %p6768_p11 = pnand %p6767_p10, %p6761_p7 }
 0x151   :  { %6771 = shalt.err (!%p6768_p11)
}
 0x152   :  { %307 = dma.hbm_to_vmem [thread:$0]  %s7097_s3, 16, %s305_s15, [#allocation21]  }
 0x153   :  { %s6936_s26 = smov [#allocation25]   ;;  %s6937_s24 = smov [#allocation26]  }
 0x154   :  { %s382_s10 = sshll.u32 %s6936_s26, 4  ;;  %s392_s5 = sshll.u32 %s6937_s24, 4  ;;  %s383_s10 = int_to_ptr.vmem [resolvable:$true] %s382_s10  ;;  %s393_s5 = int_to_ptr.vmem [resolvable:$true] %s392_s5 }
 0x155   :  { %s6772_s27 = scalar_lea.hbm %s7247_s20, 16 }
 0x156   :  { %p6773_p12 = scmp.ne.s32.totalorder %s7247_s20, %s6772_s27  ;;  %p6776_p13 = scmp.lt.u32.totalorder %s6772_s27, %s7247_s20 }
 0x158   :  { %p6778_p0 = pnand %p6776_p13, %p6773_p12 }
 0x15a   :  { %6781 = shalt.err (!%p6778_p0)
}
 0x15b   :  { %s6782_s1 = scalar_lea.vmem %s383_s10, 16  ;;  %s6786_s2 = scalar_lea.vmem %s383_s10, 32 }
 0x15c   :  { %p6783_p1 = scmp.ne.s32.totalorder %s383_s10, %s6782_s1  ;;  %p6787_p2 = scmp.lt.s32.totalorder %s383_s10, %s383_s10 }
 0x15d   :  { %p6788_p3 = scmp.lt.s32.totalorder %s6786_s2, %s6782_s1 }
 0x15f   :  { %p6789_p4 = por %p6788_p3, %p6787_p2 }
 0x161   :  { %p6790_p5 = pnand %p6789_p4, %p6783_p1 }
 0x163   :  { %6793 = shalt.err (!%p6790_p5)
}
 0x164   :  { %385 = dma.hbm_to_vmem [thread:$0]  %s7247_s20, 16, %s383_s10, [#allocation24]  }
 0x165   :  { %s6794_s3 = scalar_lea.hbm %s7252_s14, 16 }
 0x166   :  { %p6795_p6 = scmp.ne.s32.totalorder %s7252_s14, %s6794_s3  ;;  %p6798_p7 = scmp.lt.u32.totalorder %s6794_s3, %s7252_s14 }
 0x168   :  { %p6800_p8 = pnand %p6798_p7, %p6795_p6 }
 0x16a   :  { %6803 = shalt.err (!%p6800_p8)
}
 0x16b   :  { %s6804_s21 = scalar_lea.vmem %s393_s5, 16  ;;  %s6808_s0 = scalar_lea.vmem %s393_s5, 32 }
 0x16c   :  { %p6805_p9 = scmp.ne.s32.totalorder %s393_s5, %s6804_s21  ;;  %p6809_p10 = scmp.lt.s32.totalorder %s393_s5, %s393_s5 }
 0x16d   :  { %p6810_p11 = scmp.lt.s32.totalorder %s6808_s0, %s6804_s21 }
 0x16f   :  { %p6811_p12 = por %p6810_p11, %p6809_p10 }
 0x171   :  { %p6812_p13 = pnand %p6811_p12, %p6805_p9 }
 0x173   :  { %6815 = shalt.err (!%p6812_p13)
}
 0x174   :  { %395 = dma.hbm_to_vmem [thread:$0]  %s7252_s14, 16, %s393_s5, [#allocation27]  }
 0x175   :  { %6838 = dma.done.wait [#allocation6], 16  }
 0x176   :  { %6839 = vsyncadd [#allocation6], 4294967280 }
 0x177   :  { %6840 = dma.done.wait [#allocation9], 32  }
 0x178   :  { %6841 = vsyncadd [#allocation9], 4294967264 }
 0x179   :  { %6842 = dma.done.wait [#allocation12], 32  }
 0x17a   :  { %6843 = vsyncadd [#allocation12], 4294967264 }
 0x17b   :  { %6844 = dma.done.wait [#allocation15], 32  }
 0x17c   :  { %6845 = vsyncadd [#allocation15], 4294967264 }
 0x17d   :  { %6846 = dma.done.wait [#allocation18], 32  }
 0x17e   :  { %6847 = vsyncadd [#allocation18], 4294967264 }
 0x17f   :  { %6848 = dma.done.wait [#allocation21], 32  }
 0x180   :  { %6849 = vsyncadd [#allocation21], 4294967264 }
 0x181   :  { %6850 = dma.done.wait [#allocation24], 32  }
 0x182   :  { %6851 = vsyncadd [#allocation24], 4294967264 }
 0x183   :  { %6852 = dma.done.wait [#allocation27], 16  }
 0x184   :  { %6853 = vsyncadd [#allocation27], 4294967280  ;;  %s8197_s20 = sld [smem:[#allocation86_spill]]  ;;  %s8198_s14 = sld [smem:[#allocation40_spill]]  ;;  %vm777_vm0 = vcmask 523264   ;;  %v6938_v20 = vmov 0.0|0.0  }
 0x185   :  { %s8199_s16 = sld [smem:[#allocation44_spill]]  ;;  %s8200_s13 = sld [smem:[#allocation41_spill]]  ;;  %vm6939_vm1 = vmmov 0   ;;  %v6940_v21 = vmov 0.0   ;;  %vm1014_vm2 = vcmask 1040384   ;;  %vm1004_vm3 = vcmask 138240  }
 0x186   :  { %v4619_v26 = vld [vmem:[#allocation25] ss:$0 sm:$0xff]  ;;  %v4627_v33 = vld [vmem:[#allocation5] ss:$0 sm:$0xff]  ;;  %s8201_s8 = sld [smem:[#allocation87_spill]]  ;;  %s8202_s6 = sld [smem:[#allocation38_spill]] }
 0x187   :  { %s8203_s19 = sld [smem:[#allocation85_spill]]  ;;  %s8204_s7 = sld [smem:[#allocation84_spill]]  ;;  %vm1259_vm7 = vcmask 130048   ;;  %vm2000_vm13 = vcmask 195584  }
 0x188   :  { %s8205_s11 = sld [smem:[#allocation45_spill]]  ;;  %s8206_s28 = sld [smem:[#allocation43_spill]] }
 0x189   :  { %s8207_s4 = sld [smem:[#allocation42_spill]]  ;;  %s8209_s15 = sld [smem:[#allocation60_spill]] }
 0x18a   :  { %v698_v3 = vld [vmem:[%s8197_s20] sm:$0xff]  ;;  %v699_v4 = vld [vmem:[%s8197_s20 + $0x8] sm:$0xff]  ;;  %v700_v5 = vld [vmem:[%s8197_s20 + $0x10] sm:$0xff]  ;;  %s8208_s12 = sld [smem:[#allocation58_spill]]  ;;  %s8210_s25 = sld [smem:[#allocation59_spill]] }
 0x18b   :  { %v5863_v6 = vpack.c.bf16 %v699_v4, %v698_v3  ;;  %v701_v7 = vld [vmem:[%s8197_s20 + $0x18] sm:$0xff]  ;;  %v702_v9 = vld [vmem:[%s8197_s20 + $0x20] sm:$0xff]  ;;  %v703_v10 = vld [vmem:[%s8197_s20 + $0x28] sm:$0xff]  ;;  %s8211_s29 = sld [smem:[#allocation49_spill]]  ;;  %s8212_s18 = sld [smem:[#allocation61_spill]] }
 0x18c   :  { %v5867_v8 = vpack.c.bf16 %v701_v7, %v700_v5  ;;  %v717_v11 = vld [vmem:[%s8198_s14] sm:$0xff]  ;;  %v5871_v12 = vpack.c.bf16 %v703_v10, %v702_v9  ;;  %v704_v13 = vld [vmem:[%s8197_s20 + $0x30] sm:$0xff]  ;;  %v705_v14 = vld [vmem:[%s8197_s20 + $0x38] sm:$0xff]  ;;  %s8213_s22 = sld [smem:[#allocation57_spill]]  ;;  %s8214_s23 = sld [smem:[#allocation56_spill]] }
 0x18d   :  { %5864 = vmatprep.subr.bf16.mxu0 %v5863_v6  ;;  %5133 = vmatprep.mubr.msk.f32.mxu0 %vm777_vm0, %v717_v11  ;;  %v5875_v15 = vpack.c.bf16 %v705_v14, %v704_v13  ;;  %v450_v16 = vld [vmem:[%s8199_s16] sm:$0xff]  ;;  %v451_v17 = vld [vmem:[%s8199_s16 + $0x8] sm:$0xff]  ;;  %v452_v22 = vld [vmem:[%s8199_s16 + $0x10] sm:$0x1]  ;;  %s8215_s30 = sld [smem:[#allocation39_spill]]  ;;  %s8216_s26 = sld [smem:[#allocation54_spill]] }
 0x18e   :  { %5866 = vmatpush3.bf16.msra.mxu0 %v5863_v6  ;;  %v718_v18 = vld [vmem:[%s8198_s14 + $0x8] sm:$0xff]  ;;  %v5896_v19 = vpack.c.bf16 %v451_v17, %v450_v16  ;;  %v995_v23 = vld [vmem:[%s8200_s13] sm:$0xff]  ;;  %v997_v25 = vld [vmem:[%s8200_s13 + $0x10] sm:$0xff]  ;;  %v6941_v6 = vmov 1   ;;  %s8217_s10 = sld [smem:[#allocation55_spill]]  ;;  %s8218_s24 = sld [smem:[#allocation51_spill]] }
 0x18f   :  { %5868 = vmatprep.subr.bf16.mxu0 %v5867_v8  ;;  %v996_v24 = vld [vmem:[%s8200_s13 + $0x8] sm:$0xff]  ;;  %v706_v56 = vld [vmem:[%s8201_s8] sm:$0xff]  ;;  %v708_v58 = vld [vmem:[%s8201_s8 + $0x10] sm:$0xff]  ;;  %6407 = vset.pattern.permute.xlu1 %v6941_v6  ;;  %s8219_s5 = sld [smem:[#allocation52_spill]]  ;;  %s8220_s27 = sld [smem:[#allocation53_spill]] }
 0x190   :  { %v707_v57 = vld [vmem:[%s8201_s8 + $0x8] sm:$0xff]  ;;  %v709_v60 = vld [vmem:[%s8201_s8 + $0x18] sm:$0xff]  ;;  %v710_v62 = vld [vmem:[%s8201_s8 + $0x20] sm:$0xff]  ;;  %6406 = vset.pattern.permute.xlu0 %v6941_v6  ;;  %s8221_s1 = sld [smem:[#allocation50_spill]]  ;;  %s8222_s2 = sld [smem:[#allocation79_spill]] }
 0x191   :  { %v5879_v59 = vpack.c.bf16 %v707_v57, %v706_v56  ;;  %v5883_v61 = vpack.c.bf16 %v709_v60, %v708_v58  ;;  %v711_v63 = vld [vmem:[%s8201_s8 + $0x28] sm:$0xff]  ;;  %v712_v1 = vld [vmem:[%s8201_s8 + $0x30] sm:$0xff]  ;;  %v713_v2 = vld [vmem:[%s8201_s8 + $0x38] sm:$0xff]  ;;  %s8223_s3 = sld [smem:[#allocation81_spill]]  ;;  %s8224_s21 = sld [smem:[#allocation80_spill]] }
 0x192   :  { %5870 = vmatpush3.bf16.msra.mxu0 %v5867_v8  ;;  %v5887_v0 = vpack.c.bf16 %v711_v63, %v710_v62  ;;  %v5891_v3 = vpack.c.bf16 %v713_v2, %v712_v1  ;;  %v715_v4 = vld [vmem:[%s8202_s6 + $0x8] sm:$0xff]  ;;  %v714_v5 = vld [vmem:[%s8202_s6] sm:$0xff]  ;;  %v716_v7 = vld [vmem:[%s8202_s6 + $0x10] sm:$0xff]  ;;  %v6942_v8 = vmov 0   ;;  %s8225_s0 = sld [smem:[#allocation62_spill]]  ;;  %s8226_s20 = sld [smem:[#allocation75_spill]] }
 0x193   :  { %5872 = vmatprep.subr.bf16.mxu0 %v5871_v12  ;;  %5880 = vmatprep.subr.bf16.mxu1 %v5879_v59  ;;  %v453_v62 = vld [vmem:[%s8205_s11] sm:$0xff]  ;;  %v454_v63 = vld [vmem:[%s8205_s11 + $0x8] sm:$0xff]  ;;  %s8227_s14 = sld [smem:[#allocation82_spill]]  ;;  %s8228_s16 = sld [smem:[#allocation78_spill]] }
 0x194   :  { %5882 = vmatpush3.bf16.msra.mxu1 %v5879_v59  ;;  %v5899_v2 = vpack.c.bf16 %v454_v63, %v453_v62  ;;  %s8229_s13 = sld [smem:[#allocation77_spill]]  ;;  %s8230_s8 = sld [smem:[#allocation73_spill]] }
 0x195   :  { %5884 = vmatprep.subr.bf16.mxu1 %v5883_v61  ;;  %s8231_s6 = sld [smem:[#allocation76_spill]] }
 0x196   :  { %5874 = vmatpush3.bf16.msra.mxu0 %v5871_v12 }
 0x197   :  { %5876 = vmatprep.subr.bf16.mxu0 %v5875_v15 }
 0x198   :  { %5886 = vmatpush3.bf16.msra.mxu1 %v5883_v61 }
 0x199   :  { %5888 = vmatprep.subr.bf16.mxu1 %v5887_v0 }
 0x19a   :  { %5878 = vmatpush3.bf16.msra.mxu0 %v5875_v15 }
 0x19b   :  { %5895 = vmatprep.subr.bf16.mxu0 %v6938_v20 }
 0x19c   :  { %5890 = vmatpush3.bf16.msra.mxu1 %v5887_v0 }
 0x19d   :  { %5134 = vmatmul.mubr.msk.f32.vlgmr.msra.gmra.mrb[0].mxu0 %vm777_vm0, %v718_v18  ;;  %5892 = vmatprep.subr.bf16.mxu1 %v5891_v3 }
 0x19e   :  { %5897 = vmatpush3.bf16.msra.mxu0 %v5896_v19  ;;  %5161 = vmatprep.mubr.msk.f32.mxu0 %vm6939_vm1, %v6940_v21 }
 0x19f   :  { %5159 = vmatprep.subr.mxu0 %v6940_v21 }
 0x1a0   :  { %5894 = vmatpush3.bf16.msra.mxu1 %v5891_v3 }
 0x1a1   :  { %5898 = vmatprep.subr.bf16.mxu1 %v6938_v20 }
 0x1a2   :  { %5160 = vmatpush3.msk.msra.mxu0 %vm1014_vm2, %v452_v22 }
 0x1a3   :  { %5162 = vmatmul.mubr.msk.f32.vlgmr.msra.gmra.mrb[2].mxu0 %vm1004_vm3, %v995_v23  ;;  %5910 = vmatprep.subr.bf16.mxu0 %v6938_v20 }
 0x1a4   :  { %5164 = vmatprep.mubr.msk.f32.mxu0 %vm6939_vm1, %v6940_v21 }
 0x1a7   :  { %5165 = vmatmul.mubr.msk.f32.gmra.mrb[4].mxu0 %vm1004_vm3, %v996_v24 }
 0x1a8   :  { %5167 = vmatprep.mubr.msk.f32.mxu0 %vm6939_vm1, %v6940_v21 }
 0x1ab   :  { %5168 = vmatmul.mubr.msk.f32.gmra.mrb[6].mxu0 %vm1004_vm3, %v997_v25 }
 0x1ac   :  { %5199 = vmatprep.mubr.msk.f32.mxu0 %vm6939_vm1, %v6940_v21 }
 0x270   :  { %v5135_v27 = vpop.f32.mrb[0].mxu0 }
 0x271   :  { %v850_v28 = vpop.f32.mrb[1].mxu0  ;;  %v7375_v29 = vadd.f32 %v5135_v27, %v4619_v26 }
 0x272   :  { %v7377_v30 = vadd.f32 %v4619_v26, %v850_v28 }
 0x273   :  { %v869_v35 = vmul.f32 %v7375_v29, %v7375_v29  ;;  %v862_v39 = vsel %vm777_vm0, %v7375_v29, 0.0 }
 0x274   :  { %v859_v31 = vsel %vm777_vm0, %v7377_v30, 0.0  ;;  %v868_v32 = vmul.f32 %v7377_v30, %v7377_v30 }
 0x275   :  { %860 = vadd.xlane.f32.xlu0 %v859_v31  ;;  %v873_v41 = vsel %vm777_vm0, %v869_v35, 0.0 }
 0x276   :  { %v870_v34 = vsel %vm777_vm0, %v868_v32, 0.0  ;;  %v1084_v36 = vpop.f32.mrb[2].mxu0 }
 0x277   :  { %871 = vadd.xlane.f32.xlu1 %v870_v34  ;;  %v7386_v37 = vadd.f32 %v4627_v33, %v1084_v36  ;;  %v5163_v38 = vpop.f32.mrb[3].mxu0 }
 0x279   :  { %863 = vadd.xlane.f32.xlu0 %v862_v39  ;;  %v1110_v40 = vmul.f32 %v7386_v37, %v7386_v37  ;;  %v1098_v43 = vsel %vm777_vm0, %v7386_v37, 0.0 }
 0x27a   :  { %v1089_v42 = vpop.f32.mrb[4].mxu0 }
 0x27b   :  { %874 = vadd.xlane.f32.xlu1 %v873_v41  ;;  %v7395_v44 = vadd.f32 %v4627_v33, %v1089_v42  ;;  %v5166_v45 = vpop.f32.mrb[5].mxu0  ;;  %v1113_v46 = vsel %vm777_vm0, %v1110_v40, 0.0 }
 0x27d   :  { %1099 = vadd.xlane.f32.xlu0 %v1098_v43  ;;  %v1111_v47 = vmul.f32 %v7395_v44, %v7395_v44  ;;  %v1101_v49 = vsel %vm777_vm0, %v7395_v44, 0.0 }
 0x27e   :  { %v1094_v48 = vpop.f32.mrb[6].mxu0 }
 0x27f   :  { %1114 = vadd.xlane.f32.xlu1 %v1113_v46  ;;  %v7402_v50 = vadd.f32 %v4627_v33, %v1094_v48  ;;  %v5169_v51 = vpop.f32.mrb[7].mxu0  ;;  %v1116_v52 = vsel %vm777_vm0, %v1111_v47, 0.0  ;;  %v4622_v47 = vld [vmem:[%s8203_s19] ss:$0 sm:$0xff]  ;;  %s8232_s19 = sld [smem:[#allocation74_spill]] }
 0x281   :  { %1102 = vadd.xlane.f32.xlu0 %v1101_v49  ;;  %v1112_v53 = vmul.f32 %v7402_v50, %v7402_v50  ;;  %v1104_v54 = vsel %vm777_vm0, %v7402_v50, 0.0 }
 0x283   :  { %1117 = vadd.xlane.f32.xlu1 %v1116_v52  ;;  %v1119_v55 = vsel %vm777_vm0, %v1112_v53, 0.0  ;;  %v4623_v53 = vld [vmem:[%s8204_s7] ss:$0 sm:$0xff]  ;;  %s8233_s7 = sld [smem:[#allocation70_spill]] }
 0x285   :  { %1105 = vadd.xlane.f32.xlu0 %v1104_v54 }
 0x287   :  { %1120 = vadd.xlane.f32.xlu1 %v1119_v55 }
 0x298   :  { %743 = vperm.xlu1 %6407, %v715_v4  }
 0x29b   :  { %740 = vperm.xlu0 %6406, %v714_v5  }
 0x29c   :  { %746 = vperm.xlu1 %6407, %v716_v7  }
 0x29f   :  { %6409 = vset.pattern.permute.xlu0 %v6942_v8 }
 0x2a0   :  { %6408 = vset.pattern.permute.xlu1 %v6942_v8 }
 0x2a1   :  { %722 = vperm.xlu1 %6408, %v714_v5   ;;  %v456_v5 = vld [vmem:[%s8205_s11 + $0x18] sm:$0xff] }
 0x2a5   :  { %725 = vperm.xlu1 %6408, %v715_v4   ;;  %v455_v4 = vld [vmem:[%s8205_s11 + $0x10] sm:$0xff] }
 0x2a9   :  { %728 = vperm.xlu1 %6408, %v716_v7  }
 0x302   :  { %v861_v9 = vpop.xlane.xlu0 %860 }
 0x303   :  { %v866_v10 = vmul.f32 0.015625, %v861_v9  ;;  %v5902_v9 = vpack.c.bf16 %v456_v5, %v455_v4 }
 0x304   :  { %v872_v11 = vpop.xlane.xlu1 %871 }
 0x305   :  { %v878_v12 = vmul.f32 %v866_v10, %v866_v10  ;;  %v876_v13 = vmul.f32 0.015625, %v872_v11  ;;  %v882_v43 = vsub.f32 %v7377_v30, %v866_v10  ;;  %v457_v10 = vld [vmem:[%s8205_s11 + $0x20] sm:$0xff]  ;;  %v458_v11 = vld [vmem:[%s8205_s11 + $0x28] sm:$0xff] }
 0x306   :  { %v864_v14 = vpop.xlane.xlu0 %863 }
 0x307   :  { %v880_v15 = vsub.f32 %v876_v13, %v878_v12  ;;  %v867_v16 = vmul.f32 0.015625, %v864_v14 }
 0x308   :  { %v875_v17 = vpop.xlane.xlu1 %874 }
 0x309   :  { %v884_v18 = vadd.f32 1e-05, %v880_v15  ;;  %v879_v19 = vmul.f32 %v867_v16, %v867_v16  ;;  %v877_v22 = vmul.f32 0.015625, %v875_v17  ;;  %v883_v55 = vsub.f32 %v7375_v29, %v867_v16  ;;  %v4633_v16 = vld [vmem:[%s8207_s4] ss:$0 sm:$0xff]  ;;  %v459_v17 = vld [vmem:[%s8205_s11 + $0x30] sm:$0xff] }
 0x30a   :  { %v1100_v23 = vpop.xlane.xlu0 %1099  ;;  %s8236_s4 = sld [smem:[#allocation69_spill]] }
 0x30b   :  { %6410 = vrsqrt.f32 %v884_v18  ;;  %v881_v24 = vsub.f32 %v877_v22, %v879_v19  ;;  %v1107_v25 = vmul.f32 0.015625, %v1100_v23  ;;  %v460_v18 = vld [vmem:[%s8205_s11 + $0x38] sm:$0xff]  ;;  %s8234_s11 = sld [smem:[#allocation71_spill]] }
 0x30c   :  { %v1115_v26 = vpop.xlane.xlu1 %1114 }
 0x30d   :  { %v885_v27 = vadd.f32 1e-05, %v881_v24  ;;  %v1125_v28 = vmul.f32 %v1107_v25, %v1107_v25  ;;  %v1122_v31 = vmul.f32 0.015625, %v1115_v26  ;;  %v1131_v29 = vsub.f32 %v7386_v37, %v1107_v25  ;;  %v4632_v37 = vld [vmem:[%s8206_s28] ss:$0 sm:$0xff]  ;;  %s8235_s28 = sld [smem:[#allocation72_spill]] }
 0x30e   :  { %v1103_v32 = vpop.xlane.xlu0 %1102  ;;  %v5908_v24 = vpack.c.bf16 %v460_v18, %v459_v17  ;;  %v562_v17 = vld [vmem:[%s8210_s25] sm:$0xff]  ;;  %v563_v18 = vld [vmem:[%s8210_s25 + $0x8] sm:$0xff] }
 0x30f   :  { %6412 = vrsqrt.f32 %v885_v27  ;;  %v1128_v33 = vsub.f32 %v1122_v31, %v1125_v28  ;;  %v1108_v34 = vmul.f32 0.015625, %v1103_v32 }
 0x310   :  { %v1118_v35 = vpop.xlane.xlu1 %1117 }
 0x311   :  { %v1134_v36 = vadd.f32 1e-05, %v1128_v33  ;;  %v1126_v38 = vmul.f32 %v1108_v34, %v1108_v34  ;;  %v1123_v39 = vmul.f32 0.015625, %v1118_v35  ;;  %v1132_v7 = vsub.f32 %v7395_v44, %v1108_v34 }
 0x312   :  { %v1106_v40 = vpop.xlane.xlu0 %1105  ;;  %v5905_v44 = vpack.c.bf16 %v458_v11, %v457_v10  ;;  %v719_v34 = vlaneseq  ;;  %v577_v10 = vld [vmem:[%s8209_s15 + $0x38] sm:$0xff] }
 0x313   :  { %v1129_v41 = vsub.f32 %v1123_v39, %v1126_v38  ;;  %v1109_v42 = vmul.f32 0.015625, %v1106_v40  ;;  %6414 = vrsqrt.f32 %v1134_v36  ;;  %v4624_v36 = vld [vmem:[#allocation26] ss:$0 sm:$0xff] }
 0x314   :  { %v1121_v45 = vpop.xlane.xlu1 %1120  ;;  %v720_v38 = vand.u32 127, %v719_v34 }
 0x315   :  { %v6411_v46 = vpop.eup %6410  ;;  %v1135_v48 = vadd.f32 1e-05, %v1129_v41  ;;  %v1127_v49 = vmul.f32 %v1109_v42, %v1109_v42  ;;  %v1124_v51 = vmul.f32 0.015625, %v1121_v45  ;;  %v1133_v12 = vsub.f32 %v7402_v50, %v1109_v42 }
 0x316   :  { %v888_v52 = vmul.f32 %v6411_v46, %v882_v43  ;;  %v554_v46 = vld [vmem:[%s8208_s12] sm:$0xff] }
 0x317   :  { %v1130_v54 = vsub.f32 %v1124_v51, %v1127_v49  ;;  %6416 = vrsqrt.f32 %v1135_v48  ;;  %v555_v48 = vld [vmem:[%s8208_s12 + $0x8] sm:$0xff]  ;;  %v570_v49 = vld [vmem:[%s8209_s15] sm:$0xff] }
 0x318   :  { %v896_v56 = vmul.f32 %v4622_v47, %v888_v52  ;;  %v744_v32 = vpop.permute.xlu1 %743  ;;  %v571_v51 = vld [vmem:[%s8209_s15 + $0x8] sm:$0xff] }
 0x319   :  { %v6413_v57 = vpop.eup %6412  ;;  %v1136_v30 = vadd.f32 1e-05, %v1130_v54  ;;  %vm749_vm6 = vcmp.eq.s32.totalorder %v720_v38, %v744_v32  ;;  %v5917_v54 = vpack.c.bf16 %v555_v48, %v554_v46 }
 0x31a   :  { %v889_v58 = vmul.f32 %v6413_v57, %v883_v55  ;;  %v904_v59 = vadd.f32 %v4623_v53, %v896_v56  ;;  %v741_v40 = vpop.permute.xlu0 %740  ;;  %v5929_v55 = vpack.c.bf16 %v571_v51, %v570_v49  ;;  %v556_v56 = vld [vmem:[%s8208_s12 + $0x10] sm:$0xff]  ;;  %v488_v49 = vld [vmem:[%s8211_s29] sm:$0xff]  ;;  %v489_v51 = vld [vmem:[%s8211_s29 + $0x8] sm:$0xff] }
 0x31b   :  { %6418 = vrsqrt.f32 %v1136_v30  ;;  %vm748_vm5 = vcmp.eq.s32.totalorder %v720_v38, %v741_v40  ;;  %v557_v30 = vld [vmem:[%s8208_s12 + $0x18] sm:$0xff] }
 0x31c   :  { %v897_v60 = vmul.f32 %v4622_v47, %v889_v58  ;;  %v906_v61 = vmax.f32 %v904_v59, 0.0  ;;  %v7456_v33 = vpop.permute.xlu1 %746  ;;  %v572_v58 = vld [vmem:[%s8209_s15 + $0x10] sm:$0xff]  ;;  %v573_v59 = vld [vmem:[%s8209_s15 + $0x18] sm:$0xff]  ;;  %v5920_v62 = vpack.c.bf16 %v557_v30, %v556_v56 }
 0x31d   :  { %v6415_v1 = vpop.eup %6414  ;;  %v5932_v63 = vpack.c.bf16 %v573_v59, %v572_v58  ;;  %vm750_vm10 = vcmp.eq.s32.totalorder %v720_v38, %v7456_v33  ;;  %v569_v40 = vld [vmem:[%s8210_s25 + $0x38] sm:$0xff] }
 0x31e   :  { %v905_v0 = vadd.f32 %v4623_v53, %v897_v60  ;;  %5152 = vmatprep.mubr.msk.f32.mxu1 %vm777_vm0, %v906_v61  ;;  %v1140_v6 = vmul.f32 %v6415_v1, %v1131_v29  ;;  %v7473_v53 = vsel %vm748_vm5, 1.0, %v6940_v21  ;;  %v7487_v60 = vsel %vm749_vm6, 1.0, %v6940_v21  ;;  %v559_v29 = vld [vmem:[%s8208_s12 + $0x28] sm:$0xff]  ;;  %v574_v1 = vld [vmem:[%s8209_s15 + $0x20] sm:$0xff]  ;;  %v491_v30 = vld [vmem:[%s8211_s29 + $0x18] sm:$0xff] }
 0x320   :  { %v907_v3 = vmax.f32 %v905_v0, 0.0  ;;  %v1149_v13 = vmul.f32 %v4632_v37, %v1140_v6  ;;  %v723_v35 = vpop.permute.xlu1 %722  ;;  %v558_v0 = vld [vmem:[%s8208_s12 + $0x20] sm:$0xff]  ;;  %v560_v6 = vld [vmem:[%s8208_s12 + $0x30] sm:$0xff] }
 0x321   :  { %v6417_v8 = vpop.eup %6416  ;;  %vm730_vm4 = vcmp.eq.s32.totalorder %v720_v38, %v723_v35  ;;  %v5923_v4 = vpack.c.bf16 %v559_v29, %v558_v0 }
 0x322   :  { %5153 = vmatmul.mubr.msk.f32.vlgmr.msra.gmra.mrb[0].mxu1 %vm777_vm0, %v907_v3  ;;  %v1141_v14 = vmul.f32 %v6417_v8, %v1132_v7  ;;  %v1158_v19 = vadd.f32 %v4633_v16, %v1149_v13  ;;  %v7470_v52 = vsel %vm730_vm4, 1.0, %v6940_v21  ;;  %v7516_v7 = vsel %vm750_vm10, 1.0, %v6940_v21 }
 0x323   :  { %5900 = vmatpush3.bf16.msra.mxu1 %v5899_v2  ;;  %5186 = vmatprep.mubr.msk.f32.mxu1 %vm6939_vm1, %v6940_v21  ;;  %v575_v2 = vld [vmem:[%s8209_s15 + $0x28] sm:$0xff] }
 0x324   :  { %5901 = vmatprep.subr.bf16.mxu1 %v6938_v20  ;;  %v1150_v22 = vmul.f32 %v4632_v37, %v1141_v14  ;;  %v1161_v25 = vmax.f32 %v1158_v19, 0.0  ;;  %v726_v45 = vpop.permute.xlu1 %725  ;;  %v5935_v5 = vpack.c.bf16 %v575_v2, %v574_v1  ;;  %v5941_v19 = vpack.c.bf16 %v563_v18, %v562_v17  ;;  %v494_v1 = vld [vmem:[%s8211_s29 + $0x30] sm:$0xff]  ;;  %v495_v2 = vld [vmem:[%s8211_s29 + $0x38] sm:$0xff] }
 0x325   :  { %v6419_v15 = vpop.eup %6418  ;;  %vm731_vm8 = vcmp.eq.s32.totalorder %v720_v38, %v726_v45 }
 0x326   :  { %v1142_v23 = vmul.f32 %v6419_v15, %v1133_v12  ;;  %v1159_v26 = vadd.f32 %v4633_v16, %v1150_v22  ;;  %v7490_v61 = vsel %vm731_vm8, 1.0, %v6940_v21  ;;  %v564_v22 = vld [vmem:[%s8210_s25 + $0x10] sm:$0xff] }
 0x327   :  { %5903 = vmatpush3.bf16.msra.mxu1 %v5902_v9  ;;  %v561_v9 = vld [vmem:[%s8208_s12 + $0x38] sm:$0xff]  ;;  %s8237_s12 = sld [smem:[#allocation67_spill]] }
 0x328   :  { %5904 = vmatprep.subr.bf16.mxu1 %v6938_v20  ;;  %v1151_v50 = vmul.f32 %v4632_v37, %v1142_v23  ;;  %v1162_v27 = vmax.f32 %v1159_v26, 0.0  ;;  %v729_v57 = vpop.permute.xlu1 %728  ;;  %v576_v37 = vld [vmem:[%s8209_s15 + $0x30] sm:$0xff]  ;;  %v5926_v12 = vpack.c.bf16 %v561_v9, %v560_v6  ;;  %v565_v23 = vld [vmem:[%s8210_s25 + $0x18] sm:$0xff]  ;;  %s8238_s15 = sld [smem:[#allocation68_spill]] }
 0x329   :  { %vm732_vm9 = vcmp.eq.s32.totalorder %v720_v38, %v729_v57  ;;  %v5938_v13 = vpack.c.bf16 %v577_v10, %v576_v37  ;;  %v490_v57 = vld [vmem:[%s8211_s29 + $0x10] sm:$0xff] }
 0x32a   :  { %v1160_v28 = vadd.f32 %v4633_v16, %v1151_v50  ;;  %v7508_v3 = vsel %vm732_vm9, 1.0, %v6940_v21  ;;  %v5968_v58 = vpack.c.bf16 %v491_v30, %v490_v57 }
 0x32b   :  { %5906 = vmatpush3.bf16.msra.mxu1 %v5905_v44 }
 0x32c   :  { %5907 = vmatprep.subr.bf16.mxu1 %v6938_v20  ;;  %v1163_v31 = vmax.f32 %v1160_v28, 0.0  ;;  %v566_v28 = vld [vmem:[%s8210_s25 + $0x20] sm:$0xff] }
 0x32f   :  { %5909 = vmatpush3.bf16.msra.mxu1 %v5908_v24 }
 0x330   :  { %5913 = vmatprep.subr.bf16.mxu1 %v6938_v20 }
 0x332   :  { %5187 = vmatmul.mubr.msk.f32.vlgmr.msra.gmra.mrb[2].mxu1 %vm777_vm0, %v1161_v25 }
 0x333   :  { %5189 = vmatprep.mubr.msk.f32.mxu1 %vm6939_vm1, %v6940_v21 }
 0x336   :  { %5190 = vmatmul.mubr.msk.f32.gmra.mrb[4].mxu1 %vm777_vm0, %v1162_v27  ;;  %v5944_v27 = vpack.c.bf16 %v565_v23, %v564_v22 }
 0x337   :  { %5192 = vmatprep.mubr.msk.f32.mxu1 %vm6939_vm1, %v6940_v21 }
 0x33a   :  { %5193 = vmatmul.mubr.msk.f32.gmra.mrb[6].mxu1 %vm777_vm0, %v1163_v31  ;;  %v567_v31 = vld [vmem:[%s8210_s25 + $0x28] sm:$0xff] }
 0x33b   :  { %5212 = vmatprep.mubr.msk.f32.mxu1 %vm6939_vm1, %v6940_v21  ;;  %v5947_v38 = vpack.c.bf16 %v567_v31, %v566_v28 }
 0x3f5   :  { %v5154_v39 = vpop.f32.mrb[0].mxu1 }
 0x3f6   :  { %v7459_v41 = vadd.f32 %v5154_v39, %v4624_v36  ;;  %v986_v42 = vpop.f32.mrb[1].mxu1  ;;  %v568_v39 = vld [vmem:[%s8210_s25 + $0x30] sm:$0xff]  ;;  %s8239_s25 = sld [smem:[#allocation64_spill]] }
 0x3f7   :  { %v7461_v43 = vadd.f32 %v4624_v36, %v986_v42  ;;  %v5950_v48 = vpack.c.bf16 %v569_v40, %v568_v39 }
 0x3f9   :  { %v5911_v47 = vpack.c.bf16 %v7459_v41, %v7461_v43 }
 0x3fb   :  { %5912 = vmatpush3.bf16.msra.mxu0 %v5911_v47  ;;  %5915 = vmatpush3.bf16.msra.mxu1 %v5911_v47 }
 0x3fc   :  { %5916 = vmatprep.subr.bf16.mxu0 %v6938_v20  ;;  %5928 = vmatprep.subr.bf16.mxu1 %v6938_v20 }
 0x3fe   :  { %5200 = vmatmul.mubr.msk.f32.vlgmr.msra.gmra.mrb[8].mxu0 %vm1259_vm7, %v7470_v52  ;;  %5213 = vmatmul.mubr.msk.f32.vlgmr.msra.gmra.mrb[8].mxu1 %vm1259_vm7, %v7473_v53 }
 0x3ff   :  { %5202 = vmatprep.mubr.msk.f32.mxu0 %vm6939_vm1, %v6940_v21  ;;  %5215 = vmatprep.mubr.msk.f32.mxu1 %vm6939_vm1, %v6940_v21 }
 0x400   :  { %5918 = vmatpush3.bf16.msra.mxu0 %v5917_v54  ;;  %5930 = vmatpush3.bf16.msra.mxu1 %v5929_v55  ;;  %v4634_v54 = vld [vmem:[#allocation8] ss:$0 sm:$0xff]  ;;  %v5965_v55 = vpack.c.bf16 %v489_v51, %v488_v49 }
 0x401   :  { %5919 = vmatprep.subr.bf16.mxu0 %v6938_v20  ;;  %5931 = vmatprep.subr.bf16.mxu1 %v6938_v20 }
 0x402   :  { %5203 = vmatmul.mubr.msk.f32.gmra.mrb[10].mxu0 %vm1259_vm7, %v7490_v61  ;;  %5216 = vmatmul.mubr.msk.f32.gmra.mrb[10].mxu1 %vm1259_vm7, %v7487_v60 }
 0x403   :  { %5205 = vmatprep.mubr.msk.f32.mxu0 %vm6939_vm1, %v6940_v21  ;;  %5218 = vmatprep.mubr.msk.f32.mxu1 %vm6939_vm1, %v6940_v21 }
 0x404   :  { %5921 = vmatpush3.bf16.msra.mxu0 %v5920_v62  ;;  %5933 = vmatpush3.bf16.msra.mxu1 %v5932_v63  ;;  %v492_v62 = vld [vmem:[%s8211_s29 + $0x20] sm:$0xff]  ;;  %v493_v63 = vld [vmem:[%s8211_s29 + $0x28] sm:$0xff]  ;;  %s8240_s29 = sld [smem:[#allocation65_spill]] }
 0x405   :  { %v7518_v8 = vpop.f32.mrb[2].mxu1  ;;  %5922 = vmatprep.subr.bf16.mxu0 %v6938_v20  ;;  %5934 = vmatprep.subr.bf16.mxu1 %v6938_v20  ;;  %v5971_v0 = vpack.c.bf16 %v493_v63, %v492_v62 }
 0x406   :  { %5206 = vmatmul.mubr.msk.f32.gmra.mrb[12].mxu0 %vm1259_vm7, %v7508_v3  ;;  %5219 = vmatmul.mubr.msk.f32.gmra.mrb[12].mxu1 %vm1259_vm7, %v7516_v7  ;;  %v5188_v11 = vpop.f32.mrb[3].mxu1  ;;  %v7573_v56 = vadd.f32 %v4634_v54, %v7518_v8 }
 0x407   :  { %5237 = vmatprep.mubr.msk.f32.mxu0 %vm6939_vm1, %v6940_v21  ;;  %5262 = vmatprep.mubr.msk.f32.mxu1 %vm6939_vm1, %v6940_v21 }
 0x408   :  { %5924 = vmatpush3.bf16.msra.mxu0 %v5923_v4  ;;  %5936 = vmatpush3.bf16.msra.mxu1 %v5935_v5  ;;  %v5974_v4 = vpack.c.bf16 %v495_v2, %v494_v1 }
 0x409   :  { %v7533_v14 = vpop.f32.mrb[4].mxu1  ;;  %5925 = vmatprep.subr.bf16.mxu0 %v6938_v20  ;;  %5937 = vmatprep.subr.bf16.mxu1 %v6938_v20 }
 0x40a   :  { %v5191_v15 = vpop.f32.mrb[5].mxu1  ;;  %v7583_v59 = vadd.f32 %v4634_v54, %v7533_v14 }
 0x40c   :  { %5927 = vmatpush3.bf16.msra.mxu0 %v5926_v12  ;;  %5939 = vmatpush3.bf16.msra.mxu1 %v5938_v13 }
 0x40d   :  { %v7537_v44 = vpop.f32.mrb[6].mxu1  ;;  %5940 = vmatprep.subr.bf16.mxu0 %v6938_v20  ;;  %5952 = vmatprep.subr.bf16.mxu1 %v6938_v20 }
 0x40e   :  { %v5194_v16 = vpop.f32.mrb[7].mxu1  ;;  %v7593_v29 = vadd.f32 %v4634_v54, %v7537_v44 }
 0x4d1   :  { %v1335_v24 = vpop.f32.mrb[8].mxu0  ;;  %v1424_v25 = vpop.f32.mrb[8].mxu1 }
 0x4d2   :  { %5238 = vmatmul.mubr.msk.f32.vlgmr.msra.gmra.mrb[14].mxu0 %vm777_vm0, %v1424_v25  ;;  %5263 = vmatmul.mubr.msk.f32.vlgmr.msra.gmra.mrb[14].mxu1 %vm777_vm0, %v1335_v24  ;;  %v5214_v26 = vpop.f32.mrb[9].mxu1  ;;  %v5201_v50 = vpop.f32.mrb[9].mxu0 }
 0x4d3   :  { %5942 = vmatpush3.bf16.msra.mxu0 %v5941_v19  ;;  %5240 = vmatprep.mubr.msk.f32.mxu0 %vm6939_vm1, %v6940_v21  ;;  %v4653_v19 = vld [vmem:[#allocation20] ss:$0 sm:$0xff] }
 0x4d4   :  { %5265 = vmatprep.mubr.msk.f32.mxu1 %vm6939_vm1, %v6940_v21  ;;  %5943 = vmatprep.subr.bf16.mxu0 %v6938_v20 }
 0x4d5   :  { %v1340_v32 = vpop.f32.mrb[10].mxu0  ;;  %v1429_v33 = vpop.f32.mrb[10].mxu1 }
 0x4d6   :  { %5241 = vmatmul.mubr.msk.f32.gmra.mrb[16].mxu0 %vm777_vm0, %v1429_v33  ;;  %5266 = vmatmul.mubr.msk.f32.gmra.mrb[16].mxu1 %vm777_vm0, %v1340_v32  ;;  %v5217_v35 = vpop.f32.mrb[11].mxu1  ;;  %v5204_v36 = vpop.f32.mrb[11].mxu0 }
 0x4d7   :  { %5945 = vmatpush3.bf16.msra.mxu0 %v5944_v27  ;;  %5243 = vmatprep.mubr.msk.f32.mxu0 %vm6939_vm1, %v6940_v21 }
 0x4d8   :  { %5268 = vmatprep.mubr.msk.f32.mxu1 %vm6939_vm1, %v6940_v21  ;;  %5946 = vmatprep.subr.bf16.mxu0 %v6938_v20 }
 0x4d9   :  { %v1345_v42 = vpop.f32.mrb[12].mxu0  ;;  %v1434_v45 = vpop.f32.mrb[12].mxu1 }
 0x4da   :  { %v5220_v46 = vpop.f32.mrb[13].mxu1  ;;  %5244 = vmatmul.mubr.msk.f32.gmra.mrb[18].mxu0 %vm777_vm0, %v1434_v45  ;;  %5269 = vmatmul.mubr.msk.f32.gmra.mrb[18].mxu1 %vm777_vm0, %v1345_v42  ;;  %v5207_v47 = vpop.f32.mrb[13].mxu0 }
 0x4db   :  { %5948 = vmatpush3.bf16.msra.mxu0 %v5947_v38  ;;  %5287 = vmatprep.mubr.msk.f32.mxu0 %vm6939_vm1, %v6940_v21 }
 0x4dc   :  { %5949 = vmatprep.subr.bf16.mxu0 %v6938_v20  ;;  %5312 = vmatprep.mubr.msk.f32.mxu1 %vm6939_vm1, %v6940_v21 }
 0x4df   :  { %5951 = vmatpush3.bf16.msra.mxu0 %v5950_v48  ;;  %v4660_v48 = vld [vmem:[#allocation3] ss:$0 sm:$0xff] }
 0x4e0   :  { %5964 = vmatprep.subr.bf16.mxu0 %v6938_v20 }
 0x4e2   :  { %5288 = vmatmul.mubr.msk.f32.vlgmr.msra.gmra.mrb[20].mxu0 %vm777_vm0, %v7573_v56 }
 0x4e3   :  { %5966 = vmatpush3.bf16.msra.mxu0 %v5965_v55  ;;  %5290 = vmatprep.mubr.msk.f32.mxu0 %vm6939_vm1, %v6940_v21 }
 0x4e4   :  { %5967 = vmatprep.subr.bf16.mxu0 %v6938_v20 }
 0x4e6   :  { %5291 = vmatmul.mubr.msk.f32.gmra.mrb[22].mxu0 %vm777_vm0, %v7583_v59 }
 0x4e7   :  { %5969 = vmatpush3.bf16.msra.mxu0 %v5968_v58  ;;  %5293 = vmatprep.mubr.msk.f32.mxu0 %vm6939_vm1, %v6940_v21 }
 0x4e8   :  { %5970 = vmatprep.subr.bf16.mxu0 %v6938_v20 }
 0x4ea   :  { %5294 = vmatmul.mubr.msk.f32.gmra.mrb[24].mxu0 %vm777_vm0, %v7593_v29 }
 0x4eb   :  { %5972 = vmatpush3.bf16.msra.mxu0 %v5971_v0  ;;  %5337 = vmatprep.mubr.msk.f32.mxu0 %vm6939_vm1, %v6940_v21 }
 0x4ec   :  { %5973 = vmatprep.subr.bf16.mxu0 %v6938_v20 }
 0x4ef   :  { %5975 = vmatpush3.bf16.msra.mxu0 %v5974_v4 }
 0x4f2   :  { %5338 = vmatmul.mubr.msk.f32.vlgmr.msra.gmra.mrb[26].mxu0 %vm777_vm0, %v7573_v56 }
 0x4f3   :  { %5340 = vmatprep.mubr.msk.f32.mxu0 %vm6939_vm1, %v6940_v21 }
 0x4f6   :  { %5341 = vmatmul.mubr.msk.f32.gmra.mrb[28].mxu0 %vm777_vm0, %v7583_v59 }
 0x4f7   :  { %5343 = vmatprep.mubr.msk.f32.mxu0 %vm6939_vm1, %v6940_v21 }
 0x4fa   :  { %5344 = vmatmul.mubr.msk.f32.gmra.mrb[30].mxu0 %vm777_vm0, %v7593_v29 }
 0x5a5   :  { %v1513_v5 = vpop.f32.mrb[14].mxu0  ;;  %v1602_v6 = vpop.f32.mrb[14].mxu1 }
 0x5a6   :  { %v5239_v8 = vpop.f32.mrb[15].mxu0  ;;  %v1603_v9 = vadd.f32 %v1602_v6, %v1513_v5  ;;  %v5264_v37 = vpop.f32.mrb[15].mxu1  ;;  %v578_v5 = vld [vmem:[%s8212_s18] sm:$0xff]  ;;  %v579_v6 = vld [vmem:[%s8212_s18 + $0x8] sm:$0xff] }
 0x5a7   :  { %v5953_v8 = vpack.c.bf16 %v579_v6, %v578_v5 }
 0x5a9   :  { %v1518_v10 = vpop.f32.mrb[16].mxu0  ;;  %v1607_v11 = vpop.f32.mrb[16].mxu1  ;;  %5954 = vmatpush3.bf16.msra.mxu1 %v5953_v8 }
 0x5aa   :  { %v5242_v12 = vpop.f32.mrb[17].mxu0  ;;  %v1608_v13 = vadd.f32 %v1607_v11, %v1518_v10  ;;  %v5267_v14 = vpop.f32.mrb[17].mxu1  ;;  %5955 = vmatprep.subr.bf16.mxu1 %v6938_v20  ;;  %v580_v10 = vld [vmem:[%s8212_s18 + $0x10] sm:$0xff]  ;;  %v581_v11 = vld [vmem:[%s8212_s18 + $0x18] sm:$0xff] }
 0x5ab   :  { %v5956_v12 = vpack.c.bf16 %v581_v11, %v580_v10 }
 0x5ad   :  { %v1523_v15 = vpop.f32.mrb[18].mxu0  ;;  %v1612_v44 = vpop.f32.mrb[18].mxu1  ;;  %5957 = vmatpush3.bf16.msra.mxu1 %v5956_v12 }
 0x5ae   :  { %v1613_v16 = vadd.f32 %v1612_v44, %v1523_v15  ;;  %v5245_v17 = vpop.f32.mrb[19].mxu0  ;;  %v5270_v18 = vpop.f32.mrb[19].mxu1  ;;  %5958 = vmatprep.subr.bf16.mxu1 %v6938_v20  ;;  %v582_v15 = vld [vmem:[%s8212_s18 + $0x20] sm:$0xff]  ;;  %v583_v44 = vld [vmem:[%s8212_s18 + $0x28] sm:$0xff] }
 0x5b5   :  { %v1691_v22 = vpop.f32.mrb[20].mxu0 }
 0x5b6   :  { %v1705_v23 = vadd.f32 %v1691_v22, %v1603_v9  ;;  %v5289_v24 = vpop.f32.mrb[21].mxu0  ;;  %v585_v22 = vld [vmem:[%s8212_s18 + $0x38] sm:$0xff] }
 0x5b8   :  { %v7613_v25 = vadd.f32 %v4653_v19, %v1705_v23 }
 0x5b9   :  { %v1696_v26 = vpop.f32.mrb[22].mxu0 }
 0x5ba   :  { %v1706_v50 = vadd.f32 %v1696_v26, %v1608_v13  ;;  %v5292_v27 = vpop.f32.mrb[23].mxu0  ;;  %v1717_v28 = vsel %vm777_vm0, %v7613_v25, 0.0  ;;  %v1729_v31 = vmul.f32 %v7613_v25, %v7613_v25 }
 0x5bb   :  { %1718 = vadd.xlane.f32.xlu1 %v1717_v28 }
 0x5bc   :  { %v7619_v32 = vadd.f32 %v4653_v19, %v1706_v50  ;;  %v1732_v33 = vsel %vm777_vm0, %v1729_v31, 0.0 }
 0x5bd   :  { %v1701_v35 = vpop.f32.mrb[24].mxu0  ;;  %1733 = vadd.xlane.f32.xlu0 %v1732_v33 }
 0x5be   :  { %v1707_v36 = vadd.f32 %v1701_v35, %v1613_v16  ;;  %v5295_v38 = vpop.f32.mrb[25].mxu0  ;;  %v1720_v39 = vsel %vm777_vm0, %v7619_v32, 0.0  ;;  %v1730_v40 = vmul.f32 %v7619_v32, %v7619_v32  ;;  %v5959_v16 = vpack.c.bf16 %v583_v44, %v582_v15 }
 0x5bf   :  { %1721 = vadd.xlane.f32.xlu1 %v1720_v39 }
 0x5c0   :  { %v7626_v42 = vadd.f32 %v4653_v19, %v1707_v36  ;;  %v1735_v45 = vsel %vm777_vm0, %v1730_v40, 0.0  ;;  %5960 = vmatpush3.bf16.msra.mxu1 %v5959_v16  ;;  %v584_v19 = vld [vmem:[%s8212_s18 + $0x30] sm:$0xff]  ;;  %v758_v16 = vshrl.u32 %v719_v34, 7  ;;  %v537_v34 = vld [vmem:[%s8216_s26 + $0x18] sm:$0xff]  ;;  %s8241_s18 = sld [smem:[#allocation63_spill]] }
 0x5c1   :  { %5961 = vmatprep.subr.bf16.mxu1 %v6938_v20  ;;  %v5962_v23 = vpack.c.bf16 %v585_v22, %v584_v19  ;;  %v534_v22 = vld [vmem:[%s8216_s26] sm:$0xff] }
 0x5c2   :  { %v1723_v46 = vsel %vm777_vm0, %v7626_v42, 0.0  ;;  %v1731_v47 = vmul.f32 %v7626_v42, %v7626_v42 }
 0x5c3   :  { %1736 = vadd.xlane.f32.xlu1 %v1735_v45  ;;  %1724 = vadd.xlane.f32.xlu0 %v1723_v46 }
 0x5c4   :  { %v1738_v55 = vsel %vm777_vm0, %v1731_v47, 0.0  ;;  %5963 = vmatpush3.bf16.msra.mxu1 %v5962_v23  ;;  %v535_v23 = vld [vmem:[%s8216_s26 + $0x8] sm:$0xff] }
 0x5c5   :  { %v1950_v49 = vpop.f32.mrb[26].mxu0 }
 0x5c6   :  { %v1951_v51 = vadd.f32 %v4660_v48, %v1950_v49  ;;  %v5339_v54 = vpop.f32.mrb[27].mxu0 }
 0x5c7   :  { %1739 = vadd.xlane.f32.xlu1 %v1738_v55 }
 0x5c8   :  { %v4664_v57 = vmul.f32 -1.442695, %v1951_v51 }
 0x5c9   :  { %v1955_v30 = vpop.f32.mrb[28].mxu0 }
 0x5ca   :  { %6420 = vpow2.f32 %v4664_v57  ;;  %v1956_v58 = vadd.f32 %v4660_v48, %v1955_v30  ;;  %v5342_v62 = vpop.f32.mrb[29].mxu0 }
 0x5cc   :  { %v4665_v63 = vmul.f32 -1.442695, %v1956_v58 }
 0x5cd   :  { %v1960_v0 = vpop.f32.mrb[30].mxu0 }
 0x5ce   :  { %6422 = vpow2.f32 %v4665_v63  ;;  %v1961_v1 = vadd.f32 %v4660_v48, %v1960_v0  ;;  %v5345_v2 = vpop.f32.mrb[31].mxu0 }
 0x5d0   :  { %v4666_v4 = vmul.f32 -1.442695, %v1961_v1  ;;  %v4654_v1 = vld [vmem:[%s8213_s22] ss:$0 sm:$0xff]  ;;  %s8242_s22 = sld [smem:[#allocation66_spill]] }
 0x5d2   :  { %6424 = vpow2.f32 %v4666_v4  ;;  %v4655_v4 = vld [vmem:[%s8214_s23] ss:$0 sm:$0xff]  ;;  %s8243_s23 = sld [smem:[#allocation47_spill]] }
 0x5d4   :  { %v6421_v9 = vpop.eup %6420 }
 0x5d5   :  { %v1973_v37 = vadd.f32 1.0, %v6421_v9 }
 0x5d7   :  { %6426 = vrcp.f32 %v1973_v37 }
 0x5d8   :  { %v6423_v13 = vpop.eup %6422 }
 0x5d9   :  { %v1974_v14 = vadd.f32 1.0, %v6423_v13 }
 0x5db   :  { %6428 = vrcp.f32 %v1974_v14 }
 0x5dc   :  { %v6425_v17 = vpop.eup %6424 }
 0x5dd   :  { %v1975_v18 = vadd.f32 1.0, %v6425_v17  ;;  %v759_v17 = vadd.s32 8, %v758_v16 }
 0x5df   :  { %6430 = vrcp.f32 %v1975_v18  ;;  %v4616_v18 = vld [vmem:[%s8215_s30] ss:$0 sm:$0xff]  ;;  %s8244_s30 = sld [smem:[#allocation46_spill]] }
 0x5e0   :  { %vm765_vm11 = vcmp.eq.s32.totalorder %v758_v16, %v4616_v18  ;;  %vm766_vm12 = vcmp.eq.s32.totalorder %v759_v17, %v4616_v18  ;;  %v512_v17 = vld [vmem:[%s8218_s24 + $0x10] sm:$0xff]  ;;  %v513_v18 = vld [vmem:[%s8218_s24 + $0x18] sm:$0xff] }
 0x5e1   :  { %v6427_v24 = vpop.eup %6426  ;;  %v7660_v19 = vsel %vm765_vm11, 1.0, %v6940_v21 }
 0x5e2   :  { %1984 = vperm.xlu0 %6409, %v6427_v24   ;;  %v5980_v24 = vpack.c.bf16 %v535_v23, %v534_v22  ;;  %v520_v22 = vld [vmem:[%s8219_s5 + $0x10] sm:$0xff]  ;;  %v521_v23 = vld [vmem:[%s8219_s5 + $0x18] sm:$0xff] }
 0x5e4   :  { %5981 = vmatprep.subr.bf16.mxu0 %v5980_v24 }
 0x5e5   :  { %v6429_v26 = vpop.eup %6428  ;;  %5983 = vmatpush3.bf16.msra.mxu0 %v5980_v24 }
 0x5e6   :  { %1989 = vperm.xlu1 %6408, %v6429_v26   ;;  %v536_v26 = vld [vmem:[%s8216_s26 + $0x10] sm:$0xff] }
 0x5e9   :  { %v6431_v50 = vpop.eup %6430 }
 0x5ea   :  { %1994 = vperm.xlu1 %6408, %v6431_v50   ;;  %v5984_v50 = vpack.c.bf16 %v537_v34, %v536_v26  ;;  %v514_v34 = vld [vmem:[%s8218_s24 + $0x20] sm:$0xff] }
 0x5ec   :  { %5985 = vmatprep.subr.bf16.mxu0 %v5984_v50 }
 0x5ed   :  { %5987 = vmatpush3.bf16.msra.mxu0 %v5984_v50  ;;  %v6000_v50 = vpack.c.bf16 %v513_v18, %v512_v17 }
 0x648   :  { %v1719_v27 = vpop.xlane.xlu1 %1718 }
 0x649   :  { %v1726_v28 = vmul.f32 0.015625, %v1719_v27  ;;  %v538_v27 = vld [vmem:[%s8216_s26 + $0x20] sm:$0xff] }
 0x64a   :  { %v1734_v31 = vpop.xlane.xlu0 %1733 }
 0x64b   :  { %v1744_v33 = vmul.f32 %v1726_v28, %v1726_v28  ;;  %v1741_v35 = vmul.f32 0.015625, %v1734_v31  ;;  %v1750_v63 = vsub.f32 %v7613_v25, %v1726_v28  ;;  %v539_v28 = vld [vmem:[%s8216_s26 + $0x28] sm:$0xff] }
 0x64c   :  { %v1722_v36 = vpop.xlane.xlu1 %1721  ;;  %v5988_v31 = vpack.c.bf16 %v539_v28, %v538_v27  ;;  %v6032_v27 = vpack.c.bf16 %v521_v23, %v520_v22  ;;  %v515_v28 = vld [vmem:[%s8218_s24 + $0x28] sm:$0xff] }
 0x64d   :  { %v1747_v38 = vsub.f32 %v1741_v35, %v1744_v33  ;;  %v1727_v39 = vmul.f32 0.015625, %v1722_v36  ;;  %v540_v33 = vld [vmem:[%s8216_s26 + $0x30] sm:$0xff]  ;;  %v541_v35 = vld [vmem:[%s8216_s26 + $0x38] sm:$0xff]  ;;  %s8245_s26 = sld [smem:[#allocation83_spill]] }
 0x64e   :  { %5989 = vmatprep.subr.bf16.mxu0 %v5988_v31  ;;  %v5992_v36 = vpack.c.bf16 %v541_v35, %v540_v33  ;;  %v523_v33 = vld [vmem:[%s8219_s5 + $0x28] sm:$0xff]  ;;  %v6004_v35 = vpack.c.bf16 %v515_v28, %v514_v34 }
 0x64f   :  { %v1753_v40 = vadd.f32 1e-05, %v1747_v38  ;;  %v1745_v47 = vmul.f32 %v1727_v39, %v1727_v39  ;;  %v1751_v6 = vsub.f32 %v7619_v32, %v1727_v39  ;;  %5991 = vmatpush3.bf16.msra.mxu0 %v5988_v31  ;;  %v522_v31 = vld [vmem:[%s8219_s5 + $0x20] sm:$0xff]  ;;  %v4682_v34 = vld [vmem:[#allocation14] ss:$0 sm:$0xff] }
 0x650   :  { %v1737_v45 = vpop.xlane.xlu1 %1736  ;;  %v1725_v46 = vpop.xlane.xlu0 %1724  ;;  %5993 = vmatprep.subr.bf16.mxu0 %v5992_v36 }
 0x651   :  { %6432 = vrsqrt.f32 %v1753_v40  ;;  %v1742_v48 = vmul.f32 0.015625, %v1737_v45  ;;  %v1728_v49 = vmul.f32 0.015625, %v1725_v46  ;;  %v4656_v40 = vld [vmem:[#allocation22] ss:$0 sm:$0xff] }
 0x653   :  { %v1748_v51 = vsub.f32 %v1742_v48, %v1745_v47  ;;  %v1746_v57 = vmul.f32 %v1728_v49, %v1728_v49  ;;  %v1752_v11 = vsub.f32 %v7626_v42, %v1728_v49  ;;  %5995 = vmatpush3.bf16.msra.mxu0 %v5992_v36  ;;  %v6036_v36 = vpack.c.bf16 %v523_v33, %v522_v31 }
 0x654   :  { %v1740_v54 = vpop.xlane.xlu1 %1739 }
 0x655   :  { %v1754_v55 = vadd.f32 1e-05, %v1748_v51  ;;  %v1743_v30 = vmul.f32 0.015625, %v1740_v54 }
 0x657   :  { %6434 = vrsqrt.f32 %v1754_v55  ;;  %v1749_v58 = vsub.f32 %v1743_v30, %v1746_v57 }
 0x659   :  { %v1755_v62 = vadd.f32 1e-05, %v1749_v58 }
 0x65b   :  { %v6433_v0 = vpop.eup %6432  ;;  %6436 = vrsqrt.f32 %v1755_v62 }
 0x65c   :  { %v1759_v2 = vmul.f32 %v6433_v0, %v1750_v63  ;;  %v542_v0 = vld [vmem:[%s8217_s10] sm:$0xff] }
 0x65e   :  { %v1768_v5 = vmul.f32 %v4654_v1, %v1759_v2 }
 0x660   :  { %v1777_v8 = vadd.f32 %v4655_v4, %v1768_v5  ;;  %v545_v5 = vld [vmem:[%s8217_s10 + $0x18] sm:$0xff] }
 0x661   :  { %v6435_v9 = vpop.eup %6434  ;;  %v1985_v51 = vpop.permute.xlu0 %1984 }
 0x662   :  { %v1780_v37 = vmax.f32 %v1777_v8, 0.0  ;;  %v1760_v10 = vmul.f32 %v6435_v9, %v1751_v6  ;;  %v7678_v8 = vsel %vm766_vm12, 1.0, %v6940_v21 }
 0x664   :  { %5313 = vmatmul.mubr.msk.f32.vlgmr.msra.gmra.mrb[20].mxu1 %vm777_vm0, %v1780_v37  ;;  %v1769_v12 = vmul.f32 %v4654_v1, %v1760_v10  ;;  %v546_v37 = vld [vmem:[%s8217_s10 + $0x20] sm:$0xff]  ;;  %v547_v10 = vld [vmem:[%s8217_s10 + $0x28] sm:$0xff] }
 0x665   :  { %v6437_v13 = vpop.eup %6436  ;;  %5315 = vmatprep.mubr.msk.f32.mxu1 %vm6939_vm1, %v6940_v21  ;;  %v1990_v46 = vpop.permute.xlu1 %1989 }
 0x666   :  { %v1778_v25 = vadd.f32 %v4655_v4, %v1769_v12  ;;  %v1761_v14 = vmul.f32 %v6437_v13, %v1752_v11  ;;  %v6020_v11 = vpack.c.bf16 %v547_v10, %v546_v37  ;;  %v548_v12 = vld [vmem:[%s8217_s10 + $0x30] sm:$0xff]  ;;  %v549_v13 = vld [vmem:[%s8217_s10 + $0x38] sm:$0xff] }
 0x667   :  { %v532_v10 = vld [vmem:[%s8220_s27 + $0x30] sm:$0xff] }
 0x668   :  { %v1781_v15 = vmax.f32 %v1778_v25, 0.0  ;;  %v1770_v32 = vmul.f32 %v4654_v1, %v1761_v14  ;;  %v543_v1 = vld [vmem:[%s8217_s10 + $0x8] sm:$0xff]  ;;  %v6024_v25 = vpack.c.bf16 %v549_v13, %v548_v12  ;;  %v510_v14 = vld [vmem:[%s8218_s24] sm:$0xff]  ;;  %v508_v12 = vld [vmem:[%s8221_s1 + $0x30] sm:$0xff] }
 0x669   :  { %v1995_v63 = vpop.permute.xlu1 %1994  ;;  %v6012_v6 = vpack.c.bf16 %v543_v1, %v542_v0  ;;  %v509_v13 = vld [vmem:[%s8221_s1 + $0x38] sm:$0xff] }
 0x66a   :  { %5316 = vmatmul.mubr.msk.f32.gmra.mrb[22].mxu1 %vm777_vm0, %v1781_v15  ;;  %v1779_v44 = vadd.f32 %v4655_v4, %v1770_v32  ;;  %v544_v4 = vld [vmem:[%s8217_s10 + $0x10] sm:$0xff]  ;;  %v511_v15 = vld [vmem:[%s8218_s24 + $0x8] sm:$0xff]  ;;  %v518_v32 = vld [vmem:[%s8219_s5] sm:$0xff]  ;;  %s8246_s10 = sld [smem:[#allocation48_spill]] }
 0x66b   :  { %5318 = vmatprep.mubr.msk.f32.mxu1 %vm6939_vm1, %v6940_v21  ;;  %v6016_v9 = vpack.c.bf16 %v545_v5, %v544_v4  ;;  %v531_v4 = vld [vmem:[%s8220_s27 + $0x28] sm:$0xff]  ;;  %v506_v5 = vld [vmem:[%s8221_s1 + $0x20] sm:$0xff] }
 0x66c   :  { %v1782_v42 = vmax.f32 %v1779_v44, 0.0  ;;  %v5996_v44 = vpack.c.bf16 %v511_v15, %v510_v14  ;;  %v6072_v14 = vpack.c.bf16 %v509_v13, %v508_v12  ;;  %v4669_v15 = vld [vmem:[#allocation17] ss:$0 sm:$0xff] }
 0x66e   :  { %5319 = vmatmul.mubr.msk.f32.gmra.mrb[24].mxu1 %vm777_vm0, %v1782_v42  ;;  %v519_v42 = vld [vmem:[%s8219_s5 + $0x8] sm:$0xff]  ;;  %5997 = vmatprep.subr.bf16.mxu0 %v5996_v44 }
 0x66f   :  { %5352 = vmatprep.mubr.msk.f32.mxu1 %vm2000_vm13, %v7660_v19  ;;  %v6028_v16 = vpack.c.bf16 %v519_v42, %v518_v32  ;;  %v4677_v32 = vld [vmem:[#allocation19] ss:$0 sm:$0xff] }
 0x737   :  { %v1864_v38 = vpop.f32.mrb[20].mxu1 }
 0x738   :  { %v5314_v39 = vpop.f32.mrb[21].mxu1  ;;  %v1865_v45 = vadd.f32 %v4656_v40, %v1864_v38  ;;  %v516_v38 = vld [vmem:[%s8218_s24 + $0x30] sm:$0xff] }
 0x739   :  { %v517_v39 = vld [vmem:[%s8218_s24 + $0x38] sm:$0xff]  ;;  %s6943_s24 = smov [#allocation28]  }
 0x73a   :  { %v1997_v54 = vmul.f32 %v1985_v51, %v1865_v45  ;;  %v525_v45 = vld [vmem:[%s8219_s5 + $0x38] sm:$0xff]  ;;  %v502_v51 = vld [vmem:[%s8221_s1] sm:$0xff] }
 0x73d   :  { %v1869_v47 = vpop.f32.mrb[22].mxu1 }
 0x73e   :  { %v1870_v48 = vadd.f32 %v4656_v40, %v1869_v47  ;;  %v5317_v49 = vpop.f32.mrb[23].mxu1 }
 0x73f   :  { %v527_v49 = vld [vmem:[%s8220_s27 + $0x8] sm:$0xff] }
 0x740   :  { %v1998_v55 = vmul.f32 %v1990_v46, %v1870_v48  ;;  %v6008_v46 = vpack.c.bf16 %v517_v39, %v516_v38  ;;  %v526_v48 = vld [vmem:[%s8220_s27] sm:$0xff] }
 0x741   :  { %v1874_v57 = vpop.f32.mrb[24].mxu1 }
 0x742   :  { %v1875_v30 = vadd.f32 %v4656_v40, %v1874_v57  ;;  %v5320_v58 = vpop.f32.mrb[25].mxu1  ;;  %v5976_v62 = vpack.c.bf16 %v1998_v55, %v1997_v54  ;;  %v524_v40 = vld [vmem:[%s8219_s5 + $0x30] sm:$0xff]  ;;  %v503_v54 = vld [vmem:[%s8221_s1 + $0x8] sm:$0xff]  ;;  %v6044_v55 = vpack.c.bf16 %v527_v49, %v526_v48  ;;  %s4519_s5 = sshll.u32 %s6943_s24, 4  ;;  %s4520_s5 = int_to_ptr.vmem [resolvable:$true] %s4519_s5 }
 0x743   :  { %v6040_v47 = vpack.c.bf16 %v525_v45, %v524_v40  ;;  %v6060_v57 = vpack.c.bf16 %v503_v54, %v502_v51  ;;  %v529_v58 = vld [vmem:[%s8220_s27 + $0x18] sm:$0xff]  ;;  %p6821_p1 = scmp.lt.s32.totalorder %s4520_s5, %s4520_s5 }
 0x744   :  { %v1999_v2 = vmul.f32 %v1995_v63, %v1875_v30  ;;  %5977 = vmatprep.subr.bf16.mxu1 %v5976_v62  ;;  %v528_v30 = vld [vmem:[%s8220_s27 + $0x10] sm:$0xff]  ;;  %v505_v63 = vld [vmem:[%s8221_s1 + $0x18] sm:$0xff] }
 0x745   :  { %5979 = vmatpush3.bf16.msra.mxu1 %v5976_v62  ;;  %v504_v62 = vld [vmem:[%s8221_s1 + $0x10] sm:$0xff]  ;;  %v6048_v0 = vpack.c.bf16 %v529_v58, %v528_v30  ;;  %v4685_v58 = vld [vmem:[#allocation16] ss:$0 sm:$0xff] }
 0x746   :  { %5350 = vmatprep.subr.mxu1 %v1999_v2  ;;  %v6064_v1 = vpack.c.bf16 %v505_v63, %v504_v62 }
 0x749   :  { %5351 = vmatpush3.msra.mxu1 %v1999_v2  ;;  %v530_v2 = vld [vmem:[%s8220_s27 + $0x20] sm:$0xff] }
 0x74a   :  { %5353 = vmatmul.mubr.msk.f32.vlgmr.msra.gmra.mrb[26].mxu1 %vm2000_vm13, %v7678_v8  ;;  %6013 = vmatprep.subr.bf16.mxu1 %v6012_v6 }
 0x74b   :  { %6015 = vmatpush3.bf16.msra.mxu1 %v6012_v6  ;;  %v507_v6 = vld [vmem:[%s8221_s1 + $0x28] sm:$0xff] }
 0x74c   :  { %6017 = vmatprep.subr.bf16.mxu1 %v6016_v9  ;;  %v6068_v37 = vpack.c.bf16 %v507_v6, %v506_v5 }
 0x74f   :  { %6019 = vmatpush3.bf16.msra.mxu1 %v6016_v9  ;;  %v6052_v9 = vpack.c.bf16 %v531_v4, %v530_v2 }
 0x750   :  { %6021 = vmatprep.subr.bf16.mxu1 %v6020_v11 }
 0x753   :  { %6023 = vmatpush3.bf16.msra.mxu1 %v6020_v11  ;;  %v533_v11 = vld [vmem:[%s8220_s27 + $0x38] sm:$0xff]  ;;  %s6816_s27 = scalar_lea.vmem %s4520_s5, 256 }
 0x754   :  { %6025 = vmatprep.subr.bf16.mxu1 %v6024_v25  ;;  %p6817_p0 = scmp.ne.s32.totalorder %s4520_s5, %s6816_s27  ;;  %p6822_p2 = scmp.lt.s32.totalorder %s6816_s27, %s6816_s27 }
 0x756   :  { %p6823_p3 = por %p6822_p2, %p6821_p1 }
 0x757   :  { %6027 = vmatpush3.bf16.msra.mxu1 %v6024_v25  ;;  %v6056_v25 = vpack.c.bf16 %v533_v11, %v532_v10 }
 0x758   :  { %6029 = vmatprep.subr.bf16.mxu1 %v6028_v16  ;;  %p6824_p4 = pnand %p6823_p3, %p6817_p0 }
 0x81d   :  { %v7694_v24 = vpop.f32.mrb[26].mxu1 }
 0x81e   :  { %v2073_v26 = vpop.f32.mrb[27].mxu1 }
 0x81f   :  { %5371 = vmatprep.mubr.msk.f32.mxu0 %vm777_vm0, %v2073_v26  ;;  %5409 = vmatprep.mubr.msk.f32.mxu1 %vm777_vm0, %v2073_v26 }
 0x820   :  { %5372 = vmatmul.mubr.msk.f32.vlgmr.msra.gmra.mrb[32].mxu0 %vm777_vm0, %v7694_v24  ;;  %5410 = vmatmul.mubr.msk.f32.vlgmr.msra.gmra.mrb[28].mxu1 %vm777_vm0, %v7694_v24 }
 0x821   :  { %5999 = vmatpush3.bf16.msra.mxu0 %v5996_v44  ;;  %6031 = vmatpush3.bf16.msra.mxu1 %v6028_v16  ;;  %v4674_v44 = vld [vmem:[#allocation13] ss:$0 sm:$0xff] }
 0x822   :  { %5390 = vmatprep.mubr.msk.f32.mxu0 %vm777_vm0, %v7461_v43  ;;  %5428 = vmatprep.mubr.msk.f32.mxu1 %vm777_vm0, %v7461_v43 }
 0x823   :  { %6001 = vmatprep.subr.bf16.mxu0 %v6000_v50  ;;  %6033 = vmatprep.subr.bf16.mxu1 %v6032_v27 }
 0x825   :  { %6003 = vmatpush3.bf16.msra.mxu0 %v6000_v50  ;;  %6035 = vmatpush3.bf16.msra.mxu1 %v6032_v27 }
 0x826   :  { %6005 = vmatprep.subr.bf16.mxu0 %v6004_v35  ;;  %6037 = vmatprep.subr.bf16.mxu1 %v6036_v36 }
 0x829   :  { %6007 = vmatpush3.bf16.msra.mxu0 %v6004_v35  ;;  %6039 = vmatpush3.bf16.msra.mxu1 %v6036_v36 }
 0x82a   :  { %6009 = vmatprep.subr.bf16.mxu0 %v6008_v46  ;;  %6041 = vmatprep.subr.bf16.mxu1 %v6040_v47 }
 0x82d   :  { %6011 = vmatpush3.bf16.msra.mxu0 %v6008_v46  ;;  %6043 = vmatpush3.bf16.msra.mxu1 %v6040_v47 }
 0x82e   :  { %6045 = vmatprep.subr.bf16.mxu0 %v6044_v55  ;;  %6061 = vmatprep.subr.bf16.mxu1 %v6060_v57 }
 0x830   :  { %5391 = vmatmul.mubr.msk.f32.vlgmr.msra.gmra.mrb[32].mxu0 %vm777_vm0, %v7459_v41  ;;  %5429 = vmatmul.mubr.msk.f32.vlgmr.msra.gmra.mrb[28].mxu1 %vm777_vm0, %v7459_v41 }
 0x831   :  { %6047 = vmatpush3.bf16.msra.mxu0 %v6044_v55  ;;  %5447 = vmatprep.mubr.msk.f32.mxu0 %vm777_vm0, %v2073_v26 }
 0x832   :  { %6063 = vmatpush3.bf16.msra.mxu1 %v6060_v57  ;;  %5466 = vmatprep.mubr.msk.f32.mxu1 %vm777_vm0, %v7461_v43  ;;  %v4688_v57 = vld [vmem:[#allocation11] ss:$0 sm:$0xff] }
 0x833   :  { %6049 = vmatprep.subr.bf16.mxu0 %v6048_v0  ;;  %6065 = vmatprep.subr.bf16.mxu1 %v6064_v1 }
 0x835   :  { %6051 = vmatpush3.bf16.msra.mxu0 %v6048_v0 }
 0x836   :  { %6067 = vmatpush3.bf16.msra.mxu1 %v6064_v1  ;;  %6053 = vmatprep.subr.bf16.mxu0 %v6052_v9 }
 0x837   :  { %6069 = vmatprep.subr.bf16.mxu1 %v6068_v37 }
 0x839   :  { %6055 = vmatpush3.bf16.msra.mxu0 %v6052_v9 }
 0x83a   :  { %6071 = vmatpush3.bf16.msra.mxu1 %v6068_v37  ;;  %6057 = vmatprep.subr.bf16.mxu0 %v6056_v25 }
 0x83b   :  { %6073 = vmatprep.subr.bf16.mxu1 %v6072_v14 }
 0x83d   :  { %6059 = vmatpush3.bf16.msra.mxu0 %v6056_v25 }
 0x83e   :  { %6075 = vmatpush3.bf16.msra.mxu1 %v6072_v14  ;;  %6076 = vmatprep.subr.bf16.mxu0 %v6938_v20 }
 0x83f   :  { %6079 = vmatprep.subr.bf16.mxu1 %v6938_v20 }
 0x840   :  { %5448 = vmatmul.mubr.msk.f32.vlgmr.msra.gmra.mrb[34].mxu0 %vm777_vm0, %v7694_v24 }
 0x841   :  { %5467 = vmatmul.mubr.msk.f32.vlgmr.msra.gmra.mrb[30].mxu1 %vm777_vm0, %v7459_v41  ;;  %5473 = vmatprep.mubr.msk.f32.mxu0 %vm6939_vm1, %v6940_v21 }
 0x842   :  { %5486 = vmatprep.mubr.msk.f32.mxu1 %vm6939_vm1, %v6940_v21 }
 0x903   :  { %v5392_v42 = vpop.f32.mrb[32].mxu0  ;;  %v5430_v16 = vpop.f32.mrb[28].mxu1 }
 0x904   :  { %v6300_v17 = vadd.f32 %v5392_v42, %v4669_v15  ;;  %v2241_v18 = vpop.f32.mrb[33].mxu0  ;;  %v2419_v22 = vpop.f32.mrb[29].mxu1  ;;  %v6302_v23 = vadd.f32 %v5430_v16, %v4677_v32 }
 0x905   :  { %v6301_v26 = vadd.f32 %v4669_v15, %v2241_v18  ;;  %v6303_v27 = vadd.f32 %v4677_v32, %v2419_v22  ;;  %v653_v22 = vld [vmem:[%s8222_s2] sm:$0xff] }
 0x906   :  { %v2259_v24 = vadd.f32 %v6300_v17, %v4674_v44  ;;  %v2437_v31 = vadd.f32 %v6302_v23, %v4682_v34 }
 0x907   :  { %v2258_v50 = vadd.f32 %v6301_v26, %v4674_v44  ;;  %v2436_v35 = vadd.f32 %v6303_v27, %v4682_v34  ;;  %v654_v26 = vld [vmem:[%s8222_s2 + $0x8] sm:$0xff]  ;;  %v656_v27 = vld [vmem:[%s8222_s2 + $0x18] sm:$0xff] }
 0x908   :  { %v4676_v28 = vmul.f32 -1.442695, %v2259_v24  ;;  %v4684_v36 = vmul.f32 -1.442695, %v2437_v31  ;;  %v670_v24 = vld [vmem:[%s8223_s3 + $0x8] sm:$0xff]  ;;  %v672_v31 = vld [vmem:[%s8223_s3 + $0x18] sm:$0xff] }
 0x909   :  { %v4675_v33 = vmul.f32 -1.442695, %v2258_v50  ;;  %v4683_v38 = vmul.f32 -1.442695, %v2436_v35  ;;  %v655_v50 = vld [vmem:[%s8222_s2 + $0x10] sm:$0xff] }
 0x90a   :  { %6438 = vpow2.f32 %v4676_v28  ;;  %v671_v28 = vld [vmem:[%s8223_s3 + $0x10] sm:$0xff] }
 0x90b   :  { %6440 = vpow2.f32 %v4675_v33  ;;  %v6086_v33 = vpack.c.bf16 %v656_v27, %v655_v50  ;;  %v6098_v35 = vpack.c.bf16 %v672_v31, %v671_v28  ;;  %v592_v50 = vld [vmem:[%s8225_s0 + $0x28] sm:$0xff]  ;;  %v593_v28 = vld [vmem:[%s8225_s0 + $0x30] sm:$0xff]  ;;  %v594_v31 = vld [vmem:[%s8225_s0 + $0x38] sm:$0xff] }
 0x90c   :  { %6442 = vpow2.f32 %v4684_v36  ;;  %v657_v36 = vld [vmem:[%s8222_s2 + $0x20] sm:$0xff] }
 0x90d   :  { %6444 = vpow2.f32 %v4683_v38  ;;  %v658_v38 = vld [vmem:[%s8222_s2 + $0x28] sm:$0xff] }
 0x913   :  { %v5449_v39 = vpop.f32.mrb[34].mxu0 }
 0x914   :  { %v6439_v40 = vpop.eup %6438  ;;  %v5468_v45 = vpop.f32.mrb[30].mxu1  ;;  %v2528_v1 = vadd.f32 %v5449_v39, %v4685_v58  ;;  %v673_v39 = vld [vmem:[%s8223_s3 + $0x20] sm:$0xff] }
 0x915   :  { %v2522_v46 = vpop.f32.mrb[35].mxu0  ;;  %v2267_v47 = vadd.f32 1.0, %v6439_v40  ;;  %v2603_v48 = vpop.f32.mrb[31].mxu1  ;;  %v2609_v63 = vadd.f32 %v5468_v45, %v4688_v57  ;;  %v674_v40 = vld [vmem:[%s8223_s3 + $0x28] sm:$0xff]  ;;  %v6089_v45 = vpack.c.bf16 %v658_v38, %v657_v36 }
 0x916   :  { %v6441_v49 = vpop.eup %6440  ;;  %v2604_v4 = vadd.f32 %v4688_v57, %v2603_v48  ;;  %v2523_v9 = vadd.f32 %v4685_v58, %v2522_v46  ;;  %v6101_v46 = vpack.c.bf16 %v674_v40, %v673_v39  ;;  %v660_v48 = vld [vmem:[%s8222_s2 + $0x38] sm:$0xff]  ;;  %v661_v57 = vld [vmem:[%s8224_s21] sm:$0xff] }
 0x917   :  { %6446 = vrcp.f32 %v2267_v47  ;;  %v2266_v51 = vadd.f32 1.0, %v6441_v49  ;;  %v6443_v54 = vpop.eup %6442  ;;  %v659_v47 = vld [vmem:[%s8222_s2 + $0x30] sm:$0xff] }
 0x918   :  { %v6445_v55 = vpop.eup %6444  ;;  %v2445_v30 = vadd.f32 1.0, %v6443_v54  ;;  %v675_v49 = vld [vmem:[%s8223_s3 + $0x30] sm:$0xff]  ;;  %v6092_v54 = vpack.c.bf16 %v660_v48, %v659_v47 }
 0x919   :  { %6448 = vrcp.f32 %v2266_v51  ;;  %v2444_v62 = vadd.f32 1.0, %v6445_v55  ;;  %v676_v51 = vld [vmem:[%s8223_s3 + $0x38] sm:$0xff] }
 0x91a   :  { %6450 = vrcp.f32 %v2445_v30  ;;  %v6104_v55 = vpack.c.bf16 %v676_v51, %v675_v49  ;;  %v662_v30 = vld [vmem:[%s8224_s21 + $0x8] sm:$0xff] }
 0x91b   :  { %6452 = vrcp.f32 %v2444_v62  ;;  %v6107_v58 = vpack.c.bf16 %v662_v30, %v661_v57  ;;  %v663_v62 = vld [vmem:[%s8224_s21 + $0x10] sm:$0xff]  ;;  %v4706_v57 = vld [vmem:[%s8226_s20] ss:$0 sm:$0xff] }
 0x921   :  { %v6447_v0 = vpop.eup %6446 }
 0x922   :  { %v2613_v2 = vmul.f32 %v6447_v0, %v2609_v63  ;;  %v664_v63 = vld [vmem:[%s8224_s21 + $0x18] sm:$0xff] }
 0x923   :  { %v6449_v5 = vpop.eup %6448 }
 0x924   :  { %v2615_v6 = vadd.f32 %v2613_v2, %v2528_v1  ;;  %v2612_v37 = vmul.f32 %v6449_v5, %v2604_v4  ;;  %v6451_v11 = vpop.eup %6450  ;;  %v6110_v5 = vpack.c.bf16 %v664_v63, %v663_v62 }
 0x925   :  { %v6453_v12 = vpop.eup %6452  ;;  %v2619_v13 = vsub.f32 1.0, %v6451_v11  ;;  %v2623_v14 = vmul.f32 %v6451_v11, %v7459_v41  ;;  %v669_v41 = vld [vmem:[%s8223_s3] sm:$0xff] }
 0x926   :  { %6454 = vtanh.f32 %v2615_v6  ;;  %v2614_v10 = vadd.f32 %v2612_v37, %v2523_v9  ;;  %v2618_v15 = vsub.f32 1.0, %v6453_v12  ;;  %v2622_v42 = vmul.f32 %v6453_v12, %v7461_v43  ;;  %v665_v6 = vld [vmem:[%s8224_s21 + $0x20] sm:$0xff]  ;;  %v666_v9 = vld [vmem:[%s8224_s21 + $0x28] sm:$0xff] }
 0x927   :  { %v6083_v43 = vpack.c.bf16 %v654_v26, %v653_v22  ;;  %v6095_v34 = vpack.c.bf16 %v670_v24, %v669_v41  ;;  %v587_v22 = vld [vmem:[%s8225_s0] sm:$0xff]  ;;  %v589_v41 = vld [vmem:[%s8225_s0 + $0x10] sm:$0xff]  ;;  %v590_v24 = vld [vmem:[%s8225_s0 + $0x18] sm:$0xff] }
 0x928   :  { %6456 = vtanh.f32 %v2614_v10 }
 0x930   :  { %v6455_v25 = vpop.eup %6454 }
 0x931   :  { %v2621_v32 = vmul.f32 %v6455_v25, %v2619_v13  ;;  %v6113_v13 = vpack.c.bf16 %v666_v9, %v665_v6  ;;  %v667_v25 = vld [vmem:[%s8224_s21 + $0x30] sm:$0xff] }
 0x932   :  { %v6457_v44 = vpop.eup %6456 }
 0x933   :  { %v7749_v16 = vadd.f32 %v2623_v14, %v2621_v32  ;;  %v2620_v17 = vmul.f32 %v6457_v44, %v2618_v15  ;;  %v668_v14 = vld [vmem:[%s8224_s21 + $0x38] sm:$0xff] }
 0x935   :  { %v7751_v18 = vadd.f32 %v2622_v42, %v2620_v17  ;;  %v6116_v17 = vpack.c.bf16 %v668_v14, %v667_v25  ;;  %v4713_v14 = vld [vmem:[#allocation4] ss:$0 sm:$0xff] }
 0x937   :  { %v6077_v23 = vpack.c.bf16 %v7749_v16, %v7751_v18 }
 0x939   :  { %6078 = vmatpush3.bf16.msra.mxu0 %v6077_v23  ;;  %6081 = vmatpush3.bf16.msra.mxu1 %v6077_v23  ;;  %v588_v23 = vld [vmem:[%s8225_s0 + $0x8] sm:$0xff] }
 0x93a   :  { %6082 = vmatprep.subr.bf16.mxu0 %v6938_v20  ;;  %6094 = vmatprep.subr.bf16.mxu1 %v6938_v20  ;;  %v6131_v26 = vpack.c.bf16 %v588_v23, %v587_v22 }
 0x93c   :  { %5474 = vmatmul.mubr.msk.f32.vlgmr.msra.gmra.mrb[36].mxu0 %vm1259_vm7, %v7470_v52  ;;  %5487 = vmatmul.mubr.msk.f32.vlgmr.msra.gmra.mrb[32].mxu1 %vm1259_vm7, %v7473_v53 }
 0x93d   :  { %5476 = vmatprep.mubr.msk.f32.mxu0 %vm6939_vm1, %v6940_v21  ;;  %5489 = vmatprep.mubr.msk.f32.mxu1 %vm6939_vm1, %v6940_v21 }
 0x93e   :  { %6084 = vmatpush3.bf16.msra.mxu0 %v6083_v43  ;;  %6096 = vmatpush3.bf16.msra.mxu1 %v6095_v34  ;;  %v6134_v43 = vpack.c.bf16 %v590_v24, %v589_v41  ;;  %v591_v34 = vld [vmem:[%s8225_s0 + $0x20] sm:$0xff] }
 0x93f   :  { %6085 = vmatprep.subr.bf16.mxu0 %v6938_v20  ;;  %6097 = vmatprep.subr.bf16.mxu1 %v6938_v20  ;;  %v6137_v27 = vpack.c.bf16 %v592_v50, %v591_v34 }
 0x940   :  { %5477 = vmatmul.mubr.msk.f32.gmra.mrb[38].mxu0 %vm1259_vm7, %v7490_v61  ;;  %5490 = vmatmul.mubr.msk.f32.gmra.mrb[34].mxu1 %vm1259_vm7, %v7487_v60 }
 0x941   :  { %5479 = vmatprep.mubr.msk.f32.mxu0 %vm6939_vm1, %v6940_v21  ;;  %5492 = vmatprep.mubr.msk.f32.mxu1 %vm6939_vm1, %v6940_v21 }
 0x942   :  { %6087 = vmatpush3.bf16.msra.mxu0 %v6086_v33  ;;  %6099 = vmatpush3.bf16.msra.mxu1 %v6098_v35  ;;  %v6140_v33 = vpack.c.bf16 %v594_v31, %v593_v28  ;;  %v677_v31 = vld [vmem:[%s8227_s14] sm:$0xff] }
 0x943   :  { %6088 = vmatprep.subr.bf16.mxu0 %v6938_v20  ;;  %6100 = vmatprep.subr.bf16.mxu1 %v6938_v20 }
 0x944   :  { %5480 = vmatmul.mubr.msk.f32.gmra.mrb[40].mxu0 %vm1259_vm7, %v7508_v3  ;;  %5493 = vmatmul.mubr.msk.f32.gmra.mrb[36].mxu1 %vm1259_vm7, %v7516_v7 }
 0x945   :  { %5511 = vmatprep.mubr.msk.f32.mxu0 %vm6939_vm1, %v6940_v21  ;;  %5536 = vmatprep.mubr.msk.f32.mxu1 %vm6939_vm1, %v6940_v21 }
 0x946   :  { %6090 = vmatpush3.bf16.msra.mxu0 %v6089_v45  ;;  %6102 = vmatpush3.bf16.msra.mxu1 %v6101_v46 }
 0x947   :  { %6091 = vmatprep.subr.bf16.mxu0 %v6938_v20  ;;  %6103 = vmatprep.subr.bf16.mxu1 %v6938_v20 }
 0x94a   :  { %6093 = vmatpush3.bf16.msra.mxu0 %v6092_v54  ;;  %6105 = vmatpush3.bf16.msra.mxu1 %v6104_v55 }
 0x94b   :  { %6106 = vmatprep.subr.bf16.mxu0 %v6938_v20  ;;  %6118 = vmatprep.subr.bf16.mxu1 %v6938_v20 }
 0xa0f   :  { %v2692_v0 = vpop.f32.mrb[36].mxu0  ;;  %v2772_v1 = vpop.f32.mrb[32].mxu1 }
 0xa10   :  { %v5475_v2 = vpop.f32.mrb[37].mxu0  ;;  %v5488_v4 = vpop.f32.mrb[33].mxu1  ;;  %5512 = vmatmul.mubr.msk.f32.vlgmr.msra.gmra.mrb[42].mxu0 %vm777_vm0, %v2772_v1  ;;  %5537 = vmatmul.mubr.msk.f32.vlgmr.msra.gmra.mrb[38].mxu1 %vm777_vm0, %v2692_v0 }
 0xa11   :  { %6108 = vmatpush3.bf16.msra.mxu0 %v6107_v58  ;;  %5514 = vmatprep.mubr.msk.f32.mxu0 %vm6939_vm1, %v6940_v21 }
 0xa12   :  { %5539 = vmatprep.mubr.msk.f32.mxu1 %vm6939_vm1, %v6940_v21  ;;  %6109 = vmatprep.subr.bf16.mxu0 %v6938_v20 }
 0xa13   :  { %v2697_v37 = vpop.f32.mrb[38].mxu0  ;;  %v2777_v10 = vpop.f32.mrb[34].mxu1 }
 0xa14   :  { %v5478_v11 = vpop.f32.mrb[39].mxu0  ;;  %v5491_v12 = vpop.f32.mrb[35].mxu1  ;;  %5515 = vmatmul.mubr.msk.f32.gmra.mrb[44].mxu0 %vm777_vm0, %v2777_v10  ;;  %5540 = vmatmul.mubr.msk.f32.gmra.mrb[40].mxu1 %vm777_vm0, %v2697_v37 }
 0xa15   :  { %6111 = vmatpush3.bf16.msra.mxu0 %v6110_v5  ;;  %5517 = vmatprep.mubr.msk.f32.mxu0 %vm6939_vm1, %v6940_v21 }
 0xa16   :  { %5542 = vmatprep.mubr.msk.f32.mxu1 %vm6939_vm1, %v6940_v21  ;;  %6112 = vmatprep.subr.bf16.mxu0 %v6938_v20 }
 0xa17   :  { %v2702_v15 = vpop.f32.mrb[40].mxu0  ;;  %v2782_v32 = vpop.f32.mrb[36].mxu1 }
 0xa18   :  { %v5481_v44 = vpop.f32.mrb[41].mxu0  ;;  %v5494_v42 = vpop.f32.mrb[37].mxu1  ;;  %5518 = vmatmul.mubr.msk.f32.gmra.mrb[46].mxu0 %vm777_vm0, %v2782_v32  ;;  %5543 = vmatmul.mubr.msk.f32.gmra.mrb[42].mxu1 %vm777_vm0, %v2702_v15 }
 0xa19   :  { %6114 = vmatpush3.bf16.msra.mxu0 %v6113_v13  ;;  %5561 = vmatprep.mubr.msk.f32.mxu0 %vm6939_vm1, %v6940_v21 }
 0xa1a   :  { %6115 = vmatprep.subr.bf16.mxu0 %v6938_v20  ;;  %5586 = vmatprep.mubr.msk.f32.mxu1 %vm6939_vm1, %v6940_v21 }
 0xa1d   :  { %6117 = vmatpush3.bf16.msra.mxu0 %v6116_v17 }
 0xa1e   :  { %6130 = vmatprep.subr.bf16.mxu0 %v6938_v20 }
 0xa20   :  { %5562 = vmatmul.mubr.msk.f32.vlgmr.msra.gmra.mrb[48].mxu0 %vm777_vm0, %v7573_v56 }
 0xa21   :  { %6132 = vmatpush3.bf16.msra.mxu0 %v6131_v26  ;;  %5564 = vmatprep.mubr.msk.f32.mxu0 %vm6939_vm1, %v6940_v21 }
 0xa22   :  { %6133 = vmatprep.subr.bf16.mxu0 %v6938_v20 }
 0xa24   :  { %5565 = vmatmul.mubr.msk.f32.gmra.mrb[50].mxu0 %vm777_vm0, %v7583_v59 }
 0xa25   :  { %6135 = vmatpush3.bf16.msra.mxu0 %v6134_v43  ;;  %5567 = vmatprep.mubr.msk.f32.mxu0 %vm6939_vm1, %v6940_v21 }
 0xa26   :  { %6136 = vmatprep.subr.bf16.mxu0 %v6938_v20 }
 0xa28   :  { %5568 = vmatmul.mubr.msk.f32.gmra.mrb[52].mxu0 %vm777_vm0, %v7593_v29 }
 0xa29   :  { %6138 = vmatpush3.bf16.msra.mxu0 %v6137_v27  ;;  %5611 = vmatprep.mubr.msk.f32.mxu0 %vm6939_vm1, %v6940_v21 }
 0xa2a   :  { %6139 = vmatprep.subr.bf16.mxu0 %v6938_v20 }
 0xa2d   :  { %6141 = vmatpush3.bf16.msra.mxu0 %v6140_v33  ;;  %v678_v33 = vld [vmem:[%s8227_s14 + $0x8] sm:$0xff] }
 0xa30   :  { %5612 = vmatmul.mubr.msk.f32.vlgmr.msra.gmra.mrb[54].mxu0 %vm777_vm0, %v7573_v56 }
 0xa31   :  { %5614 = vmatprep.mubr.msk.f32.mxu0 %vm6939_vm1, %v6940_v21 }
 0xa34   :  { %5615 = vmatmul.mubr.msk.f32.gmra.mrb[56].mxu0 %vm777_vm0, %v7583_v59 }
 0xa35   :  { %5617 = vmatprep.mubr.msk.f32.mxu0 %vm6939_vm1, %v6940_v21 }
 0xa38   :  { %5618 = vmatmul.mubr.msk.f32.gmra.mrb[58].mxu0 %vm777_vm0, %v7593_v29 }
 0xae3   :  { %v2861_v35 = vpop.f32.mrb[42].mxu0  ;;  %v2950_v36 = vpop.f32.mrb[38].mxu1 }
 0xae4   :  { %v2951_v38 = vadd.f32 %v2950_v36, %v2861_v35  ;;  %v5513_v39 = vpop.f32.mrb[43].mxu0  ;;  %v5538_v40 = vpop.f32.mrb[39].mxu1  ;;  %v6119_v35 = vpack.c.bf16 %v678_v33, %v677_v31 }
 0xae5   :  { %v679_v39 = vld [vmem:[%s8227_s14 + $0x10] sm:$0xff]  ;;  %v680_v40 = vld [vmem:[%s8227_s14 + $0x18] sm:$0xff] }
 0xae6   :  { %6120 = vmatpush3.bf16.msra.mxu1 %v6119_v35 }
 0xae7   :  { %v2866_v45 = vpop.f32.mrb[44].mxu0  ;;  %v2955_v56 = vpop.f32.mrb[40].mxu1  ;;  %6121 = vmatprep.subr.bf16.mxu1 %v6938_v20 }
 0xae8   :  { %v2956_v46 = vadd.f32 %v2955_v56, %v2866_v45  ;;  %v5516_v47 = vpop.f32.mrb[45].mxu0  ;;  %v5541_v48 = vpop.f32.mrb[41].mxu1  ;;  %v6122_v45 = vpack.c.bf16 %v680_v40, %v679_v39 }
 0xae9   :  { %v681_v47 = vld [vmem:[%s8227_s14 + $0x20] sm:$0xff]  ;;  %v682_v48 = vld [vmem:[%s8227_s14 + $0x28] sm:$0xff] }
 0xaea   :  { %6123 = vmatpush3.bf16.msra.mxu1 %v6122_v45 }
 0xaeb   :  { %v2871_v49 = vpop.f32.mrb[46].mxu0  ;;  %v2960_v51 = vpop.f32.mrb[42].mxu1  ;;  %6124 = vmatprep.subr.bf16.mxu1 %v6938_v20 }
 0xaec   :  { %v2961_v59 = vadd.f32 %v2960_v51, %v2871_v49  ;;  %v5519_v54 = vpop.f32.mrb[47].mxu0  ;;  %v5544_v55 = vpop.f32.mrb[43].mxu1  ;;  %v6125_v49 = vpack.c.bf16 %v682_v48, %v681_v47  ;;  %v634_v48 = vld [vmem:[%s8230_s8 + $0x8] sm:$0xff] }
 0xaed   :  { %v683_v54 = vld [vmem:[%s8227_s14 + $0x30] sm:$0xff]  ;;  %v684_v55 = vld [vmem:[%s8227_s14 + $0x38] sm:$0xff] }
 0xaee   :  { %6126 = vmatpush3.bf16.msra.mxu1 %v6125_v49 }
 0xaef   :  { %6127 = vmatprep.subr.bf16.mxu1 %v6938_v20 }
 0xaf3   :  { %v3030_v30 = vpop.f32.mrb[48].mxu0 }
 0xaf4   :  { %v3044_v58 = vadd.f32 %v3030_v30, %v2951_v38  ;;  %v5563_v29 = vpop.f32.mrb[49].mxu0 }
 0xaf6   :  { %v7869_v62 = vadd.f32 %v4706_v57, %v3044_v58 }
 0xaf7   :  { %v3035_v63 = vpop.f32.mrb[50].mxu0 }
 0xaf8   :  { %v3045_v0 = vadd.f32 %v3035_v63, %v2956_v46  ;;  %v5566_v1 = vpop.f32.mrb[51].mxu0  ;;  %v3056_v2 = vsel %vm777_vm0, %v7869_v62, 0.0  ;;  %v3068_v4 = vmul.f32 %v7869_v62, %v7869_v62 }
 0xaf9   :  { %3057 = vadd.xlane.f32.xlu1 %v3056_v2 }
 0xafa   :  { %v7875_v5 = vadd.f32 %v4706_v57, %v3045_v0  ;;  %v3071_v6 = vsel %vm777_vm0, %v3068_v4, 0.0 }
 0xafb   :  { %3072 = vadd.xlane.f32.xlu0 %v3071_v6  ;;  %v3040_v9 = vpop.f32.mrb[52].mxu0 }
 0xafc   :  { %v3046_v37 = vadd.f32 %v3040_v9, %v2961_v59  ;;  %v5569_v10 = vpop.f32.mrb[53].mxu0  ;;  %v3059_v11 = vsel %vm777_vm0, %v7875_v5, 0.0  ;;  %v3069_v12 = vmul.f32 %v7875_v5, %v7875_v5 }
 0xafd   :  { %3060 = vadd.xlane.f32.xlu1 %v3059_v11 }
 0xafe   :  { %v7882_v13 = vadd.f32 %v4706_v57, %v3046_v37  ;;  %v3074_v25 = vsel %vm777_vm0, %v3069_v12, 0.0  ;;  %v6128_v57 = vpack.c.bf16 %v684_v55, %v683_v54  ;;  %v637_v55 = vld [vmem:[%s8230_s8 + $0x20] sm:$0xff] }
 0xb00   :  { %v3062_v42 = vsel %vm777_vm0, %v7882_v13, 0.0  ;;  %v3070_v17 = vmul.f32 %v7882_v13, %v7882_v13  ;;  %6129 = vmatpush3.bf16.msra.mxu1 %v6128_v57  ;;  %v638_v57 = vld [vmem:[%s8230_s8 + $0x28] sm:$0xff] }
 0xb01   :  { %3075 = vadd.xlane.f32.xlu1 %v3074_v25 }
 0xb02   :  { %v3077_v24 = vsel %vm777_vm0, %v3070_v17, 0.0 }
 0xb03   :  { %v3289_v15 = vpop.f32.mrb[54].mxu0 }
 0xb04   :  { %v3290_v32 = vadd.f32 %v4713_v14, %v3289_v15  ;;  %v5613_v44 = vpop.f32.mrb[55].mxu0 }
 0xb05   :  { %3063 = vadd.xlane.f32.xlu1 %v3062_v42 }
 0xb06   :  { %v4717_v22 = vmul.f32 -1.442695, %v3290_v32 }
 0xb07   :  { %v3294_v23 = vpop.f32.mrb[56].mxu0 }
 0xb08   :  { %6458 = vpow2.f32 %v4717_v22  ;;  %v3295_v26 = vadd.f32 %v4713_v14, %v3294_v23  ;;  %v5616_v41 = vpop.f32.mrb[57].mxu0 }
 0xb09   :  { %3078 = vadd.xlane.f32.xlu1 %v3077_v24  ;;  %v4707_v41 = vld [vmem:[%s8228_s16] ss:$0 sm:$0xff] }
 0xb0a   :  { %v4718_v43 = vmul.f32 -1.442695, %v3295_v26 }
 0xb0b   :  { %v3299_v34 = vpop.f32.mrb[58].mxu0 }
 0xb0c   :  { %6460 = vpow2.f32 %v4718_v43  ;;  %v3300_v50 = vadd.f32 %v4713_v14, %v3299_v34  ;;  %v5619_v27 = vpop.f32.mrb[59].mxu0 }
 0xb0e   :  { %v4719_v28 = vmul.f32 -1.442695, %v3300_v50  ;;  %v4708_v50 = vld [vmem:[%s8229_s13] ss:$0 sm:$0xff] }
 0xb10   :  { %6462 = vpow2.f32 %v4719_v28 }
 0xb12   :  { %v6459_v36 = vpop.eup %6458 }
 0xb13   :  { %v3312_v38 = vadd.f32 1.0, %v6459_v36 }
 0xb15   :  { %6464 = vrcp.f32 %v3312_v38 }
 0xb16   :  { %v6461_v56 = vpop.eup %6460 }
 0xb17   :  { %v3313_v46 = vadd.f32 1.0, %v6461_v56 }
 0xb19   :  { %6466 = vrcp.f32 %v3313_v46 }
 0xb1a   :  { %v6463_v51 = vpop.eup %6462 }
 0xb1b   :  { %v3314_v59 = vadd.f32 1.0, %v6463_v51  ;;  %v635_v51 = vld [vmem:[%s8230_s8 + $0x10] sm:$0xff] }
 0xb1d   :  { %6468 = vrcp.f32 %v3314_v59  ;;  %v636_v59 = vld [vmem:[%s8230_s8 + $0x18] sm:$0xff] }
 0xb1e   :  { %v6150_v54 = vpack.c.bf16 %v636_v59, %v635_v51  ;;  %v621_v51 = vld [vmem:[%s8234_s11 + $0x20] sm:$0xff]  ;;  %v622_v59 = vld [vmem:[%s8234_s11 + $0x28] sm:$0xff] }
 0xb1f   :  { %v6465_v30 = vpop.eup %6464 }
 0xb20   :  { %3323 = vperm.xlu0 %6409, %v6465_v30   ;;  %v6154_v30 = vpack.c.bf16 %v638_v57, %v637_v55  ;;  %v6202_v55 = vpack.c.bf16 %v622_v59, %v621_v51  ;;  %v615_v57 = vld [vmem:[%s8233_s7 + $0x30] sm:$0xff] }
 0xb23   :  { %v6467_v58 = vpop.eup %6466 }
 0xb24   :  { %3328 = vperm.xlu1 %6408, %v6467_v58   ;;  %v639_v58 = vld [vmem:[%s8230_s8 + $0x30] sm:$0xff] }
 0xb27   :  { %v6469_v29 = vpop.eup %6468 }
 0xb28   :  { %3333 = vperm.xlu1 %6408, %v6469_v29   ;;  %v640_v29 = vld [vmem:[%s8230_s8 + $0x38] sm:$0xff] }
 0xb86   :  { %v3058_v63 = vpop.xlane.xlu1 %3057 }
 0xb87   :  { %v3065_v0 = vmul.f32 0.015625, %v3058_v63  ;;  %v6158_v63 = vpack.c.bf16 %v640_v29, %v639_v58  ;;  %v623_v58 = vld [vmem:[%s8234_s11 + $0x30] sm:$0xff]  ;;  %v624_v29 = vld [vmem:[%s8234_s11 + $0x38] sm:$0xff] }
 0xb88   :  { %v3073_v1 = vpop.xlane.xlu0 %3072 }
 0xb89   :  { %v3083_v2 = vmul.f32 %v3065_v0, %v3065_v0  ;;  %v3080_v4 = vmul.f32 0.015625, %v3073_v1  ;;  %v3089_v23 = vsub.f32 %v7869_v62, %v3065_v0  ;;  %v4709_v1 = vld [vmem:[%s8231_s6] ss:$0 sm:$0xff] }
 0xb8a   :  { %v3061_v6 = vpop.xlane.xlu1 %3060 }
 0xb8b   :  { %v3086_v9 = vsub.f32 %v3080_v4, %v3083_v2  ;;  %v3066_v37 = vmul.f32 0.015625, %v3061_v6 }
 0xb8d   :  { %v3092_v10 = vadd.f32 1e-05, %v3086_v9  ;;  %v3084_v12 = vmul.f32 %v3066_v37, %v3066_v37  ;;  %v3090_v28 = vsub.f32 %v7875_v5, %v3066_v37 }
 0xb8e   :  { %v3076_v11 = vpop.xlane.xlu1 %3075 }
 0xb8f   :  { %6470 = vrsqrt.f32 %v3092_v10  ;;  %v3081_v25 = vmul.f32 0.015625, %v3076_v11 }
 0xb91   :  { %v3087_v14 = vsub.f32 %v3081_v25, %v3084_v12 }
 0xb92   :  { %v3064_v15 = vpop.xlane.xlu1 %3063 }
 0xb93   :  { %v3093_v32 = vadd.f32 1e-05, %v3087_v14  ;;  %v3067_v44 = vmul.f32 0.015625, %v3064_v15  ;;  %v641_v15 = vld [vmem:[%s8232_s19] sm:$0xff] }
 0xb95   :  { %6472 = vrsqrt.f32 %v3093_v32  ;;  %v3085_v17 = vmul.f32 %v3067_v44, %v3067_v44  ;;  %v3091_v39 = vsub.f32 %v7882_v13, %v3067_v44  ;;  %v633_v13 = vld [vmem:[%s8230_s8] sm:$0xff]  ;;  %v642_v32 = vld [vmem:[%s8232_s19 + $0x8] sm:$0xff] }
 0xb96   :  { %v3079_v42 = vpop.xlane.xlu1 %3078  ;;  %v6146_v49 = vpack.c.bf16 %v634_v48, %v633_v13 }
 0xb97   :  { %v3082_v22 = vmul.f32 0.015625, %v3079_v42 }
 0xb98   :  { %6147 = vmatprep.subr.bf16.mxu0 %v6146_v49 }
 0xb99   :  { %v6471_v26 = vpop.eup %6470  ;;  %v3088_v24 = vsub.f32 %v3082_v22, %v3085_v17  ;;  %6149 = vmatpush3.bf16.msra.mxu0 %v6146_v49  ;;  %v643_v22 = vld [vmem:[%s8232_s19 + $0x10] sm:$0xff]  ;;  %v614_v49 = vld [vmem:[%s8233_s7 + $0x28] sm:$0xff] }
 0xb9a   :  { %v3098_v43 = vmul.f32 %v6471_v26, %v3089_v23  ;;  %6151 = vmatprep.subr.bf16.mxu0 %v6150_v54  ;;  %v644_v23 = vld [vmem:[%s8232_s19 + $0x18] sm:$0xff] }
 0xb9b   :  { %v3094_v34 = vadd.f32 1e-05, %v3088_v24  ;;  %v6182_v24 = vpack.c.bf16 %v644_v23, %v643_v22  ;;  %v631_v23 = vld [vmem:[%s8235_s28 + $0x30] sm:$0xff] }
 0xb9c   :  { %v3107_v27 = vmul.f32 %v4707_v41, %v3098_v43  ;;  %v645_v43 = vld [vmem:[%s8232_s19 + $0x20] sm:$0xff] }
 0xb9d   :  { %6474 = vrsqrt.f32 %v3094_v34  ;;  %6153 = vmatpush3.bf16.msra.mxu0 %v6150_v54  ;;  %v646_v34 = vld [vmem:[%s8232_s19 + $0x28] sm:$0xff] }
 0xb9e   :  { %v3116_v31 = vadd.f32 %v4708_v50, %v3107_v27  ;;  %6155 = vmatprep.subr.bf16.mxu0 %v6154_v30  ;;  %v647_v27 = vld [vmem:[%s8232_s19 + $0x30] sm:$0xff] }
 0xb9f   :  { %v6473_v33 = vpop.eup %6472  ;;  %v3324_v37 = vpop.permute.xlu0 %3323 }
 0xba0   :  { %v3119_v35 = vmax.f32 %v3116_v31, 0.0  ;;  %v3099_v36 = vmul.f32 %v6473_v33, %v3090_v28  ;;  %v648_v28 = vld [vmem:[%s8232_s19 + $0x38] sm:$0xff]  ;;  %v609_v33 = vld [vmem:[%s8233_s7] sm:$0xff] }
 0xba1   :  { %6157 = vmatpush3.bf16.msra.mxu0 %v6154_v30  ;;  %v6190_v31 = vpack.c.bf16 %v648_v28, %v647_v27  ;;  %v616_v30 = vld [vmem:[%s8233_s7 + $0x38] sm:$0xff]  ;;  %v4730_v27 = vld [vmem:[%s8238_s15] ss:$0 sm:$0xff] }
 0xba2   :  { %5587 = vmatmul.mubr.msk.f32.vlgmr.msra.gmra.mrb[44].mxu1 %vm777_vm0, %v3119_v35  ;;  %v3108_v38 = vmul.f32 %v4707_v41, %v3099_v36  ;;  %6159 = vmatprep.subr.bf16.mxu0 %v6158_v63  ;;  %v617_v35 = vld [vmem:[%s8234_s11] sm:$0xff] }
 0xba3   :  { %5589 = vmatprep.mubr.msk.f32.mxu1 %vm6939_vm1, %v6940_v21  ;;  %v3329_v10 = vpop.permute.xlu1 %3328  ;;  %v4727_v28 = vld [vmem:[%s8239_s25] ss:$0 sm:$0xff] }
 0xba4   :  { %v3117_v62 = vadd.f32 %v4708_v50, %v3108_v38  ;;  %v618_v38 = vld [vmem:[%s8234_s11 + $0x8] sm:$0xff] }
 0xba5   :  { %6161 = vmatpush3.bf16.msra.mxu0 %v6158_v63  ;;  %v6174_v63 = vpack.c.bf16 %v616_v30, %v615_v57 }
 0xba6   :  { %v3120_v40 = vmax.f32 %v3117_v62, 0.0  ;;  %v6194_v62 = vpack.c.bf16 %v618_v38, %v617_v35 }
 0xba7   :  { %v6475_v45 = vpop.eup %6474  ;;  %v3334_v17 = vpop.permute.xlu1 %3333 }
 0xba8   :  { %5590 = vmatmul.mubr.msk.f32.gmra.mrb[46].mxu1 %vm777_vm0, %v3120_v40  ;;  %v3100_v5 = vmul.f32 %v6475_v45, %v3091_v39  ;;  %v611_v39 = vld [vmem:[%s8233_s7 + $0x10] sm:$0xff]  ;;  %v612_v40 = vld [vmem:[%s8233_s7 + $0x18] sm:$0xff] }
 0xba9   :  { %5592 = vmatprep.mubr.msk.f32.mxu1 %vm6939_vm1, %v6940_v21  ;;  %v619_v45 = vld [vmem:[%s8234_s11 + $0x10] sm:$0xff]  ;;  %v6166_v13 = vpack.c.bf16 %v612_v40, %v611_v39  ;;  %v4735_v40 = vld [vmem:[%s8240_s29] ss:$0 sm:$0xff] }
 0xbaa   :  { %v3109_v56 = vmul.f32 %v4707_v41, %v3100_v5  ;;  %v6178_v41 = vpack.c.bf16 %v642_v32, %v641_v15  ;;  %v620_v5 = vld [vmem:[%s8234_s11 + $0x18] sm:$0xff]  ;;  %v629_v15 = vld [vmem:[%s8235_s28 + $0x20] sm:$0xff]  ;;  %v630_v32 = vld [vmem:[%s8235_s28 + $0x28] sm:$0xff] }
 0xbab   :  { %v6198_v48 = vpack.c.bf16 %v620_v5, %v619_v45 }
 0xbac   :  { %v3118_v46 = vadd.f32 %v4708_v50, %v3109_v56  ;;  %v6186_v50 = vpack.c.bf16 %v646_v34, %v645_v43 }
 0xbae   :  { %v3121_v47 = vmax.f32 %v3118_v46, 0.0 }
 0xbb0   :  { %5593 = vmatmul.mubr.msk.f32.gmra.mrb[48].mxu1 %vm777_vm0, %v3121_v47  ;;  %v613_v47 = vld [vmem:[%s8233_s7 + $0x20] sm:$0xff] }
 0xbb1   :  { %5626 = vmatprep.mubr.msk.f32.mxu1 %vm2000_vm13, %v7660_v19  ;;  %v6170_v54 = vpack.c.bf16 %v614_v49, %v613_v47 }
 0xc75   :  { %v3203_v19 = vpop.f32.mrb[44].mxu1 }
 0xc76   :  { %v5588_v0 = vpop.f32.mrb[45].mxu1  ;;  %v3204_v2 = vadd.f32 %v4709_v1, %v3203_v19  ;;  %v6206_v19 = vpack.c.bf16 %v624_v29, %v623_v58 }
 0xc77   :  { %v625_v0 = vld [vmem:[%s8235_s28] sm:$0xff] }
 0xc78   :  { %v3336_v11 = vmul.f32 %v3324_v37, %v3204_v2  ;;  %v601_v2 = vld [vmem:[%s8236_s4] sm:$0xff]  ;;  %v627_v37 = vld [vmem:[%s8235_s28 + $0x10] sm:$0xff] }
 0xc7b   :  { %v3208_v4 = vpop.f32.mrb[46].mxu1 }
 0xc7c   :  { %v3209_v6 = vadd.f32 %v4709_v1, %v3208_v4  ;;  %v5591_v9 = vpop.f32.mrb[47].mxu1  ;;  %v602_v4 = vld [vmem:[%s8236_s4 + $0x8] sm:$0xff] }
 0xc7d   :  { %v6226_v9 = vpack.c.bf16 %v602_v4, %v601_v2  ;;  %v4738_v2 = vld [vmem:[%s8242_s22] ss:$0 sm:$0xff] }
 0xc7e   :  { %v3337_v12 = vmul.f32 %v3329_v10, %v3209_v6  ;;  %v628_v10 = vld [vmem:[%s8235_s28 + $0x18] sm:$0xff] }
 0xc80   :  { %v6142_v25 = vpack.c.bf16 %v3337_v12, %v3336_v11  ;;  %v603_v11 = vld [vmem:[%s8236_s4 + $0x10] sm:$0xff]  ;;  %v604_v12 = vld [vmem:[%s8236_s4 + $0x18] sm:$0xff] }
 0xc82   :  { %6143 = vmatprep.subr.bf16.mxu1 %v6142_v25 }
 0xc83   :  { %v3213_v14 = vpop.f32.mrb[48].mxu1  ;;  %6145 = vmatpush3.bf16.msra.mxu1 %v6142_v25  ;;  %v6214_v25 = vpack.c.bf16 %v628_v10, %v627_v37 }
 0xc84   :  { %v3214_v44 = vadd.f32 %v4709_v1, %v3213_v14  ;;  %v5594_v42 = vpop.f32.mrb[49].mxu1  ;;  %v626_v1 = vld [vmem:[%s8235_s28 + $0x8] sm:$0xff]  ;;  %v6230_v14 = vpack.c.bf16 %v604_v12, %v603_v11 }
 0xc85   :  { %v6210_v6 = vpack.c.bf16 %v626_v1, %v625_v0  ;;  %v606_v42 = vld [vmem:[%s8236_s4 + $0x28] sm:$0xff]  ;;  %v4741_v0 = vld [vmem:[%s8241_s18] ss:$0 sm:$0xff] }
 0xc86   :  { %v3338_v26 = vmul.f32 %v3334_v17, %v3214_v44  ;;  %v605_v44 = vld [vmem:[%s8236_s4 + $0x20] sm:$0xff]  ;;  %v6218_v17 = vpack.c.bf16 %v630_v32, %v629_v15 }
 0xc87   :  { %v6234_v22 = vpack.c.bf16 %v606_v42, %v605_v44 }
 0xc88   :  { %5624 = vmatprep.subr.mxu1 %v3338_v26 }
 0xc89   :  { %5625 = vmatpush3.msra.mxu1 %v3338_v26  ;;  %v632_v26 = vld [vmem:[%s8235_s28 + $0x38] sm:$0xff] }
 0xc8a   :  { %5627 = vmatmul.mubr.msk.f32.vlgmr.msra.gmra.mrb[50].mxu1 %vm2000_vm13, %v7678_v8  ;;  %6179 = vmatprep.subr.bf16.mxu1 %v6178_v41  ;;  %v610_v8 = vld [vmem:[%s8233_s7 + $0x8] sm:$0xff]  ;;  %v6222_v43 = vpack.c.bf16 %v632_v26, %v631_v23 }
 0xc8b   :  { %6181 = vmatpush3.bf16.msra.mxu1 %v6178_v41  ;;  %v6162_v36 = vpack.c.bf16 %v610_v8, %v609_v33  ;;  %v607_v41 = vld [vmem:[%s8236_s4 + $0x30] sm:$0xff] }
 0xc8c   :  { %6183 = vmatprep.subr.bf16.mxu1 %v6182_v24 }
 0xc8d   :  { %6163 = vmatprep.subr.bf16.mxu0 %v6162_v36 }
 0xc8f   :  { %6185 = vmatpush3.bf16.msra.mxu1 %v6182_v24  ;;  %v608_v24 = vld [vmem:[%s8236_s4 + $0x38] sm:$0xff] }
 0xc90   :  { %6187 = vmatprep.subr.bf16.mxu1 %v6186_v50  ;;  %v6238_v34 = vpack.c.bf16 %v608_v24, %v607_v41 }
 0xc93   :  { %6189 = vmatpush3.bf16.msra.mxu1 %v6186_v50  ;;  %v4722_v50 = vld [vmem:[%s8237_s12] ss:$0 sm:$0xff] }
 0xc94   :  { %6191 = vmatprep.subr.bf16.mxu1 %v6190_v31 }
 0xc97   :  { %6193 = vmatpush3.bf16.msra.mxu1 %v6190_v31 }
 0xc98   :  { %6195 = vmatprep.subr.bf16.mxu1 %v6194_v62 }
 0xd5d   :  { %v7942_v56 = vpop.f32.mrb[50].mxu1 }
 0xd5e   :  { %v3405_v46 = vpop.f32.mrb[51].mxu1 }
 0xd5f   :  { %5645 = vmatprep.mubr.msk.f32.mxu0 %vm777_vm0, %v3405_v46  ;;  %5683 = vmatprep.mubr.msk.f32.mxu1 %vm777_vm0, %v3405_v46 }
 0xd60   :  { %5646 = vmatmul.mubr.msk.f32.vlgmr.msra.gmra.mrb[60].mxu0 %vm777_vm0, %v7942_v56  ;;  %5684 = vmatmul.mubr.msk.f32.vlgmr.msra.gmra.mrb[52].mxu1 %vm777_vm0, %v7942_v56 }
 0xd61   :  { %6165 = vmatpush3.bf16.msra.mxu0 %v6162_v36  ;;  %6197 = vmatpush3.bf16.msra.mxu1 %v6194_v62 }
 0xd62   :  { %5664 = vmatprep.mubr.msk.f32.mxu0 %vm777_vm0, %v7751_v18  ;;  %5702 = vmatprep.mubr.msk.f32.mxu1 %vm777_vm0, %v7751_v18 }
 0xd63   :  { %6167 = vmatprep.subr.bf16.mxu0 %v6166_v13  ;;  %6199 = vmatprep.subr.bf16.mxu1 %v6198_v48 }
 0xd65   :  { %6169 = vmatpush3.bf16.msra.mxu0 %v6166_v13  ;;  %6201 = vmatpush3.bf16.msra.mxu1 %v6198_v48 }
 0xd66   :  { %6171 = vmatprep.subr.bf16.mxu0 %v6170_v54  ;;  %6203 = vmatprep.subr.bf16.mxu1 %v6202_v55 }
 0xd69   :  { %6173 = vmatpush3.bf16.msra.mxu0 %v6170_v54  ;;  %6205 = vmatpush3.bf16.msra.mxu1 %v6202_v55 }
 0xd6a   :  { %6175 = vmatprep.subr.bf16.mxu0 %v6174_v63  ;;  %6207 = vmatprep.subr.bf16.mxu1 %v6206_v19 }
 0xd6d   :  { %6177 = vmatpush3.bf16.msra.mxu0 %v6174_v63  ;;  %6209 = vmatpush3.bf16.msra.mxu1 %v6206_v19 }
 0xd6e   :  { %6211 = vmatprep.subr.bf16.mxu0 %v6210_v6  ;;  %6227 = vmatprep.subr.bf16.mxu1 %v6226_v9 }
 0xd70   :  { %5665 = vmatmul.mubr.msk.f32.vlgmr.msra.gmra.mrb[60].mxu0 %vm777_vm0, %v7749_v16  ;;  %5703 = vmatmul.mubr.msk.f32.vlgmr.msra.gmra.mrb[52].mxu1 %vm777_vm0, %v7749_v16 }
 0xd71   :  { %6213 = vmatpush3.bf16.msra.mxu0 %v6210_v6  ;;  %5721 = vmatprep.mubr.msk.f32.mxu0 %vm777_vm0, %v3405_v46 }
 0xd72   :  { %6229 = vmatpush3.bf16.msra.mxu1 %v6226_v9  ;;  %5740 = vmatprep.mubr.msk.f32.mxu1 %vm777_vm0, %v7751_v18 }
 0xd73   :  { %6215 = vmatprep.subr.bf16.mxu0 %v6214_v25  ;;  %6231 = vmatprep.subr.bf16.mxu1 %v6230_v14 }
 0xd75   :  { %6217 = vmatpush3.bf16.msra.mxu0 %v6214_v25 }
 0xd76   :  { %6233 = vmatpush3.bf16.msra.mxu1 %v6230_v14  ;;  %6219 = vmatprep.subr.bf16.mxu0 %v6218_v17 }
 0xd77   :  { %6235 = vmatprep.subr.bf16.mxu1 %v6234_v22 }
 0xd79   :  { %6221 = vmatpush3.bf16.msra.mxu0 %v6218_v17 }
 0xd7a   :  { %6237 = vmatpush3.bf16.msra.mxu1 %v6234_v22  ;;  %6223 = vmatprep.subr.bf16.mxu0 %v6222_v43 }
 0xd7b   :  { %6239 = vmatprep.subr.bf16.mxu1 %v6238_v34 }
 0xd7d   :  { %6225 = vmatpush3.bf16.msra.mxu0 %v6222_v43 }
 0xd7e   :  { %6241 = vmatpush3.bf16.msra.mxu1 %v6238_v34  ;;  %6242 = vmatprep.subr.bf16.mxu0 %v6938_v20 }
 0xd7f   :  { %6245 = vmatprep.subr.bf16.mxu1 %v6938_v20 }
 0xd80   :  { %5722 = vmatmul.mubr.msk.f32.vlgmr.msra.gmra.mrb[62].mxu0 %vm777_vm0, %v7942_v56 }
 0xd81   :  { %5741 = vmatmul.mubr.msk.f32.vlgmr.msra.gmra.mrb[54].mxu1 %vm777_vm0, %v7749_v16  ;;  %5747 = vmatprep.mubr.msk.f32.mxu0 %vm6939_vm1, %v6940_v21 }
 0xd82   :  { %5760 = vmatprep.mubr.msk.f32.mxu1 %vm6939_vm1, %v6940_v21 }
 0xe43   :  { %v5666_v31 = vpop.f32.mrb[60].mxu0  ;;  %v5704_v33 = vpop.f32.mrb[52].mxu1 }
 0xe44   :  { %v6304_v8 = vadd.f32 %v5666_v31, %v4722_v50  ;;  %v3573_v35 = vpop.f32.mrb[61].mxu0  ;;  %v3751_v36 = vpop.f32.mrb[53].mxu1  ;;  %v6306_v38 = vadd.f32 %v5704_v33, %v4730_v27  ;;  %v472_v33 = vld [vmem:[%s8243_s23 + $0x8] sm:$0xff] }
 0xe45   :  { %v6305_v62 = vadd.f32 %v4722_v50, %v3573_v35  ;;  %v6307_v5 = vadd.f32 %v4730_v27, %v3751_v36  ;;  %v464_v35 = vld [vmem:[%s8244_s30 + $0x8] sm:$0xff]  ;;  %v473_v36 = vld [vmem:[%s8243_s23 + $0x10] sm:$0xff] }
 0xe46   :  { %v3591_v39 = vadd.f32 %v6304_v8, %v4727_v28  ;;  %v3769_v46 = vadd.f32 %v6306_v38, %v4735_v40  ;;  %v463_v8 = vld [vmem:[%s8244_s30] sm:$0xff]  ;;  %v474_v38 = vld [vmem:[%s8243_s23 + $0x18] sm:$0xff] }
 0xe47   :  { %v3590_v45 = vadd.f32 %v6305_v62, %v4727_v28  ;;  %v3768_v13 = vadd.f32 %v6307_v5, %v4735_v40  ;;  %v471_v28 = vld [vmem:[%s8243_s23] sm:$0xff]  ;;  %v465_v62 = vld [vmem:[%s8244_s30 + $0x10] sm:$0xff]  ;;  %v6264_v40 = vpack.c.bf16 %v474_v38, %v473_v36 }
 0xe48   :  { %v4729_v56 = vmul.f32 -1.442695, %v3591_v39  ;;  %v4737_v48 = vmul.f32 -1.442695, %v3769_v46  ;;  %v466_v39 = vld [vmem:[%s8244_s30 + $0x18] sm:$0xff]  ;;  %v475_v5 = vld [vmem:[%s8243_s23 + $0x20] sm:$0xff] }
 0xe49   :  { %v4728_v47 = vmul.f32 -1.442695, %v3590_v45  ;;  %v4736_v49 = vmul.f32 -1.442695, %v3768_v13  ;;  %v6252_v45 = vpack.c.bf16 %v466_v39, %v465_v62  ;;  %v477_v13 = vld [vmem:[%s8243_s23 + $0x30] sm:$0xff] }
 0xe4a   :  { %6476 = vpow2.f32 %v4729_v56  ;;  %v468_v56 = vld [vmem:[%s8244_s30 + $0x28] sm:$0xff] }
 0xe4b   :  { %6478 = vpow2.f32 %v4728_v47 }
 0xe4c   :  { %6480 = vpow2.f32 %v4737_v48  ;;  %v478_v48 = vld [vmem:[%s8243_s23 + $0x38] sm:$0xff] }
 0xe4d   :  { %6482 = vpow2.f32 %v4736_v49  ;;  %v6270_v49 = vpack.c.bf16 %v478_v48, %v477_v13  ;;  %v4764_v48 = vld [vmem:[#allocation23] ss:$0 sm:$0xff] }
 0xe53   :  { %v5723_v51 = vpop.f32.mrb[62].mxu0 }
 0xe54   :  { %v6477_v59 = vpop.eup %6476  ;;  %v5742_v54 = vpop.f32.mrb[54].mxu1  ;;  %v3860_v37 = vadd.f32 %v5723_v51, %v4738_v2 }
 0xe55   :  { %v3854_v55 = vpop.f32.mrb[63].mxu0  ;;  %v3599_v57 = vadd.f32 1.0, %v6477_v59  ;;  %v3935_v30 = vpop.f32.mrb[55].mxu1  ;;  %v3941_v6 = vadd.f32 %v5742_v54, %v4741_v0  ;;  %v688_v54 = vld [vmem:[%s8245_s26 + $0x10] sm:$0xff] }
 0xe56   :  { %v6479_v58 = vpop.eup %6478  ;;  %v3936_v11 = vadd.f32 %v4741_v0, %v3935_v30  ;;  %v3855_v14 = vadd.f32 %v4738_v2, %v3854_v55  ;;  %v689_v55 = vld [vmem:[%s8245_s26 + $0x18] sm:$0xff]  ;;  %v480_v30 = vld [vmem:[%s8246_s10 + $0x8] sm:$0xff] }
 0xe57   :  { %6484 = vrcp.f32 %v3599_v57  ;;  %v3598_v29 = vadd.f32 1.0, %v6479_v58  ;;  %v6481_v63 = vpop.eup %6480  ;;  %v479_v57 = vld [vmem:[%s8246_s10] sm:$0xff]  ;;  %v6288_v58 = vpack.c.bf16 %v689_v55, %v688_v54  ;;  %v691_v0 = vld [vmem:[%s8245_s26 + $0x28] sm:$0xff] }
 0xe58   :  { %v6483_v19 = vpop.eup %6482  ;;  %v3777_v1 = vadd.f32 1.0, %v6481_v63 }
 0xe59   :  { %6486 = vrcp.f32 %v3598_v29  ;;  %v3776_v4 = vadd.f32 1.0, %v6483_v19  ;;  %v690_v19 = vld [vmem:[%s8245_s26 + $0x20] sm:$0xff] }
 0xe5a   :  { %6488 = vrcp.f32 %v3777_v1  ;;  %v6273_v1 = vpack.c.bf16 %v480_v30, %v479_v57 }
 0xe5b   :  { %6490 = vrcp.f32 %v3776_v4 }
 0xe61   :  { %v6485_v9 = vpop.eup %6484 }
 0xe62   :  { %v3945_v10 = vmul.f32 %v6485_v9, %v3941_v6  ;;  %v6292_v6 = vpack.c.bf16 %v691_v0, %v690_v19  ;;  %v692_v9 = vld [vmem:[%s8245_s26 + $0x30] sm:$0xff] }
 0xe63   :  { %v6487_v12 = vpop.eup %6486 }
 0xe64   :  { %v3947_v25 = vadd.f32 %v3945_v10, %v3860_v37  ;;  %v3944_v15 = vmul.f32 %v6487_v12, %v3936_v11  ;;  %v6489_v44 = vpop.eup %6488  ;;  %v693_v11 = vld [vmem:[%s8245_s26 + $0x38] sm:$0xff]  ;;  %v481_v12 = vld [vmem:[%s8246_s10 + $0x10] sm:$0xff] }
 0xe65   :  { %v6491_v42 = vpop.eup %6490  ;;  %v3951_v17 = vsub.f32 1.0, %v6489_v44  ;;  %v3955_v41 = vmul.f32 %v6489_v44, %v7749_v16  ;;  %v6261_v16 = vpack.c.bf16 %v472_v33, %v471_v28 }
 0xe66   :  { %6492 = vtanh.f32 %v3947_v25  ;;  %v3946_v32 = vadd.f32 %v3944_v15, %v3855_v14  ;;  %v3950_v23 = vsub.f32 1.0, %v6491_v42  ;;  %v3954_v34 = vmul.f32 %v6491_v42, %v7751_v18  ;;  %v482_v25 = vld [vmem:[%s8246_s10 + $0x18] sm:$0xff] }
 0xe67   :  { %v6249_v18 = vpack.c.bf16 %v464_v35, %v463_v8  ;;  %v6276_v44 = vpack.c.bf16 %v482_v25, %v481_v12 }
 0xe68   :  { %6494 = vtanh.f32 %v3946_v32  ;;  %v6296_v32 = vpack.c.bf16 %v693_v11, %v692_v9 }
 0xe70   :  { %v6493_v22 = vpop.eup %6492 }
 0xe71   :  { %v3953_v26 = vmul.f32 %v6493_v22, %v3951_v17 }
 0xe72   :  { %v6495_v24 = vpop.eup %6494 }
 0xe73   :  { %v3952_v43 = vmul.f32 %v6495_v24, %v3950_v23  ;;  %v8003_v50 = vadd.f32 %v3955_v41, %v3953_v26  ;;  %v483_v26 = vld [vmem:[%s8246_s10 + $0x20] sm:$0xff]  ;;  %v484_v41 = vld [vmem:[%s8246_s10 + $0x28] sm:$0xff] }
 0xe74   :  { %v6279_v24 = vpack.c.bf16 %v484_v41, %v483_v26 }
 0xe75   :  { %v8005_v27 = vadd.f32 %v3954_v34, %v3952_v43  ;;  %v485_v43 = vld [vmem:[%s8246_s10 + $0x30] sm:$0xff]  ;;  %v486_v34 = vld [vmem:[%s8246_s10 + $0x38] sm:$0xff] }
 0xe77   :  { %v6243_v31 = vpack.c.bf16 %v8003_v50, %v8005_v27 }
 0xe79   :  { %6244 = vmatpush3.bf16.msra.mxu0 %v6243_v31  ;;  %6247 = vmatpush3.bf16.msra.mxu1 %v6243_v31  ;;  %v4756_v31 = vld [vmem:[#allocation10] ss:$0 sm:$0xff] }
 0xe7a   :  { %6260 = vmatprep.subr.bf16.mxu1 %v6938_v20  ;;  %6248 = vmatprep.subr.bf16.mxu0 %v6938_v20 }
 0xe7c   :  { %5748 = vmatmul.mubr.msk.f32.vlgmr.msra.gmra.mrb[64].mxu0 %vm1259_vm7, %v7470_v52  ;;  %5761 = vmatmul.mubr.msk.f32.vlgmr.msra.gmra.mrb[56].mxu1 %vm1259_vm7, %v7473_v53  ;;  %v476_v52 = vld [vmem:[%s8243_s23 + $0x28] sm:$0xff]  ;;  %v467_v53 = vld [vmem:[%s8244_s30 + $0x20] sm:$0xff] }
 0xe7d   :  { %5750 = vmatprep.mubr.msk.f32.mxu0 %vm6939_vm1, %v6940_v21  ;;  %5763 = vmatprep.mubr.msk.f32.mxu1 %vm6939_vm1, %v6940_v21  ;;  %v6267_v46 = vpack.c.bf16 %v476_v52, %v475_v5  ;;  %v6255_v47 = vpack.c.bf16 %v468_v56, %v467_v53 }
 0xe7e   :  { %6262 = vmatpush3.bf16.msra.mxu1 %v6261_v16  ;;  %6250 = vmatpush3.bf16.msra.mxu0 %v6249_v18 }
 0xe7f   :  { %6263 = vmatprep.subr.bf16.mxu1 %v6938_v20  ;;  %6251 = vmatprep.subr.bf16.mxu0 %v6938_v20 }
 0xe80   :  { %5751 = vmatmul.mubr.msk.f32.gmra.mrb[66].mxu0 %vm1259_vm7, %v7490_v61  ;;  %5764 = vmatmul.mubr.msk.f32.gmra.mrb[58].mxu1 %vm1259_vm7, %v7487_v60  ;;  %v469_v61 = vld [vmem:[%s8244_s30 + $0x30] sm:$0xff]  ;;  %v470_v60 = vld [vmem:[%s8244_s30 + $0x38] sm:$0xff] }
 0xe81   :  { %5753 = vmatprep.mubr.msk.f32.mxu0 %vm6939_vm1, %v6940_v21  ;;  %5766 = vmatprep.mubr.msk.f32.mxu1 %vm6939_vm1, %v6940_v21  ;;  %v6258_v51 = vpack.c.bf16 %v470_v60, %v469_v61 }
 0xe82   :  { %6265 = vmatpush3.bf16.msra.mxu1 %v6264_v40  ;;  %6253 = vmatpush3.bf16.msra.mxu0 %v6252_v45 }
 0xe83   :  { %6266 = vmatprep.subr.bf16.mxu1 %v6938_v20  ;;  %6254 = vmatprep.subr.bf16.mxu0 %v6938_v20 }
 0xe84   :  { %5754 = vmatmul.mubr.msk.f32.gmra.mrb[68].mxu0 %vm1259_vm7, %v7508_v3  ;;  %5767 = vmatmul.mubr.msk.f32.gmra.mrb[60].mxu1 %vm1259_vm7, %v7516_v7  ;;  %v686_v3 = vld [vmem:[%s8245_s26] sm:$0xff]  ;;  %v687_v7 = vld [vmem:[%s8245_s26 + $0x8] sm:$0xff] }
 0xe85   :  { %5785 = vmatprep.mubr.msk.f32.mxu0 %vm6939_vm1, %v6940_v21  ;;  %5810 = vmatprep.mubr.msk.f32.mxu1 %vm6939_vm1, %v6940_v21  ;;  %v6284_v59 = vpack.c.bf16 %v687_v7, %v686_v3 }
 0xe86   :  { %6268 = vmatpush3.bf16.msra.mxu1 %v6267_v46  ;;  %6256 = vmatpush3.bf16.msra.mxu0 %v6255_v47 }
 0xe87   :  { %6269 = vmatprep.subr.bf16.mxu1 %v6938_v20  ;;  %6257 = vmatprep.subr.bf16.mxu0 %v6938_v20 }
 0xe8a   :  { %6271 = vmatpush3.bf16.msra.mxu1 %v6270_v49  ;;  %6259 = vmatpush3.bf16.msra.mxu0 %v6258_v51 }
 0xe8b   :  { %6272 = vmatprep.subr.bf16.mxu0 %v6938_v20  ;;  %6285 = vmatprep.subr.bf16.mxu1 %v6284_v59 }
 0xf4f   :  { %v4024_v29 = vpop.f32.mrb[64].mxu0  ;;  %v4104_v63 = vpop.f32.mrb[56].mxu1 }
 0xf50   :  { %v5749_v2 = vpop.f32.mrb[65].mxu0  ;;  %v5762_v4 = vpop.f32.mrb[57].mxu1  ;;  %5786 = vmatmul.mubr.msk.f32.vlgmr.msra.gmra.mrb[70].mxu0 %vm777_vm0, %v4104_v63  ;;  %5811 = vmatmul.mubr.msk.f32.vlgmr.msra.gmra.mrb[62].mxu1 %vm777_vm0, %v4024_v29 }
 0xf51   :  { %6287 = vmatpush3.bf16.msra.mxu1 %v6284_v59  ;;  %5788 = vmatprep.mubr.msk.f32.mxu0 %vm6939_vm1, %v6940_v21 }
 0xf52   :  { %5813 = vmatprep.mubr.msk.f32.mxu1 %vm6939_vm1, %v6940_v21  ;;  %6289 = vmatprep.subr.bf16.mxu1 %v6288_v58 }
 0xf53   :  { %v4029_v37 = vpop.f32.mrb[66].mxu0  ;;  %v4109_v10 = vpop.f32.mrb[58].mxu1  ;;  %6274 = vmatpush3.bf16.msra.mxu0 %v6273_v1 }
 0xf54   :  { %v5752_v14 = vpop.f32.mrb[67].mxu0  ;;  %v5765_v15 = vpop.f32.mrb[59].mxu1  ;;  %5789 = vmatmul.mubr.msk.f32.gmra.mrb[72].mxu0 %vm777_vm0, %v4109_v10  ;;  %5814 = vmatmul.mubr.msk.f32.gmra.mrb[64].mxu1 %vm777_vm0, %v4029_v37 }
 0xf55   :  { %6291 = vmatpush3.bf16.msra.mxu1 %v6288_v58  ;;  %5791 = vmatprep.mubr.msk.f32.mxu0 %vm6939_vm1, %v6940_v21 }
 0xf56   :  { %5816 = vmatprep.mubr.msk.f32.mxu1 %vm6939_vm1, %v6940_v21  ;;  %6293 = vmatprep.subr.bf16.mxu1 %v6292_v6 }
 0xf57   :  { %v4034_v42 = vpop.f32.mrb[68].mxu0  ;;  %v4114_v17 = vpop.f32.mrb[60].mxu1  ;;  %6275 = vmatprep.subr.bf16.mxu0 %v6938_v20 }
 0xf58   :  { %v5755_v22 = vpop.f32.mrb[69].mxu0  ;;  %v5768_v23 = vpop.f32.mrb[61].mxu1  ;;  %5792 = vmatmul.mubr.msk.f32.gmra.mrb[74].mxu0 %vm777_vm0, %v4114_v17  ;;  %5817 = vmatmul.mubr.msk.f32.gmra.mrb[66].mxu1 %vm777_vm0, %v4034_v42 }
 0xf59   :  { %6295 = vmatpush3.bf16.msra.mxu1 %v6292_v6  ;;  %5860 = vmatprep.mubr.msk.f32.mxu1 %vm777_vm0, %v8005_v27  ;;  %v6282_v27 = vpack.c.bf16 %v486_v34, %v485_v43 }
 0xf5a   :  { %6297 = vmatprep.subr.bf16.mxu1 %v6296_v32  ;;  %6277 = vmatpush3.bf16.msra.mxu0 %v6276_v44 }
 0xf5b   :  { %6278 = vmatprep.subr.bf16.mxu0 %v6938_v20  ;;  %5835 = vmatprep.mubr.msk.f32.mxu0 %vm6939_vm1, %v6940_v21 }
 0xf5d   :  { %6299 = vmatpush3.bf16.msra.mxu1 %v6296_v32 }
 0xf5e   :  { %6280 = vmatpush3.bf16.msra.mxu0 %v6279_v24 }
 0xf5f   :  { %6281 = vmatprep.subr.bf16.mxu0 %v6938_v20 }
 0xf60   :  { %5861 = vmatmul.mubr.msk.f32.vlgmr.msra.gmra.mrb[68].mxu1 %vm777_vm0, %v8003_v50 }
 0xf62   :  { %6283 = vmatpush3.bf16.msra.mxu0 %v6282_v27 }
0x1023   :  { %v4193_v28 = vpop.f32.mrb[70].mxu0  ;;  %v4282_v33 = vpop.f32.mrb[62].mxu1 }
0x1024   :  { %v4283_v8 = vadd.f32 %v4282_v33, %v4193_v28  ;;  %v5787_v35 = vpop.f32.mrb[71].mxu0  ;;  %v5812_v16 = vpop.f32.mrb[63].mxu1 }
0x1026   :  { %v4302_v18 = vadd.f32 %v4756_v31, %v4283_v8 }
0x1027   :  { %v4198_v36 = vpop.f32.mrb[72].mxu0  ;;  %v4287_v38 = vpop.f32.mrb[64].mxu1 }
0x1028   :  { %v4305_v50 = vmax.f32 %v4302_v18, 0.0  ;;  %v4288_v62 = vadd.f32 %v4287_v38, %v4198_v36  ;;  %v5790_v39 = vpop.f32.mrb[73].mxu0  ;;  %v5815_v40 = vpop.f32.mrb[65].mxu1 }
0x102a   :  { %v4303_v45 = vadd.f32 %v4756_v31, %v4288_v62  ;;  %5836 = vmatmul.mubr.msk.f32.vlgmr.msra.gmra.mrb[76].mxu0 %vm777_vm0, %v4305_v50 }
0x102b   :  { %v4203_v20 = vpop.f32.mrb[74].mxu0  ;;  %v4292_v5 = vpop.f32.mrb[66].mxu1  ;;  %5838 = vmatprep.mubr.msk.f32.mxu0 %vm6939_vm1, %v6940_v21 }
0x102c   :  { %v4306_v52 = vmax.f32 %v4303_v45, 0.0  ;;  %v4293_v53 = vadd.f32 %v4292_v5, %v4203_v20  ;;  %v5793_v56 = vpop.f32.mrb[75].mxu0  ;;  %v5818_v46 = vpop.f32.mrb[67].mxu1 }
0x102e   :  { %v4304_v47 = vadd.f32 %v4756_v31, %v4293_v53  ;;  %5839 = vmatmul.mubr.msk.f32.gmra.mrb[78].mxu0 %vm777_vm0, %v4306_v52 }
0x102f   :  { %5841 = vmatprep.mubr.msk.f32.mxu0 %vm6939_vm1, %v6940_v21 }
0x1030   :  { %v4307_v13 = vmax.f32 %v4304_v47, 0.0 }
0x1032   :  { %5842 = vmatmul.mubr.msk.f32.gmra.mrb[80].mxu0 %vm777_vm0, %v4307_v13 }
0x1033   :  { %v5862_v61 = vpop.f32.mrb[68].mxu1 }
0x1034   :  { %v4509_v60 = vadd.f32 %v5862_v61, %v4764_v48  ;;  %v4503_v49 = vpop.f32.mrb[69].mxu1 }
0x1035   :  { %v4504_v51 = vadd.f32 %v4764_v48, %v4503_v49 }
0x1036   :  { %4513 = vst.msk [vmem:[#allocation28 + $0x8] sm:$0xff] %vm777_vm0, %v4509_v60 }
0x1037   :  { %4512 = vst.msk [vmem:[#allocation28] sm:$0xff] %vm777_vm0, %v4504_v51 }
0x1038   :  { %6827 = shalt.err (!%p6824_p4)
}
0x1039   :  { %s6828_s1 = scalar_lea.hbm %s7277_s17, 256 }
0x103a   :  { %p6829_p5 = scmp.ne.s32.totalorder %s7277_s17, %s6828_s1  ;;  %p6832_p6 = scmp.lt.u32.totalorder %s6828_s1, %s7277_s17 }
0x103c   :  { %p6834_p7 = pnand %p6832_p6, %p6829_p5 }
0x103e   :  { %6837 = shalt.err (!%p6834_p7)
}
0x103f   :  { %s6944_s2 = smov 128   ;;  %s6945_s3 = smov 8   ;;  %v4757_v21 = vld [vmem:[#allocation2] ss:$0 sm:$0xff]  ;;  %vm4421_vm14 = vcmask 7168  }
0x1040   :  { %4525 = dma.vmem_to_hbm [thread:$0]  %s4520_s5, 256, %s7277_s17, [#allocation7], %s6944_s2, %s6944_s2, %s6945_s3  }
0x10fd   :  { %v4389_v3 = vpop.f32.mrb[76].mxu0 }
0x10fe   :  { %v4390_v7 = vadd.f32 %v4757_v21, %v4389_v3  ;;  %v5837_v59 = vpop.f32.mrb[77].mxu0 }
0x1100   :  { %v4761_v54 = vmul.f32 -1.442695, %v4390_v7 }
0x1101   :  { %v4394_v55 = vpop.f32.mrb[78].mxu0 }
0x1102   :  { %6496 = vpow2.f32 %v4761_v54  ;;  %v4395_v57 = vadd.f32 %v4757_v21, %v4394_v55  ;;  %v5840_v30 = vpop.f32.mrb[79].mxu0 }
0x1104   :  { %v4762_v58 = vmul.f32 -1.442695, %v4395_v57 }
0x1105   :  { %v4399_v29 = vpop.f32.mrb[80].mxu0 }
0x1106   :  { %6498 = vpow2.f32 %v4762_v58  ;;  %v4400_v63 = vadd.f32 %v4757_v21, %v4399_v29  ;;  %v5843_v19 = vpop.f32.mrb[81].mxu0 }
0x1108   :  { %v4763_v0 = vmul.f32 -1.442695, %v4400_v63 }
0x110a   :  { %6500 = vpow2.f32 %v4763_v0 }
0x110c   :  { %v6497_v1 = vpop.eup %6496 }
0x110d   :  { %v4412_v2 = vadd.f32 1.0, %v6497_v1 }
0x110f   :  { %6502 = vrcp.f32 %v4412_v2 }
0x1110   :  { %v6499_v4 = vpop.eup %6498 }
0x1111   :  { %v4413_v6 = vadd.f32 1.0, %v6499_v4 }
0x1113   :  { %6504 = vrcp.f32 %v4413_v6 }
0x1114   :  { %v6501_v9 = vpop.eup %6500 }
0x1115   :  { %v4414_v37 = vadd.f32 1.0, %v6501_v9 }
0x1117   :  { %6506 = vrcp.f32 %v4414_v37 }
0x1119   :  { %v6503_v10 = vpop.eup %6502 }
0x111a   :  { %4422 = vst.msk [vmem:[%s7282_s9] sm:$0xff] %vm4421_vm14, %v6503_v10 }
0x111d   :  { %v6505_v11 = vpop.eup %6504 }
0x111e   :  { %4423 = vst.msk [vmem:[%s7282_s9 + $0x8] sm:$0xff] %vm4421_vm14, %v6505_v11 }
0x1121   :  { %v6507_v12 = vpop.eup %6506 }
0x1122   :  { %4424 = vst.msk [vmem:[%s7282_s9 + $0x10] sm:$0xff] %vm4421_vm14, %v6507_v12 }
0x1123   :  { %6854 = dma.done.wait [#allocation7], 256  }
0x1124   :  { %6855 = vsyncadd [#allocation7], 4294967040 }
0x1125   :  { %4533 = vsyncpa [#allocation6], 1 }
0x1126   :  { %4534 = vsyncpa [#allocation9], 1 }
0x1127   :  { %4535 = vsyncpa [#allocation12], 1 }
0x1128   :  { %4536 = vsyncpa [#allocation15], 1 }
0x1129   :  { %4537 = vsyncpa [#allocation18], 1 }
0x112a   :  { %4538 = vsyncpa [#allocation21], 1 }
0x112b   :  { %4539 = vsyncpa [#allocation24], 1 }
0x112c   :  { %4540 = vsyncpa [#allocation27], 1 }
0x112d   :  { %4541 = vsyncpa [#allocation7], 1 }

</bundles_post_ra>
